<compile_context>
chip_gen: v6e
topology: v6e:2x2x1
jax: 0.10.0
libtpu: 0.0.40
codegen_flags: <defaults>
</compile_context>

<pallas_src>
import functools

import numpy as np

import jax
import jax.numpy as jnp
from jax.experimental import pallas as pl
from jax.experimental.pallas import tpu as pltpu

DIMS = [1, 16, 32, 64]          # CUDA branch of the reference module
NEG_SLOPE = 0.01


def _leaky(x):
    return jnp.where(x > 0, x, NEG_SLOPE * x)


def _conv_out_size(n):
    # Conv2d(k=3, s=2, p=1) output size.
    return (n + 2 - 3) // 2 + 1


# ---------------------------------------------------------------------------
# Single fused Pallas kernel: all 4 layers, BT images per grid step.
# ---------------------------------------------------------------------------
def _disc_kernel(a1_ref, w1_ref, g2_ref, w2_ref, g3_ref, w3_ref, w4_ref,
                 b4_ref, out_ref, *, bt):
    # a1_ref : (1, S1, BT*9)        bf16  im2col patches, lane = b*9 + tap
    # w1_ref : (BT*9, BT*16)        bf16  block-diag(W1) over the batch tile
    # g2_ref : (9, S2p, S1)         bf16  0/1 spatial gather, layer 2 (rows padded)
    # w2_ref : (9*BT*16, BT*32)     bf16  tap-major, block-diag over batch
    # g3_ref : (9, S3, S2p)         bf16  0/1 spatial gather, layer 3
    # w3_ref : (9*BT*32, BT*64)     bf16
    # w4_ref : (S3, BT*64)          f32   final 4x4 valid conv, tiled over batch
    # b4_ref : (1,)                 f32   (SMEM scalar)
    # out_ref: (1, 1, BT)           f32
    f32, bf16 = jnp.float32, jnp.bfloat16
    c3 = DIMS[3]

    # ---- layer 1: Conv2d(1->16, k3, s2, p1, bias=False) + LeakyReLU --------
    a1 = a1_ref[0]                                                 # (S1, BT*9)
    h1 = jnp.dot(a1, w1_ref[...], preferred_element_type=f32)
    h1 = _leaky(h1).astype(bf16)                                   # (S1, BT*16)

    # ---- layer 2: Conv2d(16->32, k3, s2, p1) + LeakyReLU --------------------
    # 9 batched gathers (full 128-lane N), lane-concat along K, ONE weight matmul.
    taps = [jnp.dot(g2_ref[t], h1, preferred_element_type=f32).astype(bf16)
            for t in range(9)]                                     # 9 x (S2p, BT*16)
    x2 = jnp.concatenate(taps, axis=1)                             # (S2p, 9*BT*16)
    h2 = _leaky(jnp.dot(x2, w2_ref[...], preferred_element_type=f32))
    h2 = h2.astype(bf16)                                           # (S2p, BT*32)

    # ---- layer 3: Conv2d(32->64, k3, s2, p1) + LeakyReLU --------------------
    taps = [jnp.dot(g3_ref[t], h2, preferred_element_type=f32).astype(bf16)
            for t in range(9)]                                     # 9 x (S3, BT*32)
    x3 = jnp.concatenate(taps, axis=1)                             # (S3, 9*BT*32)
    h3 = _leaky(jnp.dot(x3, w3_ref[...], preferred_element_type=f32))  # (S3, BT*64) f32

    # ---- layer 4: Conv2d(64->1, k4, valid) + bias == f32 VPU reduction ------
    prod = h3 * w4_ref[...]                                        # (S3, BT*64)
    cs = jnp.sum(prod, axis=0, keepdims=True)                      # (1, BT*64)
    vals = [jnp.sum(cs[:, b * c3:(b + 1) * c3], axis=1, keepdims=True)
            for b in range(bt)]                                    # BT x (1, 1)
    row = jnp.concatenate(vals, axis=1) + b4_ref[0]                # (1, BT)
    out_ref[...] = row[None]                                       # (1, 1, BT)


# ---------------------------------------------------------------------------
# Host-side one-time prep (constants, weight re-layout) and thin glue.
# ---------------------------------------------------------------------------
def _gather_mats(h_in, w_in, n_in_rows):
    """0/1 matrices G[t] (rows padded to a multiple of 8) with
    (G[t] @ act2d)[oy*OW+ox] = padded_act[2*oy+i-1, 2*ox+j-1], t = i*3 + j.
    Rows that hit the zero padding (or the pad rows themselves) are all-zero."""
    oh, ow = _conv_out_size(h_in), _conv_out_size(w_in)
    n_out = oh * ow
    n_out_pad = -(-n_out // 8) * 8
    g = np.zeros((9, n_out_pad, n_in_rows), np.float32)
    for i in range(3):
        for j in range(3):
            t = i * 3 + j
            for oy in range(oh):
                y = 2 * oy + i - 1
                if y < 0 or y >= h_in:
                    continue
                for ox in range(ow):
                    x = 2 * ox + j - 1
                    if x < 0 or x >= w_in:
                        continue
                    g[t, oy * ow + ox, y * w_in + x] = 1.0
    return jnp.asarray(g, jnp.bfloat16), n_out_pad


def _im2col_k3s2p1(x_nhwc):
    """Host-side im2col of the raw input only (tap-major, channel-inner)."""
    n, h, w, c = x_nhwc.shape
    oh, ow = _conv_out_size(h), _conv_out_size(w)
    xp = jnp.pad(x_nhwc, ((0, 0), (1, 1), (1, 1), (0, 0)))
    cols = []
    for i in range(3):
        for j in range(3):
            cols.append(xp[:, i:i + 2 * oh:2, j:j + 2 * ow:2, :])
    a = jnp.stack(cols, axis=3)                 # (N, oh, ow, 9, C)
    return a.reshape(n, oh * ow, 9 * c)


def init_params(key):
    """Parameters in torch (OIHW) layout, mirroring the reference module."""
    params = []
    for i in range(3):
        key, k = jax.random.split(key)
        w = jax.random.normal(k, (DIMS[i + 1], DIMS[i], 3, 3), jnp.float32) * 0.1
        b = jnp.zeros((DIMS[i + 1],), jnp.float32)        # bias=False layers
        params.append((w, b))
    key, k1, k2 = jax.random.split(key, 3)
    w = jax.random.normal(k1, (1, DIMS[3], 4, 4), jnp.float32) * 0.1
    b = jax.random.normal(k2, (1,), jnp.float32) * 0.1    # final conv has bias
    params.append((w, b))
    return params


def prepare_params(params, height, width, batch_tile=8):
    """One-time prep: block-diagonal (over the batch tile) / tap-fused weights
    plus the constant gather matrices for the given input spatial size."""
    (w1, _), (w2, _), (w3, _), (w4, b4) = params
    bt = batch_tile
    h1, w1s = _conv_out_size(height), _conv_out_size(width)
    h2, w2s = _conv_out_size(h1), _conv_out_size(w1s)
    h3, w3s = _conv_out_size(h2), _conv_out_size(w2s)
    assert (h3, w3s) == (4, 4), (
        "final Conv2d(k=4, valid) needs a 4x4 feature map (use a 28x28-ish input)")

    def tap_weights(w):          # (Co, Ci, 3, 3) -> (9, Ci, Co), t = i*3 + j
        co, ci = w.shape[0], w.shape[1]
        return jnp.transpose(w, (2, 3, 1, 0)).reshape(9, ci, co)

    eye = jnp.eye(bt, dtype=jnp.float32)

    # Layer 1: (BT*9*Cin, BT*16), block-diagonal over the batch tile.
    w1m = jnp.transpose(w1, (2, 3, 1, 0)).reshape(9 * w1.shape[1], w1.shape[0])
    w1_big = jnp.kron(eye, w1m).astype(jnp.bfloat16)

    # Layers 2/3: tap-major rows (matches the lane-concat of the gathered taps),
    # block-diagonal over the batch tile within each tap.
    w2t = tap_weights(w2)
    w2_big = jnp.concatenate([jnp.kron(eye, w2t[t]) for t in range(9)],
                             axis=0).astype(jnp.bfloat16)      # (9*BT*16, BT*32)
    w3t = tap_weights(w3)
    w3_big = jnp.concatenate([jnp.kron(eye, w3t[t]) for t in range(9)],
                             axis=0).astype(jnp.bfloat16)      # (9*BT*32, BT*64)

    g2, s2p = _gather_mats(h1, w1s, h1 * w1s)                  # (9, 56, 196)
    g3, s3p = _gather_mats(h2, w2s, s2p)                       # (9, 16, 56)
    assert s3p == h3 * w3s, (s3p, h3, w3s)

    # Layer 4: (S3, 64) flattened conv weight, tiled BT times along lanes (f32).
    w4m = jnp.transpose(w4, (0, 2, 3, 1)).reshape(h3 * w3s, w4.shape[1])
    w4_tiled = jnp.tile(w4m.astype(jnp.float32), (1, bt))      # (16, BT*64)

    return {
        "w1": w1_big,                         # (BT*9,  BT*16)  bf16
        "g2": g2,                             # (9, S2p, S1)    bf16
        "w2": w2_big,                         # (9*BT*16, BT*32) bf16
        "g3": g3,                             # (9, S3, S2p)    bf16
        "w3": w3_big,                         # (9*BT*32, BT*64) bf16
        "w4": w4_tiled,                       # (S3, BT*64)     f32
        "b4": b4.astype(jnp.float32),         # (1,)            f32
    }


def discriminator_forward(prep, x_nchw):
    n = x_nchw.shape[0]
    bt = prep["w1"].shape[1] // DIMS[1]       # batch tile baked into the weights
    n_pad = -(-n // bt) * bt
    g = n_pad // bt

    x = jnp.transpose(x_nchw, (0, 2, 3, 1)).astype(jnp.float32)    # NCHW -> NHWC
    if n_pad != n:
        x = jnp.pad(x, ((0, n_pad - n), (0, 0), (0, 0), (0, 0)))
    a1 = _im2col_k3s2p1(x)                                         # (Npad, S1, 9)
    s1 = a1.shape[1]
    # Lane-dense streamed layout: (G, S1, BT*9), lane index = b*9 + tap.
    a1 = a1.reshape(g, bt, s1, 9 * DIMS[0]).transpose(0, 2, 1, 3)
    a1 = a1.reshape(g, s1, bt * 9 * DIMS[0]).astype(jnp.bfloat16)

    kernel = functools.partial(_disc_kernel, bt=bt)
    out = pl.pallas_call(
        kernel,
        out_shape=jax.ShapeDtypeStruct((g, 1, bt), jnp.float32),
        grid=(g,),
        in_specs=[
            pl.BlockSpec((1, s1, bt * 9 * DIMS[0]), lambda i: (i, 0, 0)),   # patches
            pl.BlockSpec(prep["w1"].shape, lambda i: (0, 0)),               # W1 (resident)
            pl.BlockSpec(prep["g2"].shape, lambda i: (0, 0, 0)),            # G2
            pl.BlockSpec(prep["w2"].shape, lambda i: (0, 0)),               # W2
            pl.BlockSpec(prep["g3"].shape, lambda i: (0, 0, 0)),            # G3
            pl.BlockSpec(prep["w3"].shape, lambda i: (0, 0)),               # W3
            pl.BlockSpec(prep["w4"].shape, lambda i: (0, 0)),               # W4
            pl.BlockSpec(memory_space=pltpu.MemorySpace.SMEM),              # b4 scalar
        ],
        out_specs=pl.BlockSpec((1, 1, bt), lambda i: (i, 0, 0)),
        compiler_params=pltpu.CompilerParams(
            dimension_semantics=("parallel",)),
    )(a1, prep["w1"], prep["g2"], prep["w2"], prep["g3"], prep["w3"],
      prep["w4"], prep["b4"])

    out = out.reshape(n_pad)[:n]
    return out.reshape(n, 1, 1, 1)                                 # NCHW (N,1,1,1)


# Pure-JAX reference (XLA conv, f32) for correctness verification.
def reference_forward(params, x_nchw):
    def conv(x, w, b, stride, pad):
        y = jax.lax.conv_general_dilated(
            x, w, window_strides=(stride, stride),
            padding=[(pad, pad), (pad, pad)],
            dimension_numbers=("NCHW", "OIHW", "NCHW"))
        return y + b.reshape(1, -1, 1, 1)

    x = x_nchw
    for (w, b) in params[:3]:
        x = conv(x, w, b, 2, 1)
        x = jnp.where(x > 0, x, NEG_SLOPE * x)
    w, b = params[3]
    return conv(x, w, b, 1, 0)


if __name__ == "__main__":
    key = jax.random.PRNGKey(0)
    kp, kx = jax.random.split(key)
    params = init_params(kp)

    # MNIST-shaped input: 28 -> 14 -> 7 -> 4 -> (4x4 valid conv) -> 1
    x = jax.random.normal(kx, (16, 1, 28, 28), jnp.float32)

    prep = prepare_params(params, 28, 28, batch_tile=8)   # 2 grid steps of 8 images
    out = jax.jit(discriminator_forward)(prep, x)
    out = jax.block_until_ready(out)

    assert out.shape == (16, 1, 1, 1), out.shape
    ref = reference_forward(params, x)
    err = float(jnp.max(jnp.abs(out - ref)))
    # bf16 MXU operands (f32 accumulation) => loosened tolerance vs the f32 ref.
    assert err < 5e-2, err
    print("KERNEL_OK")
</pallas_src>

<mosaic_0001>
module attributes {stable_mosaic.version = 11 : i64} {
  func.func @_disc_kernel(%arg0: i32, %arg1: memref<1x196x72xbf16, #tpu.memory_space<vmem>>, %arg2: memref<72x128xbf16, #tpu.memory_space<vmem>>, %arg3: memref<9x56x196xbf16, #tpu.memory_space<vmem>>, %arg4: memref<1152x256xbf16, #tpu.memory_space<vmem>>, %arg5: memref<9x16x56xbf16, #tpu.memory_space<vmem>>, %arg6: memref<2304x512xbf16, #tpu.memory_space<vmem>>, %arg7: memref<16x512xf32, #tpu.memory_space<vmem>>, %arg8: memref<1xf32, #tpu.memory_space<smem>>, %arg9: memref<1x1x8xf32, #tpu.memory_space<vmem>>) attributes {dimension_semantics = [#tpu.dimension_semantics<parallel>], iteration_bounds = array<i64: 2>, scalar_prefetch = 0 : i64, scratch_operands = 0 : i64, tpu.core_type = #tpu.core_type<tc>, window_params = [{transform_indices = @transform_0, window_bounds = array<i64: 1, 196, 72>}, {pipeline_mode = #tpu.pipeline_mode<synchronous>, transform_indices = @transform_1, window_bounds = array<i64: 72, 128>}, {pipeline_mode = #tpu.pipeline_mode<synchronous>, transform_indices = @transform_2, window_bounds = array<i64: 9, 56, 196>}, {pipeline_mode = #tpu.pipeline_mode<synchronous>, transform_indices = @transform_3, window_bounds = array<i64: 1152, 256>}, {pipeline_mode = #tpu.pipeline_mode<synchronous>, transform_indices = @transform_4, window_bounds = array<i64: 9, 16, 56>}, {pipeline_mode = #tpu.pipeline_mode<synchronous>, transform_indices = @transform_5, window_bounds = array<i64: 2304, 512>}, {pipeline_mode = #tpu.pipeline_mode<synchronous>, transform_indices = @transform_6, window_bounds = array<i64: 16, 512>}, {transform_indices = @transform_7, window_bounds = array<i64: 1>}, {transform_indices = @transform_8, window_bounds = array<i64: 1, 1, 8>}]} {
    %c0 = arith.constant 0 : index
    %c0_0 = arith.constant 0 : index
    %c0_1 = arith.constant 0 : index
    %0 = vector.load %arg1[%c0, %c0_0, %c0_1] : memref<1x196x72xbf16, #tpu.memory_space<vmem>>, vector<1x196x72xbf16>
    %1 = vector.shape_cast %0 : vector<1x196x72xbf16> to vector<196x72xbf16>
    %c0_2 = arith.constant 0 : index
    %c0_3 = arith.constant 0 : index
    %2 = vector.load %arg2[%c0_2, %c0_3] : memref<72x128xbf16, #tpu.memory_space<vmem>>, vector<72x128xbf16>
    %cst = arith.constant dense<0.000000e+00> : vector<196x128xf32>
    %3 = tpu.matmul %1, %2, %cst {dimension_numbers = #tpu.dot_dimension_numbers<[1], [0], [0], [1], [0, 0, 1, 1], [], []>} : vector<196x72xbf16>, vector<72x128xbf16>, vector<196x128xf32> -> vector<196x128xf32>
    %cst_4 = arith.constant 0.000000e+00 : f32
    %4 = vector.broadcast %cst_4 : f32 to vector<196x128xf32>
    %5 = arith.cmpf ogt, %3, %4 : vector<196x128xf32>
    %cst_5 = arith.constant 0.00999999977 : f32
    %6 = vector.broadcast %cst_5 : f32 to vector<196x128xf32>
    %7 = arith.mulf %6, %3 : vector<196x128xf32>
    %8 = arith.select %5, %3, %7 : vector<196x128xi1>, vector<196x128xf32>
    %9 = arith.truncf %8 : vector<196x128xf32> to vector<196x128xbf16>
    %c0_6 = arith.constant 0 : index
    %c0_7 = arith.constant 0 : index
    %c0_8 = arith.constant 0 : index
    %10 = vector.load %arg3[%c0_6, %c0_7, %c0_8] : memref<9x56x196xbf16, #tpu.memory_space<vmem>>, vector<1x56x196xbf16>
    %11 = vector.shape_cast %10 : vector<1x56x196xbf16> to vector<56x196xbf16>
    %cst_9 = arith.constant dense<0.000000e+00> : vector<56x128xf32>
    %12 = tpu.matmul %11, %9, %cst_9 {dimension_numbers = #tpu.dot_dimension_numbers<[1], [0], [0], [1], [0, 0, 1, 1], [], []>} : vector<56x196xbf16>, vector<196x128xbf16>, vector<56x128xf32> -> vector<56x128xf32>
    %13 = arith.truncf %12 : vector<56x128xf32> to vector<56x128xbf16>
    %c1 = arith.constant 1 : index
    %c0_10 = arith.constant 0 : index
    %c0_11 = arith.constant 0 : index
    %14 = vector.load %arg3[%c1, %c0_10, %c0_11] : memref<9x56x196xbf16, #tpu.memory_space<vmem>>, vector<1x56x196xbf16>
    %15 = vector.shape_cast %14 : vector<1x56x196xbf16> to vector<56x196xbf16>
    %cst_12 = arith.constant dense<0.000000e+00> : vector<56x128xf32>
    %16 = tpu.matmul %15, %9, %cst_12 {dimension_numbers = #tpu.dot_dimension_numbers<[1], [0], [0], [1], [0, 0, 1, 1], [], []>} : vector<56x196xbf16>, vector<196x128xbf16>, vector<56x128xf32> -> vector<56x128xf32>
    %17 = arith.truncf %16 : vector<56x128xf32> to vector<56x128xbf16>
    %c2 = arith.constant 2 : index
    %c0_13 = arith.constant 0 : index
    %c0_14 = arith.constant 0 : index
    %18 = vector.load %arg3[%c2, %c0_13, %c0_14] : memref<9x56x196xbf16, #tpu.memory_space<vmem>>, vector<1x56x196xbf16>
    %19 = vector.shape_cast %18 : vector<1x56x196xbf16> to vector<56x196xbf16>
    %cst_15 = arith.constant dense<0.000000e+00> : vector<56x128xf32>
    %20 = tpu.matmul %19, %9, %cst_15 {dimension_numbers = #tpu.dot_dimension_numbers<[1], [0], [0], [1], [0, 0, 1, 1], [], []>} : vector<56x196xbf16>, vector<196x128xbf16>, vector<56x128xf32> -> vector<56x128xf32>
    %21 = arith.truncf %20 : vector<56x128xf32> to vector<56x128xbf16>
    %c3 = arith.constant 3 : index
    %c0_16 = arith.constant 0 : index
    %c0_17 = arith.constant 0 : index
    %22 = vector.load %arg3[%c3, %c0_16, %c0_17] : memref<9x56x196xbf16, #tpu.memory_space<vmem>>, vector<1x56x196xbf16>
    %23 = vector.shape_cast %22 : vector<1x56x196xbf16> to vector<56x196xbf16>
    %cst_18 = arith.constant dense<0.000000e+00> : vector<56x128xf32>
    %24 = tpu.matmul %23, %9, %cst_18 {dimension_numbers = #tpu.dot_dimension_numbers<[1], [0], [0], [1], [0, 0, 1, 1], [], []>} : vector<56x196xbf16>, vector<196x128xbf16>, vector<56x128xf32> -> vector<56x128xf32>
    %25 = arith.truncf %24 : vector<56x128xf32> to vector<56x128xbf16>
    %c4 = arith.constant 4 : index
    %c0_19 = arith.constant 0 : index
    %c0_20 = arith.constant 0 : index
    %26 = vector.load %arg3[%c4, %c0_19, %c0_20] : memref<9x56x196xbf16, #tpu.memory_space<vmem>>, vector<1x56x196xbf16>
    %27 = vector.shape_cast %26 : vector<1x56x196xbf16> to vector<56x196xbf16>
    %cst_21 = arith.constant dense<0.000000e+00> : vector<56x128xf32>
    %28 = tpu.matmul %27, %9, %cst_21 {dimension_numbers = #tpu.dot_dimension_numbers<[1], [0], [0], [1], [0, 0, 1, 1], [], []>} : vector<56x196xbf16>, vector<196x128xbf16>, vector<56x128xf32> -> vector<56x128xf32>
    %29 = arith.truncf %28 : vector<56x128xf32> to vector<56x128xbf16>
    %c5 = arith.constant 5 : index
    %c0_22 = arith.constant 0 : index
    %c0_23 = arith.constant 0 : index
    %30 = vector.load %arg3[%c5, %c0_22, %c0_23] : memref<9x56x196xbf16, #tpu.memory_space<vmem>>, vector<1x56x196xbf16>
    %31 = vector.shape_cast %30 : vector<1x56x196xbf16> to vector<56x196xbf16>
    %cst_24 = arith.constant dense<0.000000e+00> : vector<56x128xf32>
    %32 = tpu.matmul %31, %9, %cst_24 {dimension_numbers = #tpu.dot_dimension_numbers<[1], [0], [0], [1], [0, 0, 1, 1], [], []>} : vector<56x196xbf16>, vector<196x128xbf16>, vector<56x128xf32> -> vector<56x128xf32>
    %33 = arith.truncf %32 : vector<56x128xf32> to vector<56x128xbf16>
    %c6 = arith.constant 6 : index
    %c0_25 = arith.constant 0 : index
    %c0_26 = arith.constant 0 : index
    %34 = vector.load %arg3[%c6, %c0_25, %c0_26] : memref<9x56x196xbf16, #tpu.memory_space<vmem>>, vector<1x56x196xbf16>
    %35 = vector.shape_cast %34 : vector<1x56x196xbf16> to vector<56x196xbf16>
    %cst_27 = arith.constant dense<0.000000e+00> : vector<56x128xf32>
    %36 = tpu.matmul %35, %9, %cst_27 {dimension_numbers = #tpu.dot_dimension_numbers<[1], [0], [0], [1], [0, 0, 1, 1], [], []>} : vector<56x196xbf16>, vector<196x128xbf16>, vector<56x128xf32> -> vector<56x128xf32>
    %37 = arith.truncf %36 : vector<56x128xf32> to vector<56x128xbf16>
    %c7 = arith.constant 7 : index
    %c0_28 = arith.constant 0 : index
    %c0_29 = arith.constant 0 : index
    %38 = vector.load %arg3[%c7, %c0_28, %c0_29] : memref<9x56x196xbf16, #tpu.memory_space<vmem>>, vector<1x56x196xbf16>
    %39 = vector.shape_cast %38 : vector<1x56x196xbf16> to vector<56x196xbf16>
    %cst_30 = arith.constant dense<0.000000e+00> : vector<56x128xf32>
    %40 = tpu.matmul %39, %9, %cst_30 {dimension_numbers = #tpu.dot_dimension_numbers<[1], [0], [0], [1], [0, 0, 1, 1], [], []>} : vector<56x196xbf16>, vector<196x128xbf16>, vector<56x128xf32> -> vector<56x128xf32>
    %41 = arith.truncf %40 : vector<56x128xf32> to vector<56x128xbf16>
    %c8 = arith.constant 8 : index
    %c0_31 = arith.constant 0 : index
    %c0_32 = arith.constant 0 : index
    %42 = vector.load %arg3[%c8, %c0_31, %c0_32] : memref<9x56x196xbf16, #tpu.memory_space<vmem>>, vector<1x56x196xbf16>
    %43 = vector.shape_cast %42 : vector<1x56x196xbf16> to vector<56x196xbf16>
    %cst_33 = arith.constant dense<0.000000e+00> : vector<56x128xf32>
    %44 = tpu.matmul %43, %9, %cst_33 {dimension_numbers = #tpu.dot_dimension_numbers<[1], [0], [0], [1], [0, 0, 1, 1], [], []>} : vector<56x196xbf16>, vector<196x128xbf16>, vector<56x128xf32> -> vector<56x128xf32>
    %45 = arith.truncf %44 : vector<56x128xf32> to vector<56x128xbf16>
    %46 = tpu.concatenate %13, %17, %21, %25, %29, %33, %37, %41, %45 in 1 : vector<56x128xbf16>, vector<56x128xbf16>, vector<56x128xbf16>, vector<56x128xbf16>, vector<56x128xbf16>, vector<56x128xbf16>, vector<56x128xbf16>, vector<56x128xbf16>, vector<56x128xbf16> -> vector<56x1152xbf16>
    %c0_34 = arith.constant 0 : index
    %c0_35 = arith.constant 0 : index
    %47 = vector.load %arg4[%c0_34, %c0_35] : memref<1152x256xbf16, #tpu.memory_space<vmem>>, vector<1152x256xbf16>
    %cst_36 = arith.constant dense<0.000000e+00> : vector<56x256xf32>
    %48 = tpu.matmul %46, %47, %cst_36 {dimension_numbers = #tpu.dot_dimension_numbers<[1], [0], [0], [1], [0, 0, 1, 1], [], []>} : vector<56x1152xbf16>, vector<1152x256xbf16>, vector<56x256xf32> -> vector<56x256xf32>
    %cst_37 = arith.constant 0.000000e+00 : f32
    %49 = vector.broadcast %cst_37 : f32 to vector<56x256xf32>
    %50 = arith.cmpf ogt, %48, %49 : vector<56x256xf32>
    %cst_38 = arith.constant 0.00999999977 : f32
    %51 = vector.broadcast %cst_38 : f32 to vector<56x256xf32>
    %52 = arith.mulf %51, %48 : vector<56x256xf32>
    %53 = arith.select %50, %48, %52 : vector<56x256xi1>, vector<56x256xf32>
    %54 = arith.truncf %53 : vector<56x256xf32> to vector<56x256xbf16>
    %c0_39 = arith.constant 0 : index
    %c0_40 = arith.constant 0 : index
    %c0_41 = arith.constant 0 : index
    %55 = vector.load %arg5[%c0_39, %c0_40, %c0_41] : memref<9x16x56xbf16, #tpu.memory_space<vmem>>, vector<1x16x56xbf16>
    %56 = vector.shape_cast %55 : vector<1x16x56xbf16> to vector<16x56xbf16>
    %cst_42 = arith.constant dense<0.000000e+00> : vector<16x256xf32>
    %57 = tpu.matmul %56, %54, %cst_42 {dimension_numbers = #tpu.dot_dimension_numbers<[1], [0], [0], [1], [0, 0, 1, 1], [], []>} : vector<16x56xbf16>, vector<56x256xbf16>, vector<16x256xf32> -> vector<16x256xf32>
    %58 = arith.truncf %57 : vector<16x256xf32> to vector<16x256xbf16>
    %c1_43 = arith.constant 1 : index
    %c0_44 = arith.constant 0 : index
    %c0_45 = arith.constant 0 : index
    %59 = vector.load %arg5[%c1_43, %c0_44, %c0_45] : memref<9x16x56xbf16, #tpu.memory_space<vmem>>, vector<1x16x56xbf16>
    %60 = vector.shape_cast %59 : vector<1x16x56xbf16> to vector<16x56xbf16>
    %cst_46 = arith.constant dense<0.000000e+00> : vector<16x256xf32>
    %61 = tpu.matmul %60, %54, %cst_46 {dimension_numbers = #tpu.dot_dimension_numbers<[1], [0], [0], [1], [0, 0, 1, 1], [], []>} : vector<16x56xbf16>, vector<56x256xbf16>, vector<16x256xf32> -> vector<16x256xf32>
    %62 = arith.truncf %61 : vector<16x256xf32> to vector<16x256xbf16>
    %c2_47 = arith.constant 2 : index
    %c0_48 = arith.constant 0 : index
    %c0_49 = arith.constant 0 : index
    %63 = vector.load %arg5[%c2_47, %c0_48, %c0_49] : memref<9x16x56xbf16, #tpu.memory_space<vmem>>, vector<1x16x56xbf16>
    %64 = vector.shape_cast %63 : vector<1x16x56xbf16> to vector<16x56xbf16>
    %cst_50 = arith.constant dense<0.000000e+00> : vector<16x256xf32>
    %65 = tpu.matmul %64, %54, %cst_50 {dimension_numbers = #tpu.dot_dimension_numbers<[1], [0], [0], [1], [0, 0, 1, 1], [], []>} : vector<16x56xbf16>, vector<56x256xbf16>, vector<16x256xf32> -> vector<16x256xf32>
    %66 = arith.truncf %65 : vector<16x256xf32> to vector<16x256xbf16>
    %c3_51 = arith.constant 3 : index
    %c0_52 = arith.constant 0 : index
    %c0_53 = arith.constant 0 : index
    %67 = vector.load %arg5[%c3_51, %c0_52, %c0_53] : memref<9x16x56xbf16, #tpu.memory_space<vmem>>, vector<1x16x56xbf16>
    %68 = vector.shape_cast %67 : vector<1x16x56xbf16> to vector<16x56xbf16>
    %cst_54 = arith.constant dense<0.000000e+00> : vector<16x256xf32>
    %69 = tpu.matmul %68, %54, %cst_54 {dimension_numbers = #tpu.dot_dimension_numbers<[1], [0], [0], [1], [0, 0, 1, 1], [], []>} : vector<16x56xbf16>, vector<56x256xbf16>, vector<16x256xf32> -> vector<16x256xf32>
    %70 = arith.truncf %69 : vector<16x256xf32> to vector<16x256xbf16>
    %c4_55 = arith.constant 4 : index
    %c0_56 = arith.constant 0 : index
    %c0_57 = arith.constant 0 : index
    %71 = vector.load %arg5[%c4_55, %c0_56, %c0_57] : memref<9x16x56xbf16, #tpu.memory_space<vmem>>, vector<1x16x56xbf16>
    %72 = vector.shape_cast %71 : vector<1x16x56xbf16> to vector<16x56xbf16>
    %cst_58 = arith.constant dense<0.000000e+00> : vector<16x256xf32>
    %73 = tpu.matmul %72, %54, %cst_58 {dimension_numbers = #tpu.dot_dimension_numbers<[1], [0], [0], [1], [0, 0, 1, 1], [], []>} : vector<16x56xbf16>, vector<56x256xbf16>, vector<16x256xf32> -> vector<16x256xf32>
    %74 = arith.truncf %73 : vector<16x256xf32> to vector<16x256xbf16>
    %c5_59 = arith.constant 5 : index
    %c0_60 = arith.constant 0 : index
    %c0_61 = arith.constant 0 : index
    %75 = vector.load %arg5[%c5_59, %c0_60, %c0_61] : memref<9x16x56xbf16, #tpu.memory_space<vmem>>, vector<1x16x56xbf16>
    %76 = vector.shape_cast %75 : vector<1x16x56xbf16> to vector<16x56xbf16>
    %cst_62 = arith.constant dense<0.000000e+00> : vector<16x256xf32>
    %77 = tpu.matmul %76, %54, %cst_62 {dimension_numbers = #tpu.dot_dimension_numbers<[1], [0], [0], [1], [0, 0, 1, 1], [], []>} : vector<16x56xbf16>, vector<56x256xbf16>, vector<16x256xf32> -> vector<16x256xf32>
    %78 = arith.truncf %77 : vector<16x256xf32> to vector<16x256xbf16>
    %c6_63 = arith.constant 6 : index
    %c0_64 = arith.constant 0 : index
    %c0_65 = arith.constant 0 : index
    %79 = vector.load %arg5[%c6_63, %c0_64, %c0_65] : memref<9x16x56xbf16, #tpu.memory_space<vmem>>, vector<1x16x56xbf16>
    %80 = vector.shape_cast %79 : vector<1x16x56xbf16> to vector<16x56xbf16>
    %cst_66 = arith.constant dense<0.000000e+00> : vector<16x256xf32>
    %81 = tpu.matmul %80, %54, %cst_66 {dimension_numbers = #tpu.dot_dimension_numbers<[1], [0], [0], [1], [0, 0, 1, 1], [], []>} : vector<16x56xbf16>, vector<56x256xbf16>, vector<16x256xf32> -> vector<16x256xf32>
    %82 = arith.truncf %81 : vector<16x256xf32> to vector<16x256xbf16>
    %c7_67 = arith.constant 7 : index
    %c0_68 = arith.constant 0 : index
    %c0_69 = arith.constant 0 : index
    %83 = vector.load %arg5[%c7_67, %c0_68, %c0_69] : memref<9x16x56xbf16, #tpu.memory_space<vmem>>, vector<1x16x56xbf16>
    %84 = vector.shape_cast %83 : vector<1x16x56xbf16> to vector<16x56xbf16>
    %cst_70 = arith.constant dense<0.000000e+00> : vector<16x256xf32>
    %85 = tpu.matmul %84, %54, %cst_70 {dimension_numbers = #tpu.dot_dimension_numbers<[1], [0], [0], [1], [0, 0, 1, 1], [], []>} : vector<16x56xbf16>, vector<56x256xbf16>, vector<16x256xf32> -> vector<16x256xf32>
    %86 = arith.truncf %85 : vector<16x256xf32> to vector<16x256xbf16>
    %c8_71 = arith.constant 8 : index
    %c0_72 = arith.constant 0 : index
    %c0_73 = arith.constant 0 : index
    %87 = vector.load %arg5[%c8_71, %c0_72, %c0_73] : memref<9x16x56xbf16, #tpu.memory_space<vmem>>, vector<1x16x56xbf16>
    %88 = vector.shape_cast %87 : vector<1x16x56xbf16> to vector<16x56xbf16>
    %cst_74 = arith.constant dense<0.000000e+00> : vector<16x256xf32>
    %89 = tpu.matmul %88, %54, %cst_74 {dimension_numbers = #tpu.dot_dimension_numbers<[1], [0], [0], [1], [0, 0, 1, 1], [], []>} : vector<16x56xbf16>, vector<56x256xbf16>, vector<16x256xf32> -> vector<16x256xf32>
    %90 = arith.truncf %89 : vector<16x256xf32> to vector<16x256xbf16>
    %91 = tpu.concatenate %58, %62, %66, %70, %74, %78, %82, %86, %90 in 1 : vector<16x256xbf16>, vector<16x256xbf16>, vector<16x256xbf16>, vector<16x256xbf16>, vector<16x256xbf16>, vector<16x256xbf16>, vector<16x256xbf16>, vector<16x256xbf16>, vector<16x256xbf16> -> vector<16x2304xbf16>
    %c0_75 = arith.constant 0 : index
    %c0_76 = arith.constant 0 : index
    %92 = vector.load %arg6[%c0_75, %c0_76] : memref<2304x512xbf16, #tpu.memory_space<vmem>>, vector<2304x512xbf16>
    %cst_77 = arith.constant dense<0.000000e+00> : vector<16x512xf32>
    %93 = tpu.matmul %91, %92, %cst_77 {dimension_numbers = #tpu.dot_dimension_numbers<[1], [0], [0], [1], [0, 0, 1, 1], [], []>} : vector<16x2304xbf16>, vector<2304x512xbf16>, vector<16x512xf32> -> vector<16x512xf32>
    %cst_78 = arith.constant 0.000000e+00 : f32
    %94 = vector.broadcast %cst_78 : f32 to vector<16x512xf32>
    %95 = arith.cmpf ogt, %93, %94 : vector<16x512xf32>
    %cst_79 = arith.constant 0.00999999977 : f32
    %96 = vector.broadcast %cst_79 : f32 to vector<16x512xf32>
    %97 = arith.mulf %96, %93 : vector<16x512xf32>
    %98 = arith.select %95, %93, %97 : vector<16x512xi1>, vector<16x512xf32>
    %c0_80 = arith.constant 0 : index
    %c0_81 = arith.constant 0 : index
    %99 = vector.load %arg7[%c0_80, %c0_81] : memref<16x512xf32, #tpu.memory_space<vmem>>, vector<16x512xf32>
    %100 = arith.mulf %98, %99 : vector<16x512xf32>
    %cst_82 = arith.constant dense<0.000000e+00> : vector<512xf32>
    %101 = vector.multi_reduction <add>, %100, %cst_82 [0] : vector<16x512xf32> to vector<512xf32>
    %102 = vector.shape_cast %101 : vector<512xf32> to vector<1x512xf32>
    %103 = vector.extract_strided_slice %102 {offsets = [0, 0], sizes = [1, 64], strides = [1, 1]} : vector<1x512xf32> to vector<1x64xf32>
    %cst_83 = arith.constant dense<0.000000e+00> : vector<1xf32>
    %104 = vector.multi_reduction <add>, %103, %cst_83 [1] : vector<1x64xf32> to vector<1xf32>
    %105 = vector.shape_cast %104 : vector<1xf32> to vector<1x1xf32>
    %106 = vector.extract_strided_slice %102 {offsets = [0, 64], sizes = [1, 64], strides = [1, 1]} : vector<1x512xf32> to vector<1x64xf32>
    %cst_84 = arith.constant dense<0.000000e+00> : vector<1xf32>
    %107 = vector.multi_reduction <add>, %106, %cst_84 [1] : vector<1x64xf32> to vector<1xf32>
    %108 = vector.shape_cast %107 : vector<1xf32> to vector<1x1xf32>
    %109 = vector.extract_strided_slice %102 {offsets = [0, 128], sizes = [1, 64], strides = [1, 1]} : vector<1x512xf32> to vector<1x64xf32>
    %cst_85 = arith.constant dense<0.000000e+00> : vector<1xf32>
    %110 = vector.multi_reduction <add>, %109, %cst_85 [1] : vector<1x64xf32> to vector<1xf32>
    %111 = vector.shape_cast %110 : vector<1xf32> to vector<1x1xf32>
    %112 = vector.extract_strided_slice %102 {offsets = [0, 192], sizes = [1, 64], strides = [1, 1]} : vector<1x512xf32> to vector<1x64xf32>
    %cst_86 = arith.constant dense<0.000000e+00> : vector<1xf32>
    %113 = vector.multi_reduction <add>, %112, %cst_86 [1] : vector<1x64xf32> to vector<1xf32>
    %114 = vector.shape_cast %113 : vector<1xf32> to vector<1x1xf32>
    %115 = vector.extract_strided_slice %102 {offsets = [0, 256], sizes = [1, 64], strides = [1, 1]} : vector<1x512xf32> to vector<1x64xf32>
    %cst_87 = arith.constant dense<0.000000e+00> : vector<1xf32>
    %116 = vector.multi_reduction <add>, %115, %cst_87 [1] : vector<1x64xf32> to vector<1xf32>
    %117 = vector.shape_cast %116 : vector<1xf32> to vector<1x1xf32>
    %118 = vector.extract_strided_slice %102 {offsets = [0, 320], sizes = [1, 64], strides = [1, 1]} : vector<1x512xf32> to vector<1x64xf32>
    %cst_88 = arith.constant dense<0.000000e+00> : vector<1xf32>
    %119 = vector.multi_reduction <add>, %118, %cst_88 [1] : vector<1x64xf32> to vector<1xf32>
    %120 = vector.shape_cast %119 : vector<1xf32> to vector<1x1xf32>
    %121 = vector.extract_strided_slice %102 {offsets = [0, 384], sizes = [1, 64], strides = [1, 1]} : vector<1x512xf32> to vector<1x64xf32>
    %cst_89 = arith.constant dense<0.000000e+00> : vector<1xf32>
    %122 = vector.multi_reduction <add>, %121, %cst_89 [1] : vector<1x64xf32> to vector<1xf32>
    %123 = vector.shape_cast %122 : vector<1xf32> to vector<1x1xf32>
    %124 = vector.extract_strided_slice %102 {offsets = [0, 448], sizes = [1, 64], strides = [1, 1]} : vector<1x512xf32> to vector<1x64xf32>
    %cst_90 = arith.constant dense<0.000000e+00> : vector<1xf32>
    %125 = vector.multi_reduction <add>, %124, %cst_90 [1] : vector<1x64xf32> to vector<1xf32>
    %126 = vector.shape_cast %125 : vector<1xf32> to vector<1x1xf32>
    %127 = tpu.concatenate %105, %108, %111, %114, %117, %120, %123, %126 in 1 : vector<1x1xf32>, vector<1x1xf32>, vector<1x1xf32>, vector<1x1xf32>, vector<1x1xf32>, vector<1x1xf32>, vector<1x1xf32>, vector<1x1xf32> -> vector<1x8xf32>
    %c0_91 = arith.constant 0 : index
    %128 = memref.load %arg8[%c0_91] : memref<1xf32, #tpu.memory_space<smem>>
    %129 = vector.broadcast %128 : f32 to vector<1x8xf32>
    %130 = arith.addf %127, %129 : vector<1x8xf32>
    %131 = vector.shape_cast %130 : vector<1x8xf32> to vector<1x1x8xf32>
    %c0_92 = arith.constant 0 : index
    %c0_93 = arith.constant 0 : index
    %c0_94 = arith.constant 0 : index
    %132 = vector.load %arg9[%c0_92, %c0_93, %c0_94] : memref<1x1x8xf32, #tpu.memory_space<vmem>>, vector<1x1x8xf32>
    tpu.vector_store %arg9[%c0_92, %c0_93, %c0_94], %131 {strides = array<i32>} : memref<1x1x8xf32, #tpu.memory_space<vmem>>, vector<1x1x8xf32>,
    return
  }
  func.func @transform_0(%arg0: i32) -> (i32, i32, i32) {
    %c0_i32 = arith.constant 0 : i32
    %c0_i32_0 = arith.constant 0 : i32
    %c0_i32_1 = arith.constant 0 : i32
    return %arg0, %c0_i32, %c0_i32_0 : i32, i32, i32
  }
  func.func @transform_1(%arg0: i32) -> (i32, i32) {
    %c0_i32 = arith.constant 0 : i32
    %c0_i32_0 = arith.constant 0 : i32
    %c0_i32_1 = arith.constant 0 : i32
    return %c0_i32, %c0_i32_0 : i32, i32
  }
  func.func @transform_2(%arg0: i32) -> (i32, i32, i32) {
    %c0_i32 = arith.constant 0 : i32
    %c0_i32_0 = arith.constant 0 : i32
    %c0_i32_1 = arith.constant 0 : i32
    %c0_i32_2 = arith.constant 0 : i32
    return %c0_i32, %c0_i32_0, %c0_i32_1 : i32, i32, i32
  }
  func.func @transform_3(%arg0: i32) -> (i32, i32) {
    %c0_i32 = arith.constant 0 : i32
    %c0_i32_0 = arith.constant 0 : i32
    %c0_i32_1 = arith.constant 0 : i32
    return %c0_i32, %c0_i32_0 : i32, i32
  }
  func.func @transform_4(%arg0: i32) -> (i32, i32, i32) {
    %c0_i32 = arith.constant 0 : i32
    %c0_i32_0 = arith.constant 0 : i32
    %c0_i32_1 = arith.constant 0 : i32
    %c0_i32_2 = arith.constant 0 : i32
    return %c0_i32, %c0_i32_0, %c0_i32_1 : i32, i32, i32
  }
  func.func @transform_5(%arg0: i32) -> (i32, i32) {
    %c0_i32 = arith.constant 0 : i32
    %c0_i32_0 = arith.constant 0 : i32
    %c0_i32_1 = arith.constant 0 : i32
    return %c0_i32, %c0_i32_0 : i32, i32
  }
  func.func @transform_6(%arg0: i32) -> (i32, i32) {
    %c0_i32 = arith.constant 0 : i32
    %c0_i32_0 = arith.constant 0 : i32
    %c0_i32_1 = arith.constant 0 : i32
    return %c0_i32, %c0_i32_0 : i32, i32
  }
  func.func @transform_7(%arg0: i32) -> i32 {
    %c0_i32 = arith.constant 0 : i32
    %c0_i32_0 = arith.constant 0 : i32
    return %c0_i32 : i32
  }
  func.func @transform_8(%arg0: i32) -> (i32, i32, i32) {
    %c0_i32 = arith.constant 0 : i32
    %c0_i32_0 = arith.constant 0 : i32
    %c0_i32_1 = arith.constant 0 : i32
    return %arg0, %c0_i32, %c0_i32_0 : i32, i32, i32
  }
}

</mosaic_0001>

<bundles_post_ra>
// kernel: discriminator_forward.1
= control target key start
LH: loop header
LB: loop body
LE: loop exit
PB: predicated region body
PF: predicated region fallthrough
CT: control target
= control target key end

     0   :  { %s10298_s29 = smov 0   ;;  %s13598_s0 = inlined_call_operand.vmem [shape: bf16[2,196,72], index: 0, kind: input, shape index: {}]   ;;  %s13599_s1 = inlined_call_operand.vmem [shape: bf16[72,128], index: 1, kind: input, shape index: {}]   ;;  %s13600_s2 = inlined_call_operand.vmem [shape: bf16[9,56,196], index: 2, kind: input, shape index: {}]   ;;  %s13601_s3 = inlined_call_operand.vmem [shape: bf16[1152,256], index: 3, kind: input, shape index: {}]   ;;  %s13602_s4 = inlined_call_operand.vmem [shape: bf16[9,16,56], index: 4, kind: input, shape index: {}]   ;;  %s13603_s5 = inlined_call_operand.vmem [shape: bf16[2304,512], index: 5, kind: input, shape index: {}]   ;;  %s13604_s6 = inlined_call_operand.vmem [shape: f32[16,512], index: 6, kind: input, shape index: {}]   ;;  %s13605_s7 = inlined_call_operand.<no memory space> [shape: f32[1], index: 7, kind: input, shape index: {}]   ;;  %s13606_s8 = inlined_call_operand.vmem [shape: f32[2,1,8], index: 8, kind: output, shape index: {}]  }
   0x1   :  { %13 = sst [smem:[#allocation2]] %s13605_s7 }
   0x2 LB: > { %s7973_s30 = sadd.s32 4294967295, %s10244_s29   ;;  %p7977_p0 = scmp.ge.s32.totalorder %s10244_s29, 1  ;;  %s10244_s29 = sphi %s10298_s29, %s19_s29  }
   0x3   : > { %p263_p1 = scmp.lt.s32.totalorder %s10244_s29, 3 }
   0x5   : > { %p264_p2 = pnand %p7977_p0, %p263_p1 }
   0x6   : > { %p295_p3 = scmp.lt.s32.totalorder (!%p264_p2), %s7973_s30, 1  ;;  %s10249_s15 = smov (!%p264_p2), 64  }
   0x7   : > { %267 = sbr.rel (%p264_p2) target bundleno = 2195 (0x893), region = 52 }
   0xc   : > { %v9032_v0 = vld [vmem:[%s13599_s1 + $0x20] ss:$0 sps:$4 sm:$0xff]   ;;  %vm468_vm0 = vcmask 1043456   ;;  %v10246_v1 = vmov 0.0   ;;  %vm10247_vm1 = vmmov 0   ;;  %v9033_v3 = vld [vmem:[%s13599_s1 + $0x18] sm:$0xff]  }
   0xd   : > { %8957 = vmatprep.subr.bf16.mxu0 %v10246_v1  ;;  %v470_v2 = vsel %vm468_vm0, %v9032_v0, 0  ;;  %8967 = vmatprep.mubr.msk.bf16.mxu0 %vm10247_vm1, %v10246_v1  ;;  %v9034_v4 = vld [vmem:[%s13599_s1 + $0x10] sm:$0xff]   ;;  %s13608_s30 = smov (!%p295_p3, %s7973_s30), 1  ;;  %v9035_v5 = vld [vmem:[%s13599_s1 + $0x8] sm:$0xff]   ;;  %v9036_v6 = vld [vmem:[%s13599_s1] sm:$0xff]   ;;  %vm428_vm2 = vcmask 588800  }
   0xe   : > { %8958 = vmatpush3.bf16.msra.mxu0 %v470_v2  ;;  %s9019_s14 = smul.u32 100, %s13608_s30  ;;  %v10248_v20 = vmov 0   ;;  %v9052_v21 = vld [vmem:[%s13600_s2 + $0x4] ss:$8 sps:$4 sm:$0xff]   ;;  %vm736_vm3 = vcmask 556032   ;;  %s302_s11 = scalar_lea.vmem %s13606_s8, %s13608_s30 }
   0xf   : > { %8959 = vmatprep.subr.bf16.mxu0 %v10246_v1  ;;  %753 = vmatprep.subr.bf16.mxu1 %v10248_v20  ;;  %v9055_v22 = vld [vmem:[%s13600_s2 + $0x74] ss:$8 sps:$4 sm:$0xff]  }
  0x10   : > { %s10323_s17 = scalar_lea.vmem %s13598_s0, %s9019_s14  ;;  %8018 = vmatprep.mubr.msk.bf16.mxu1 %vm736_vm3, %v9052_v21 }
  0x11   : > { %v9037_v7 = vld [vmem:[%s10323_s17] sm:$0xff]   ;;  %v9038_v8 = vld [vmem:[%s10323_s17 + $0x8] sm:$0xff]   ;;  %v9039_v9 = vld [vmem:[%s10323_s17 + $0x10] sm:$0xff]  }
  0x12   : > { %8960 = vmatpush3.bf16.msra.mxu0 %v9033_v3  ;;  %v9040_v10 = vld [vmem:[%s10323_s17 + $0x18] sm:$0xff]   ;;  %v9041_v11 = vld [vmem:[%s10323_s17 + $0x20] sm:$0xff]   ;;  %v9042_v12 = vld [vmem:[%s10323_s17 + $0x28] sm:$0xff]  }
  0x13   : > { %8961 = vmatprep.subr.bf16.mxu0 %v10246_v1  ;;  %v9043_v13 = vld [vmem:[%s10323_s17 + $0x30] sm:$0xff]   ;;  %v9044_v14 = vld [vmem:[%s10323_s17 + $0x38] sm:$0xff]   ;;  %v9045_v15 = vld [vmem:[%s10323_s17 + $0x40] sm:$0xff]  }
  0x14   : > { %v9046_v16 = vld [vmem:[%s10323_s17 + $0x48] sm:$0xff]   ;;  %v9047_v17 = vld [vmem:[%s10323_s17 + $0x50] sm:$0xff]   ;;  %v9048_v18 = vld [vmem:[%s10323_s17 + $0x58] sm:$0xff]  }
  0x15   : > { %v9049_v19 = vld [vmem:[%s10323_s17 + $0x60] ss:$0 sps:$4 sm:$0x33]  }
  0x16   : > { %8962 = vmatpush3.bf16.msra.mxu0 %v9034_v4 }
  0x17   : > { %8963 = vmatprep.subr.bf16.mxu0 %v10246_v1 }
  0x1a   : > { %8964 = vmatpush3.bf16.msra.mxu0 %v9035_v5 }
  0x1b   : > { %8965 = vmatprep.subr.bf16.mxu0 %v10246_v1 }
  0x1e   : > { %8966 = vmatpush3.bf16.msra.mxu0 %v9036_v6 }
  0x1f   : > { %995 = vmatprep.subr.bf16.mxu0 %v10248_v20 }
  0x21   : > { %8968 = vmatmul.mubr.msk.bf16.vlgmr.msra.gmra.mxu0 %vm428_vm2, %v9037_v7 }
  0x22   : > { %8971 = vmatprep.mubr.msk.bf16.mxu0 %vm10247_vm1, %v10246_v1 }
  0x29   : > { %8972 = vmatmul.mubr.msk.bf16.gmra.mxu0 %vm428_vm2, %v9038_v8 }
  0x2a   : > { %8975 = vmatprep.mubr.msk.bf16.mxu0 %vm10247_vm1, %v10246_v1 }
  0x31   : > { %8976 = vmatmul.mubr.msk.bf16.gmra.mxu0 %vm428_vm2, %v9039_v9 }
  0x32   : > { %8979 = vmatprep.mubr.msk.bf16.mxu0 %vm10247_vm1, %v10246_v1 }
  0x39   : > { %8980 = vmatmul.mubr.msk.bf16.gmra.mxu0 %vm428_vm2, %v9040_v10 }
  0x3a   : > { %8983 = vmatprep.mubr.msk.bf16.mxu0 %vm10247_vm1, %v10246_v1 }
  0x41   : > { %8984 = vmatmul.mubr.msk.bf16.gmra.mxu0 %vm428_vm2, %v9041_v11 }
  0x42   : > { %8987 = vmatprep.mubr.msk.bf16.mxu0 %vm10247_vm1, %v10246_v1 }
  0x49   : > { %8988 = vmatmul.mubr.msk.bf16.gmra.mxu0 %vm428_vm2, %v9042_v12 }
  0x4a   : > { %8991 = vmatprep.mubr.msk.bf16.mxu0 %vm10247_vm1, %v10246_v1 }
  0x51   : > { %8992 = vmatmul.mubr.msk.bf16.gmra.mxu0 %vm428_vm2, %v9043_v13 }
  0x52   : > { %8995 = vmatprep.mubr.msk.bf16.mxu0 %vm10247_vm1, %v10246_v1 }
  0x59   : > { %8996 = vmatmul.mubr.msk.bf16.gmra.mxu0 %vm428_vm2, %v9044_v14 }
  0x5a   : > { %8999 = vmatprep.mubr.msk.bf16.mxu0 %vm10247_vm1, %v10246_v1 }
  0x61   : > { %9000 = vmatmul.mubr.msk.bf16.gmra.mxu0 %vm428_vm2, %v9045_v15 }
  0x62   : > { %9003 = vmatprep.mubr.msk.bf16.mxu0 %vm10247_vm1, %v10246_v1 }
  0x69   : > { %9004 = vmatmul.mubr.msk.bf16.gmra.mxu0 %vm428_vm2, %v9046_v16 }
  0x6a   : > { %9007 = vmatprep.mubr.msk.bf16.mxu0 %vm10247_vm1, %v10246_v1 }
  0x71   : > { %9008 = vmatmul.mubr.msk.bf16.gmra.mxu0 %vm428_vm2, %v9047_v17 }
  0x72   : > { %9011 = vmatprep.mubr.msk.bf16.mxu0 %vm10247_vm1, %v10246_v1 }
  0x79   : > { %9012 = vmatmul.mubr.msk.bf16.gmra.mxu0 %vm428_vm2, %v9048_v18 }
  0x7a   : > { %9015 = vmatprep.mubr.msk.bf16.mxu0 %vm10247_vm1, %v10246_v1 }
  0x81   : > { %9016 = vmatmul.mubr.msk.bf16.gmra.mxu0 %vm428_vm2, %v9049_v19 }
  0x82   : > { %8056 = vmatprep.mubr.msk.bf16.mxu0 %vm736_vm3, %v9055_v22 }
  0xe1   : > { %v506_v23 = vpop.f32.mrf.mxu0 }
  0xe2   : > { %v633_v25 = vmul.f32 0.01, %v506_v23  ;;  %vm608_vm4 = vcmp.gt.f32.partialorder %v506_v23, 0.0 }
  0xe3   : > { %v8969_v24 = vpop.f32.mrf.mxu0 }
  0xe4   : > { %v658_v29 = vsel %vm608_vm4, %v506_v23, %v633_v25 }
  0xe5   : > { %v509_v26 = vpop.f32.mrf.mxu0 }
  0xe6   : > { %vm609_vm5 = vcmp.gt.f32.partialorder %v509_v26, 0.0  ;;  %v634_v27 = vmul.f32 0.01, %v509_v26 }
  0xe7   : > { %v8970_v28 = vpop.f32.mrf.mxu0 }
  0xe8   : > { %v659_v30 = vsel %vm609_vm5, %v509_v26, %v634_v27 }
  0xe9   : > { %v10379_v31 = vpack.c.bf16 %v659_v30, %v658_v29  ;;  %v514_v32 = vpop.f32.mrf.mxu0 }
  0xea   : > { %v635_v34 = vmul.f32 0.01, %v514_v32  ;;  %vm610_vm6 = vcmp.gt.f32.partialorder %v514_v32, 0.0 }
  0xeb   : > { %v8973_v33 = vpop.f32.mrf.mxu0 }
  0xec   : > { %v660_v38 = vsel %vm610_vm6, %v514_v32, %v635_v34 }
  0xed   : > { %v517_v35 = vpop.f32.mrf.mxu0 }
  0xee   : > { %vm611_vm7 = vcmp.gt.f32.partialorder %v517_v35, 0.0  ;;  %v636_v36 = vmul.f32 0.01, %v517_v35 }
  0xef   : > { %v8974_v37 = vpop.f32.mrf.mxu0 }
  0xf0   : > { %v661_v39 = vsel %vm611_vm7, %v517_v35, %v636_v36 }
  0xf1   : > { %v10381_v40 = vpack.c.bf16 %v661_v39, %v660_v38  ;;  %v10383_v41 = vpop.f32.mrf.mxu0 }
  0xf2   : > { %v637_v35 = vmul.f32 0.01, %v10383_v41  ;;  %vm612_vm5 = vcmp.gt.f32.partialorder %v10383_v41, 0.0 }
  0xf3   : > { %v8977_v42 = vpop.f32.mrf.mxu0 }
  0xf5   : > { %v10385_v43 = vpop.f32.mrf.mxu0 }
  0xf6   : > { %v638_v32 = vmul.f32 0.01, %v10385_v43  ;;  %vm613_vm4 = vcmp.gt.f32.partialorder %v10385_v43, 0.0 }
  0xf7   : > { %v8978_v44 = vpop.f32.mrf.mxu0 }
  0xf8   : > { %v663_v39 = vsel %vm613_vm4, %v10385_v43, %v638_v32  ;;  %v662_v44 = vsel %vm612_vm5, %v10383_v41, %v637_v35 }
  0xf9   : > { %v10387_v45 = vpop.f32.mrf.mxu0 }
  0xfa   : > { %v639_v27 = vmul.f32 0.01, %v10387_v45  ;;  %vm614_vm2 = vcmp.gt.f32.partialorder %v10387_v45, 0.0 }
  0xfb   : > { %v8981_v46 = vpop.f32.mrf.mxu0 }
  0xfc   : > { %v664_v36 = vsel %vm614_vm2, %v10387_v45, %v639_v27  ;;  %v10441_v45 = vpack.c.bf16 %v663_v39, %v662_v44  ;;  %v9067_v27 = vld [vmem:[%s13600_s2 + $0x90] ss:$8 sps:$4 sm:$0xff]   ;;  %v9078_v44 = vld [vmem:[%s13600_s2 + $0x4c] ss:$8 sps:$4 sm:$0xff]  }
  0xfd   : > { %v10389_v47 = vpop.f32.mrf.mxu0  ;;  %v9072_v39 = vld [vmem:[%s13600_s2 + $0x38] ss:$8 sps:$4 sm:$0xff]  }
  0xfe   : > { %v640_v24 = vmul.f32 0.01, %v10389_v47  ;;  %vm615_vm1 = vcmp.gt.f32.partialorder %v10389_v47, 0.0 }
  0xff   : > { %v8982_v48 = vpop.f32.mrf.mxu0 }
 0x100   : > { %v665_v33 = vsel %vm615_vm1, %v10389_v47, %v640_v24  ;;  %v9062_v24 = vld [vmem:[%s13600_s2 + $0x24] ss:$8 sps:$4 sm:$0xff]  }
 0x101   : > { %v538_v49 = vpop.f32.mrf.mxu0  ;;  %v10433_v37 = vpack.c.bf16 %v665_v33, %v664_v36  ;;  %v9074_v36 = vld [vmem:[%s13600_s2 + $0x3c] ss:$8 sps:$4 sm:$0xff]  }
 0x102   : > { %v641_v19 = vmul.f32 0.01, %v538_v49  ;;  %vm616_vm15 = vcmp.gt.f32.partialorder %v538_v49, 0.0 }
 0x103   : > { %v8985_v50 = vpop.f32.mrf.mxu0 }
 0x104   : > { %v666_v28 = vsel %vm616_vm15, %v538_v49, %v641_v19  ;;  %v9059_v19 = vld [vmem:[%s13600_s2 + $0x84] ss:$8 sps:$4 sm:$0xff]  }
 0x105   : > { %v541_v51 = vpop.f32.mrf.mxu0 }
 0x106   : > { %v642_v16 = vmul.f32 0.01, %v541_v51  ;;  %vm617_vm14 = vcmp.gt.f32.partialorder %v541_v51, 0.0 }
 0x107   : > { %v8986_v52 = vpop.f32.mrf.mxu0 }
 0x108   : > { %v667_v25 = vsel %vm617_vm14, %v541_v51, %v642_v16 }
 0x109   : > { %v546_v53 = vpop.f32.mrf.mxu0  ;;  %v10419_v29 = vpack.c.bf16 %v667_v25, %v666_v28  ;;  %v9065_v25 = vld [vmem:[%s13600_s2 + $0x94] ss:$8 sps:$4 sm:$0xff]  }
 0x10a   : > { %v643_v12 = vmul.f32 0.01, %v546_v53  ;;  %vm618_vm13 = vcmp.gt.f32.partialorder %v546_v53, 0.0  ;;  %v702_v28 = vld [vmem:[%s13600_s2 + $0x30] sm:$0xff] }
 0x10b   : > { %v8989_v54 = vpop.f32.mrf.mxu0  ;;  %v8017_v32 = vcombine.high %v702_v28, %v702_v28 }
 0x10c   : > { %v668_v21 = vsel %vm618_vm13, %v546_v53, %v643_v12 }
 0x10d   : > { %v549_v55 = vpop.f32.mrf.mxu0 }
 0x10e   : > { %v644_v9 = vmul.f32 0.01, %v549_v55  ;;  %vm619_vm12 = vcmp.gt.f32.partialorder %v549_v55, 0.0 }
 0x10f   : > { %v8990_v56 = vpop.f32.mrf.mxu0 }
 0x110   : > { %v669_v17 = vsel %vm619_vm12, %v549_v55, %v644_v9 }
 0x111   : > { %v554_v57 = vpop.f32.mrf.mxu0  ;;  %v10407_v22 = vpack.c.bf16 %v669_v17, %v668_v21  ;;  %v9058_v21 = vld [vmem:[%s13600_s2 + $0x10] ss:$8 sps:$4 sm:$0xff]  }
 0x112   : > { %v645_v4 = vmul.f32 0.01, %v554_v57  ;;  %vm620_vm11 = vcmp.gt.f32.partialorder %v554_v57, 0.0 }
 0x113   : > { %v8993_v58 = vpop.f32.mrf.mxu0 }
 0x114   : > { %v670_v13 = vsel %vm620_vm11, %v554_v57, %v645_v4 }
 0x115   : > { %v557_v59 = vpop.f32.mrf.mxu0 }
 0x116   : > { %v646_v0 = vmul.f32 0.01, %v557_v59  ;;  %vm621_vm10 = vcmp.gt.f32.partialorder %v557_v59, 0.0 }
 0x117   : > { %v8994_v60 = vpop.f32.mrf.mxu0 }
 0x118   : > { %v671_v10 = vsel %vm621_vm10, %v557_v59, %v646_v0 }
 0x119   : > { %v562_v61 = vpop.f32.mrf.mxu0  ;;  %v10399_v14 = vpack.c.bf16 %v671_v10, %v670_v13 }
 0x11a   : > { %v647_v63 = vmul.f32 0.01, %v562_v61  ;;  %vm622_vm8 = vcmp.gt.f32.partialorder %v562_v61, 0.0 }
 0x11b   : > { %v8997_v62 = vpop.f32.mrf.mxu0 }
 0x11c   : > { %v672_v5 = vsel %vm622_vm8, %v562_v61, %v647_v63  ;;  %vm749_vm8 = vcmask 1041408  }
 0x11d   : > { %v565_v1 = vpop.f32.mrf.mxu0 }
 0x11e   : > { %vm623_vm9 = vcmp.gt.f32.partialorder %v565_v1, 0.0  ;;  %v648_v2 = vmul.f32 0.01, %v565_v1 }
 0x11f   : > { %v8998_v3 = vpop.f32.mrf.mxu0 }
 0x120   : > { %v673_v6 = vsel %vm623_vm9, %v565_v1, %v648_v2 }
 0x121   : > { %v10391_v7 = vpack.c.bf16 %v673_v6, %v672_v5  ;;  %v10393_v8 = vpop.f32.mrf.mxu0 }
 0x122   : > { %v649_v10 = vmul.f32 0.01, %v10393_v8  ;;  %vm624_vm15 = vcmp.gt.f32.partialorder %v10393_v8, 0.0 }
 0x123   : > { %v9001_v11 = vpop.f32.mrf.mxu0  ;;  %754 = vmatpush1.bf16.msra.mxu1 %v10391_v7  ;;  %996 = vmatpush1.bf16.msra.mxu0 %v10391_v7 }
 0x124   : > { %755 = vmatprep.subr.bf16.mxu1 %v10248_v20  ;;  %997 = vmatprep.subr.bf16.mxu0 %v10248_v20  ;;  %v674_v16 = vsel %vm624_vm15, %v10393_v8, %v649_v10  ;;  %v9056_v8 = vld [vmem:[%s13600_s2 + $0x14] ss:$8 sps:$4 sm:$0xff]   ;;  %v9124_v10 = vld [vmem:[%s13600_s2 + $0x170] ss:$8 sps:$4 sm:$0xff]   ;;  %vm3065_vm15 = vcmask 457728  }
 0x125   : > { %v10401_v15 = vpop.f32.mrf.mxu0 }
 0x126   : > { %v650_v6 = vmul.f32 0.01, %v10401_v15  ;;  %vm625_vm14 = vcmp.gt.f32.partialorder %v10401_v15, 0.0 }
 0x127   : > { %v9002_v18 = vpop.f32.mrf.mxu0  ;;  %756 = vmatpush1.bf16.msra.mxu1 %v10399_v14  ;;  %998 = vmatpush1.bf16.msra.mxu0 %v10399_v14 }
 0x128   : > { %757 = vmatprep.subr.bf16.mxu1 %v10248_v20  ;;  %999 = vmatprep.subr.bf16.mxu0 %v10248_v20  ;;  %v675_v13 = vsel %vm625_vm14, %v10401_v15, %v650_v6  ;;  %v9050_v18 = vld [vmem:[%s13600_s2] ss:$8 sps:$4 sm:$0xff]   ;;  %v9053_v15 = vld [vmem:[%s13600_s2 + $0x70] ss:$8 sps:$4 sm:$0xff]  }
 0x129   : > { %v10409_v23 = vpop.f32.mrf.mxu0  ;;  %v10491_v17 = vpack.c.bf16 %v675_v13, %v674_v16  ;;  %v9105_v6 = vld [vmem:[%s13600_s2 + $0xc8] ss:$8 sps:$4 sm:$0xff]  }
 0x12a   : > { %v651_v3 = vmul.f32 0.01, %v10409_v23  ;;  %vm626_vm13 = vcmp.gt.f32.partialorder %v10409_v23, 0.0 }
 0x12b   : > { %v9005_v26 = vpop.f32.mrf.mxu0  ;;  %758 = vmatpush1.bf16.msra.mxu1 %v10407_v22  ;;  %1000 = vmatpush1.bf16.msra.mxu0 %v10407_v22 }
 0x12c   : > { %759 = vmatprep.subr.bf16.mxu1 %v10248_v20  ;;  %1001 = vmatprep.subr.bf16.mxu0 %v10248_v20  ;;  %v676_v11 = vsel %vm626_vm13, %v10409_v23, %v651_v3  ;;  %v9061_v23 = vld [vmem:[%s13600_s2 + $0x80] ss:$8 sps:$4 sm:$0xff]   ;;  %v9103_v3 = vld [vmem:[%s13600_s2 + $0xcc] ss:$8 sps:$4 sm:$0xff]  }
 0x12d   : > { %v10421_v30 = vpop.f32.mrf.mxu0  ;;  %v9064_v26 = vld [vmem:[%s13600_s2 + $0x20] ss:$8 sps:$4 sm:$0xff]  }
 0x12e   : > { %v652_v1 = vmul.f32 0.01, %v10421_v30  ;;  %vm627_vm12 = vcmp.gt.f32.partialorder %v10421_v30, 0.0 }
 0x12f   : > { %v9006_v34 = vpop.f32.mrf.mxu0  ;;  %760 = vmatpush1.bf16.msra.mxu1 %v10419_v29  ;;  %1002 = vmatpush1.bf16.msra.mxu0 %v10419_v29 }
 0x130   : > { %761 = vmatprep.subr.bf16.mxu1 %v10248_v20  ;;  %1003 = vmatprep.subr.bf16.mxu0 %v10248_v20  ;;  %v677_v9 = vsel %vm627_vm12, %v10421_v30, %v652_v1  ;;  %v8047_v30 = vld [vmem:[%s13600_s2 + $0xa0] sm:$0xff]  ;;  %v8016_v34 = vcombine.low %v702_v28, %v702_v28 }
 0x131   : > { %v586_v38 = vpop.f32.mrf.mxu0  ;;  %v10483_v12 = vpack.c.bf16 %v677_v9, %v676_v11  ;;  %v8055_v33 = vcombine.high %v8047_v30, %v8047_v30  ;;  %v8054_v35 = vcombine.low %v8047_v30, %v8047_v30  ;;  %v9102_v1 = vld [vmem:[%s13600_s2 + $0xb8] ss:$8 sps:$4 sm:$0xff]   ;;  %v9184_v28 = vld [vmem:[%s13601_s3 + $0x164] ss:$8 sps:$4 sm:$0xff]  }
 0x132   : > { %v653_v62 = vmul.f32 0.01, %v586_v38  ;;  %vm628_vm11 = vcmp.gt.f32.partialorder %v586_v38, 0.0  ;;  %v8066_v9 = vld [vmem:[%s13600_s2 + $0xd8] sm:$0xff]  ;;  %v8123_v11 = vld [vmem:[%s13600_s2 + $0x180] sm:$0xff] }
 0x133   : > { %v9009_v42 = vpop.f32.mrf.mxu0  ;;  %762 = vmatpush1.bf16.msra.mxu1 %v10433_v37  ;;  %1004 = vmatpush1.bf16.msra.mxu0 %v10433_v37  ;;  %v8074_v13 = vcombine.high %v8066_v9, %v8066_v9  ;;  %v8131_v16 = vcombine.high %v8123_v11, %v8123_v11  ;;  %v9182_v30 = vld [vmem:[%s13601_s3 + $0x160] ss:$8 sps:$4 sm:$0xff]  }
 0x134   : > { %763 = vmatprep.subr.bf16.mxu1 %v10248_v20  ;;  %1005 = vmatprep.subr.bf16.mxu0 %v10248_v20  ;;  %v678_v4 = vsel %vm628_vm11, %v586_v38, %v653_v62  ;;  %v9077_v38 = vld [vmem:[%s13600_s2 + $0xe4] ss:$8 sps:$4 sm:$0xff]   ;;  %v9075_v42 = vld [vmem:[%s13600_s2 + $0xe0] ss:$8 sps:$4 sm:$0xff]  }
 0x135   : > { %v589_v46 = vpop.f32.mrf.mxu0  ;;  %v9100_v62 = vld [vmem:[%s13600_s2 + $0xbc] ss:$8 sps:$4 sm:$0xff]  }
 0x136   : > { %v654_v58 = vmul.f32 0.01, %v589_v46  ;;  %vm629_vm10 = vcmp.gt.f32.partialorder %v589_v46, 0.0 }
 0x137   : > { %v9010_v47 = vpop.f32.mrf.mxu0  ;;  %764 = vmatpush1.bf16.msra.mxu1 %v10441_v45  ;;  %1006 = vmatpush1.bf16.msra.mxu0 %v10441_v45 }
 0x138   : > { %765 = vmatprep.subr.bf16.mxu1 %v10248_v20  ;;  %1007 = vmatprep.subr.bf16.mxu0 %v10248_v20  ;;  %v679_v2 = vsel %vm629_vm10, %v589_v46, %v654_v58  ;;  %v9081_v46 = vld [vmem:[%s13600_s2 + $0xf4] ss:$8 sps:$4 sm:$0xff]   ;;  %v9080_v47 = vld [vmem:[%s13600_s2 + $0x48] ss:$8 sps:$4 sm:$0xff]  }
 0x139   : > { %v594_v43 = vpop.f32.mrf.mxu0  ;;  %v10471_v5 = vpack.c.bf16 %v679_v2, %v678_v4  ;;  %v9099_v58 = vld [vmem:[%s13600_s2 + $0x154] ss:$8 sps:$4 sm:$0xff]   ;;  %v9119_v2 = vld [vmem:[%s13600_s2 + $0x160] ss:$8 sps:$4 sm:$0xff]  }
 0x13a   : > { %v655_v55 = vmul.f32 0.01, %v594_v43  ;;  %vm630_vm9 = vcmp.gt.f32.partialorder %v594_v43, 0.0  ;;  %v9122_v4 = vld [vmem:[%s13600_s2 + $0x174] ss:$8 sps:$4 sm:$0xff]  }
 0x13b   : > { %v9013_v48 = vpop.f32.mrf.mxu0  ;;  %766 = vmatpush1.bf16.msra.mxu1 %v10381_v40  ;;  %1008 = vmatpush1.bf16.msra.mxu0 %v10381_v40 }
 0x13c   : > { %767 = vmatprep.subr.bf16.mxu1 %v10248_v20  ;;  %1009 = vmatprep.subr.bf16.mxu0 %v10248_v20  ;;  %v680_v63 = vsel %vm630_vm9, %v594_v43, %v655_v55  ;;  %v9083_v43 = vld [vmem:[%s13600_s2 + $0xf0] ss:$8 sps:$4 sm:$0xff]   ;;  %v9084_v48 = vld [vmem:[%s13600_s2 + $0x5c] ss:$8 sps:$4 sm:$0xff]  }
 0x13d   : > { %v597_v41 = vpop.f32.mrf.mxu0 }
 0x13e   : > { %v656_v52 = vmul.f32 0.01, %v597_v41  ;;  %vm631_vm7 = vcmp.gt.f32.partialorder %v597_v41, 0.0 }
 0x13f   : > { %v9014_v49 = vpop.f32.mrf.mxu0  ;;  %768 = vmatpush1.bf16.msra.mxu1 %v10379_v31  ;;  %1010 = vmatpush1.bf16.msra.mxu0 %v10379_v31 }
 0x140   : > { %775 = vmatprep.subr.bf16.mxu1 %v10248_v20  ;;  %1017 = vmatprep.subr.bf16.mxu0 %v10248_v20  ;;  %v681_v59 = vsel %vm631_vm7, %v597_v41, %v656_v52  ;;  %v9087_v41 = vld [vmem:[%s13600_s2 + $0x104] ss:$8 sps:$4 sm:$0xff]   ;;  %v9086_v49 = vld [vmem:[%s13600_s2 + $0x58] ss:$8 sps:$4 sm:$0xff]   ;;  %v8085_v52 = vld [vmem:[%s13600_s2 + $0x110] sm:$0xff] }
 0x141   : > { %v602_v50 = vpop.f32.mrf.mxu0  ;;  %v10461_v0 = vpack.c.bf16 %v681_v59, %v680_v63  ;;  %v9094_v59 = vld [vmem:[%s13600_s2 + $0xa8] ss:$8 sps:$4 sm:$0xff]   ;;  %v9117_v63 = vld [vmem:[%s13600_s2 + $0x164] ss:$8 sps:$4 sm:$0xff]  }
 0x142   : > { %vm632_vm6 = vcmp.gt.f32.partialorder %v602_v50, 0.0  ;;  %v657_v51 = vmul.f32 0.01, %v602_v50 }
 0x143   : > { %v9017_v53 = vpop.f32.mrf.mxu0 }
 0x144   : > { %v682_v54 = vsel %vm632_vm6, %v602_v50, %v657_v51  ;;  %v9089_v50 = vld [vmem:[%s13600_s2 + $0x100] ss:$8 sps:$4 sm:$0xff]  }
 0x145   : > { %v695_v56 = vpack.c.bf16 %v682_v54, %v682_v54  ;;  %v605_v57 = vpop.f32.mrf.mxu0  ;;  %v8028_v51 = vld [vmem:[%s13600_s2 + $0x68] sm:$0xff]  ;;  %v8093_v54 = vcombine.high %v8085_v52, %v8085_v52 }
 0x146   : > { %v8036_v53 = vcombine.high %v8028_v51, %v8028_v51  ;;  %v8035_v55 = vcombine.low %v8028_v51, %v8028_v51  ;;  %v9096_v57 = vld [vmem:[%s13600_s2 + $0xac] ss:$8 sps:$4 sm:$0xff]   ;;  %v9212_v51 = vld [vmem:[%s13601_s3 + $0x110] ss:$8 sps:$4 sm:$0xff]  }
 0x147   : > { %v10455_v60 = vsel %vm749_vm8, %v695_v56, 0  ;;  %v9018_v61 = vpop.f32.mrf.mxu0  ;;  %v8092_v56 = vcombine.low %v8085_v52, %v8085_v52  ;;  %v9220_v52 = vld [vmem:[%s13601_s3 + $0x104] ss:$8 sps:$4 sm:$0xff]  }
 0x148   : > { %776 = vmatpush2.bf16.msra.mxu1 %v10455_v60  ;;  %1018 = vmatpush2.bf16.msra.mxu0 %v10455_v60  ;;  %v9097_v61 = vld [vmem:[%s13600_s2 + $0x150] ss:$8 sps:$4 sm:$0xff]  }
 0x149   : > { %777 = vmatprep.subr.bf16.mxu1 %v10248_v20  ;;  %1019 = vmatprep.subr.bf16.mxu0 %v10248_v20 }
 0x14c   : > { %778 = vmatpush2.bf16.msra.mxu1 %v10461_v0  ;;  %1020 = vmatpush2.bf16.msra.mxu0 %v10461_v0 }
 0x14d   : > { %779 = vmatprep.subr.bf16.mxu1 %v10248_v20  ;;  %1021 = vmatprep.subr.bf16.mxu0 %v10248_v20 }
 0x150   : > { %780 = vmatpush2.bf16.msra.mxu1 %v10471_v5  ;;  %1022 = vmatpush2.bf16.msra.mxu0 %v10471_v5 }
 0x151   : > { %781 = vmatprep.subr.bf16.mxu1 %v10248_v20  ;;  %1023 = vmatprep.subr.bf16.mxu0 %v10248_v20 }
 0x154   : > { %782 = vmatpush2.bf16.msra.mxu1 %v10483_v12  ;;  %1024 = vmatpush2.bf16.msra.mxu0 %v10483_v12 }
 0x155   : > { %783 = vmatprep.subr.bf16.mxu1 %v10248_v20  ;;  %1025 = vmatprep.subr.bf16.mxu0 %v10248_v20 }
 0x158   : > { %784 = vmatpush2.bf16.msra.mxu1 %v10491_v17  ;;  %1026 = vmatpush2.bf16.msra.mxu0 %v10491_v17 }
 0x159   : > { %874 = vmatprep.subr.bf16.mxu1 %v10248_v20  ;;  %1237 = vmatprep.subr.bf16.mxu0 %v10248_v20 }
 0x15b   : > { %786 = vmatmul.mubr.bf16.vlgmr.msra.gmra.mxu1 %v9050_v18  ;;  %1028 = vmatmul.mubr.bf16.vlgmr.msra.gmra.mxu0 %v9053_v15  ;;  %v8073_v18 = vcombine.low %v8066_v9, %v8066_v9  ;;  %v8130_v15 = vcombine.low %v8123_v11, %v8123_v11  ;;  %v9137_v9 = vld [vmem:[%s13601_s3 + $0x74] ss:$8 sps:$4 sm:$0xff]  }
 0x15c   : > { %875 = vmatpush1.bf16.msra.mxu1 %v10391_v7  ;;  %1238 = vmatpush1.bf16.msra.mxu0 %v10391_v7 }
 0x15d   : > { %876 = vmatprep.subr.bf16.mxu1 %v10248_v20  ;;  %1239 = vmatprep.subr.bf16.mxu0 %v10248_v20 }
 0x15e   : > { %8019 = vmatprep.mubr.msk.bf16.mxu1 %vm736_vm3, %v9056_v8  ;;  %8057 = vmatprep.mubr.msk.bf16.mxu0 %vm736_vm3, %v9059_v19  ;;  %v9110_v8 = vld [vmem:[%s13600_s2 + $0x11c] ss:$8 sps:$4 sm:$0xff]  }
 0x15f   : > { %v9129_v19 = vld [vmem:[%s13600_s2 + $0x1c4] ss:$8 sps:$4 sm:$0xff]  }
 0x160   : > { %877 = vmatpush1.bf16.msra.mxu1 %v10399_v14  ;;  %1240 = vmatpush1.bf16.msra.mxu0 %v10399_v14 }
 0x161   : > { %878 = vmatprep.subr.bf16.mxu1 %v10248_v20  ;;  %1241 = vmatprep.subr.bf16.mxu0 %v10248_v20 }
 0x163   : > { %794 = vmatmul.mubr.bf16.gmra.mxu1 %v9058_v21  ;;  %1036 = vmatmul.mubr.bf16.gmra.mxu0 %v9061_v23  ;;  %v9178_v21 = vld [vmem:[%s13601_s3 + $0x174] ss:$8 sps:$4 sm:$0xff]   ;;  %v9108_v23 = vld [vmem:[%s13600_s2 + $0x118] ss:$8 sps:$4 sm:$0xff]  }
 0x164   : > { %879 = vmatpush1.bf16.msra.mxu1 %v10407_v22  ;;  %1242 = vmatpush1.bf16.msra.mxu0 %v10407_v22 }
 0x165   : > { %880 = vmatprep.subr.bf16.mxu1 %v10248_v20  ;;  %1243 = vmatprep.subr.bf16.mxu0 %v10248_v20 }
 0x166   : > { %8020 = vmatprep.mubr.msk.bf16.mxu1 %vm736_vm3, %v9062_v24  ;;  %8058 = vmatprep.mubr.msk.bf16.mxu0 %vm736_vm3, %v9065_v25  ;;  %v9127_v24 = vld [vmem:[%s13600_s2 + $0x1c0] ss:$8 sps:$4 sm:$0xff]   ;;  %v9111_v25 = vld [vmem:[%s13600_s2 + $0x12c] ss:$8 sps:$4 sm:$0xff]  }
 0x168   : > { %881 = vmatpush1.bf16.msra.mxu1 %v10419_v29  ;;  %1244 = vmatpush1.bf16.msra.mxu0 %v10419_v29 }
 0x169   : > { %882 = vmatprep.subr.bf16.mxu1 %v10248_v20  ;;  %1245 = vmatprep.subr.bf16.mxu0 %v10248_v20 }
 0x16b   : > { %802 = vmatmul.mubr.bf16.gmra.mxu1 %v9064_v26  ;;  %1044 = vmatmul.mubr.bf16.gmra.mxu0 %v9067_v27  ;;  %v9133_v26 = vld [vmem:[%s13600_s2 + $0x1d4] ss:$8 sps:$4 sm:$0xff]   ;;  %v9176_v27 = vld [vmem:[%s13601_s3 + $0x170] ss:$8 sps:$4 sm:$0xff]  }
 0x16c   : > { %883 = vmatpush1.bf16.msra.mxu1 %v10433_v37  ;;  %1246 = vmatpush1.bf16.msra.mxu0 %v10433_v37 }
 0x16d   : > { %884 = vmatprep.subr.bf16.mxu1 %v10248_v20  ;;  %1247 = vmatprep.subr.bf16.mxu0 %v10248_v20 }
 0x16e   : > { %8021 = vmatprep.mubr.msk.bf16.mxu1 %vm736_vm3, %v8017_v32  ;;  %8059 = vmatprep.mubr.msk.bf16.mxu0 %vm736_vm3, %v8055_v33  ;;  %v9113_v32 = vld [vmem:[%s13600_s2 + $0x128] ss:$8 sps:$4 sm:$0xff]  }
 0x16f   : > { %v9138_v33 = vld [vmem:[%s13600_s2 + $0x1d0] ss:$8 sps:$4 sm:$0xff]  }
 0x170   : > { %885 = vmatpush1.bf16.msra.mxu1 %v10441_v45  ;;  %1248 = vmatpush1.bf16.msra.mxu0 %v10441_v45 }
 0x171   : > { %886 = vmatprep.subr.bf16.mxu1 %v10248_v20  ;;  %1249 = vmatprep.subr.bf16.mxu0 %v10248_v20 }
 0x173   : > { %810 = vmatmul.mubr.bf16.gmra.mxu1 %v8016_v34  ;;  %1052 = vmatmul.mubr.bf16.gmra.mxu0 %v8054_v35  ;;  %v9145_v34 = vld [vmem:[%s13600_s2 + $0x1e4] ss:$8 sps:$4 sm:$0xff]   ;;  %v9190_v35 = vld [vmem:[%s13601_s3 + $0x154] ss:$8 sps:$4 sm:$0xff]  }
 0x174   : > { %887 = vmatpush1.bf16.msra.mxu1 %v10381_v40  ;;  %1250 = vmatpush1.bf16.msra.mxu0 %v10381_v40 }
 0x175   : > { %888 = vmatprep.subr.bf16.mxu1 %v10248_v20  ;;  %1251 = vmatprep.subr.bf16.mxu0 %v10248_v20 }
 0x176   : > { %8037 = vmatprep.mubr.msk.bf16.mxu1 %vm736_vm3, %v9074_v36  ;;  %8094 = vmatprep.mubr.msk.bf16.mxu0 %vm736_vm3, %v9077_v38  ;;  %v9196_v36 = vld [vmem:[%s13601_s3 + $0x144] ss:$8 sps:$4 sm:$0xff]  }
 0x177   : > { %v8104_v38 = vld [vmem:[%s13600_s2 + $0x148] sm:$0xff] }
 0x178   : > { %889 = vmatpush1.bf16.msra.mxu1 %v10379_v31  ;;  %1252 = vmatpush1.bf16.msra.mxu0 %v10379_v31 }
 0x179   : > { %896 = vmatprep.subr.bf16.mxu1 %v10248_v20  ;;  %1259 = vmatprep.subr.bf16.mxu0 %v10248_v20 }
 0x17c   : > { %897 = vmatpush2.bf16.msra.mxu1 %v10455_v60  ;;  %1260 = vmatpush2.bf16.msra.mxu0 %v10455_v60 }
 0x17d   : > { %898 = vmatprep.subr.bf16.mxu1 %v10248_v20  ;;  %1261 = vmatprep.subr.bf16.mxu0 %v10248_v20 }
 0x180   : > { %899 = vmatpush2.bf16.msra.mxu1 %v10461_v0  ;;  %1262 = vmatpush2.bf16.msra.mxu0 %v10461_v0 }
 0x181   : > { %900 = vmatprep.subr.bf16.mxu1 %v10248_v20  ;;  %1263 = vmatprep.subr.bf16.mxu0 %v10248_v20 }
 0x184   : > { %901 = vmatpush2.bf16.msra.mxu1 %v10471_v5  ;;  %1264 = vmatpush2.bf16.msra.mxu0 %v10471_v5 }
 0x185   : > { %902 = vmatprep.subr.bf16.mxu1 %v10248_v20  ;;  %1265 = vmatprep.subr.bf16.mxu0 %v10248_v20 }
 0x188   : > { %903 = vmatpush2.bf16.msra.mxu1 %v10483_v12  ;;  %1266 = vmatpush2.bf16.msra.mxu0 %v10483_v12 }
 0x189   : > { %904 = vmatprep.subr.bf16.mxu1 %v10248_v20  ;;  %1267 = vmatprep.subr.bf16.mxu0 %v10248_v20 }
 0x18c   : > { %905 = vmatpush2.bf16.msra.mxu1 %v10491_v17  ;;  %1268 = vmatpush2.bf16.msra.mxu0 %v10491_v17 }
 0x18d   : > { %1116 = vmatprep.subr.bf16.mxu1 %v10248_v20  ;;  %1479 = vmatprep.subr.bf16.mxu0 %v10248_v20 }
 0x18f   : > { %907 = vmatmul.mubr.bf16.vlgmr.msra.gmra.mxu1 %v9072_v39  ;;  %1270 = vmatmul.mubr.bf16.vlgmr.msra.gmra.mxu0 %v9075_v42  ;;  %v8161_v39 = vld [vmem:[%s13600_s2 + $0x1f0] sm:$0xff]  ;;  %v9150_v42 = vld [vmem:[%s13600_s2 + $0x1e0] ss:$8 sps:$4 sm:$0xff]  }
 0x190   : > { %1117 = vmatpush1.bf16.msra.mxu1 %v10391_v7  ;;  %1480 = vmatpush1.bf16.msra.mxu0 %v10391_v7 }
 0x191   : > { %1118 = vmatprep.subr.bf16.mxu1 %v10248_v20  ;;  %1481 = vmatprep.subr.bf16.mxu0 %v10248_v20 }
 0x192   : > { %8038 = vmatprep.mubr.msk.bf16.mxu1 %vm736_vm3, %v9078_v44  ;;  %8095 = vmatprep.mubr.msk.bf16.mxu0 %vm736_vm3, %v9081_v46  ;;  %v8112_v44 = vcombine.high %v8104_v38, %v8104_v38  ;;  %v8169_v46 = vcombine.high %v8161_v39, %v8161_v39 }
 0x194   : > { %1119 = vmatpush1.bf16.msra.mxu1 %v10399_v14  ;;  %1482 = vmatpush1.bf16.msra.mxu0 %v10399_v14 }
 0x195   : > { %1120 = vmatprep.subr.bf16.mxu1 %v10248_v20  ;;  %1483 = vmatprep.subr.bf16.mxu0 %v10248_v20 }
 0x197   : > { %915 = vmatmul.mubr.bf16.gmra.mxu1 %v9080_v47  ;;  %1278 = vmatmul.mubr.bf16.gmra.mxu0 %v9083_v43  ;;  %v9194_v47 = vld [vmem:[%s13601_s3 + $0x140] ss:$8 sps:$4 sm:$0xff]   ;;  %v9202_v43 = vld [vmem:[%s13601_s3 + $0x134] ss:$8 sps:$4 sm:$0xff]  }
 0x198   : > { %1121 = vmatpush1.bf16.msra.mxu1 %v10407_v22  ;;  %1484 = vmatpush1.bf16.msra.mxu0 %v10407_v22 }
 0x199   : > { %1122 = vmatprep.subr.bf16.mxu1 %v10248_v20  ;;  %1485 = vmatprep.subr.bf16.mxu0 %v10248_v20 }
 0x19a   : > { %8039 = vmatprep.mubr.msk.bf16.mxu1 %vm736_vm3, %v9084_v48  ;;  %8096 = vmatprep.mubr.msk.bf16.mxu0 %vm736_vm3, %v9087_v41  ;;  %v8111_v48 = vcombine.low %v8104_v38, %v8104_v38  ;;  %v8168_v41 = vcombine.low %v8161_v39, %v8161_v39  ;;  %v9244_v39 = vld [vmem:[%s13601_s3 + $0x194] ss:$8 sps:$4 sm:$0xff]  }
 0x19c   : > { %1123 = vmatpush1.bf16.msra.mxu1 %v10419_v29  ;;  %1486 = vmatpush1.bf16.msra.mxu0 %v10419_v29 }
 0x19d   : > { %1124 = vmatprep.subr.bf16.mxu1 %v10248_v20  ;;  %1487 = vmatprep.subr.bf16.mxu0 %v10248_v20 }
 0x19f   : > { %923 = vmatmul.mubr.bf16.gmra.mxu1 %v9086_v49  ;;  %1286 = vmatmul.mubr.bf16.gmra.mxu0 %v9089_v50  ;;  %v9208_v49 = vld [vmem:[%s13601_s3 + $0x124] ss:$8 sps:$4 sm:$0xff]   ;;  %v9206_v50 = vld [vmem:[%s13601_s3 + $0x120] ss:$8 sps:$4 sm:$0xff]  }
 0x1a0   : > { %1125 = vmatpush1.bf16.msra.mxu1 %v10433_v37  ;;  %1488 = vmatpush1.bf16.msra.mxu0 %v10433_v37 }
 0x1a1   : > { %1126 = vmatprep.subr.bf16.mxu1 %v10248_v20  ;;  %1489 = vmatprep.subr.bf16.mxu0 %v10248_v20 }
 0x1a2   : > { %8040 = vmatprep.mubr.msk.bf16.mxu1 %vm736_vm3, %v8036_v53  ;;  %8097 = vmatprep.mubr.msk.bf16.mxu0 %vm736_vm3, %v8093_v54  ;;  %v9223_v53 = vld [vmem:[%s13601_s3 + $0x1f4] ss:$8 sps:$4 sm:$0xff]  }
 0x1a4   : > { %1127 = vmatpush1.bf16.msra.mxu1 %v10441_v45  ;;  %1490 = vmatpush1.bf16.msra.mxu0 %v10441_v45 }
 0x1a5   : > { %1128 = vmatprep.subr.bf16.mxu1 %v10248_v20  ;;  %1491 = vmatprep.subr.bf16.mxu0 %v10248_v20 }
 0x1a7   : > { %931 = vmatmul.mubr.bf16.gmra.mxu1 %v8035_v55  ;;  %1294 = vmatmul.mubr.bf16.gmra.mxu0 %v8092_v56  ;;  %v9226_v56 = vld [vmem:[%s13601_s3 + $0x1e4] ss:$8 sps:$4 sm:$0xff]  }
 0x1a8   : > { %1129 = vmatpush1.bf16.msra.mxu1 %v10381_v40  ;;  %1492 = vmatpush1.bf16.msra.mxu0 %v10381_v40 }
 0x1a9   : > { %1130 = vmatprep.subr.bf16.mxu1 %v10248_v20  ;;  %1493 = vmatprep.subr.bf16.mxu0 %v10248_v20 }
 0x1aa   : > { %8075 = vmatprep.mubr.msk.bf16.mxu1 %vm736_vm3, %v9096_v57  ;;  %8132 = vmatprep.mubr.msk.bf16.mxu0 %vm736_vm3, %v9099_v58  ;;  %v9224_v58 = vld [vmem:[%s13601_s3 + $0x1e0] ss:$8 sps:$4 sm:$0xff]  }
 0x1ac   : > { %1131 = vmatpush1.bf16.msra.mxu1 %v10379_v31  ;;  %1494 = vmatpush1.bf16.msra.mxu0 %v10379_v31 }
 0x1ad   : > { %1138 = vmatprep.subr.bf16.mxu1 %v10248_v20  ;;  %1501 = vmatprep.subr.bf16.mxu0 %v10248_v20 }
 0x1b0   : > { %1139 = vmatpush2.bf16.msra.mxu1 %v10455_v60  ;;  %1502 = vmatpush2.bf16.msra.mxu0 %v10455_v60 }
 0x1b1   : > { %1140 = vmatprep.subr.bf16.mxu1 %v10248_v20  ;;  %1503 = vmatprep.subr.bf16.mxu0 %v10248_v20 }
 0x1b4   : > { %1141 = vmatpush2.bf16.msra.mxu1 %v10461_v0  ;;  %1504 = vmatpush2.bf16.msra.mxu0 %v10461_v0 }
 0x1b5   : > { %1142 = vmatprep.subr.bf16.mxu1 %v10248_v20  ;;  %1505 = vmatprep.subr.bf16.mxu0 %v10248_v20 }
 0x1b8   : > { %1143 = vmatpush2.bf16.msra.mxu1 %v10471_v5  ;;  %1506 = vmatpush2.bf16.msra.mxu0 %v10471_v5 }
 0x1b9   : > { %1144 = vmatprep.subr.bf16.mxu1 %v10248_v20  ;;  %1507 = vmatprep.subr.bf16.mxu0 %v10248_v20 }
 0x1bc   : > { %1145 = vmatpush2.bf16.msra.mxu1 %v10483_v12  ;;  %1508 = vmatpush2.bf16.msra.mxu0 %v10483_v12 }
 0x1bd   : > { %1146 = vmatprep.subr.bf16.mxu1 %v10248_v20  ;;  %1509 = vmatprep.subr.bf16.mxu0 %v10248_v20 }
 0x1c0   : > { %1147 = vmatpush2.bf16.msra.mxu1 %v10491_v17  ;;  %1510 = vmatpush2.bf16.msra.mxu0 %v10491_v17 }
 0x1c1   : > { %1358 = vmatprep.subr.bf16.mxu1 %v10248_v20  ;;  %1721 = vmatprep.subr.bf16.mxu0 %v10248_v20 }
 0x1c3   : > { %1149 = vmatmul.mubr.bf16.vlgmr.msra.gmra.mxu1 %v9094_v59  ;;  %1512 = vmatmul.mubr.bf16.vlgmr.msra.gmra.mxu0 %v9097_v61 }
 0x1c4   : > { %1359 = vmatpush1.bf16.msra.mxu1 %v10391_v7  ;;  %1722 = vmatpush1.bf16.msra.mxu0 %v10391_v7 }
 0x1c5   : > { %1360 = vmatprep.subr.bf16.mxu1 %v10248_v20  ;;  %1723 = vmatprep.subr.bf16.mxu0 %v10248_v20 }
 0x1c6   : > { %8076 = vmatprep.mubr.msk.bf16.mxu1 %vm736_vm3, %v9100_v62  ;;  %8133 = vmatprep.mubr.msk.bf16.mxu0 %vm736_vm3, %v9117_v63  ;;  %v9229_v62 = vld [vmem:[%s13601_s3 + $0x1d4] ss:$8 sps:$4 sm:$0xff]  }
 0x1c8   : > { %1361 = vmatpush1.bf16.msra.mxu1 %v10399_v14  ;;  %1724 = vmatpush1.bf16.msra.mxu0 %v10399_v14 }
 0x1c9   : > { %1362 = vmatprep.subr.bf16.mxu1 %v10248_v20  ;;  %1725 = vmatprep.subr.bf16.mxu0 %v10248_v20 }
 0x1cb   : > { %1157 = vmatmul.mubr.bf16.gmra.mxu1 %v9102_v1  ;;  %1520 = vmatmul.mubr.bf16.gmra.mxu0 %v9119_v2 }
 0x1cc   : > { %1363 = vmatpush1.bf16.msra.mxu1 %v10407_v22  ;;  %1726 = vmatpush1.bf16.msra.mxu0 %v10407_v22 }
 0x1cd   : > { %1364 = vmatprep.subr.bf16.mxu1 %v10248_v20  ;;  %1727 = vmatprep.subr.bf16.mxu0 %v10248_v20 }
 0x1ce   : > { %8077 = vmatprep.mubr.msk.bf16.mxu1 %vm736_vm3, %v9103_v3  ;;  %8134 = vmatprep.mubr.msk.bf16.mxu0 %vm736_vm3, %v9122_v4  ;;  %v9227_v3 = vld [vmem:[%s13601_s3 + $0x1d0] ss:$8 sps:$4 sm:$0xff]  }
 0x1d0   : > { %1365 = vmatpush1.bf16.msra.mxu1 %v10419_v29  ;;  %1728 = vmatpush1.bf16.msra.mxu0 %v10419_v29 }
 0x1d1   : > { %1366 = vmatprep.subr.bf16.mxu1 %v10248_v20  ;;  %1729 = vmatprep.subr.bf16.mxu0 %v10248_v20 }
 0x1d3   : > { %1165 = vmatmul.mubr.bf16.gmra.mxu1 %v9105_v6  ;;  %1528 = vmatmul.mubr.bf16.gmra.mxu0 %v9124_v10 }
 0x1d4   : > { %1367 = vmatpush1.bf16.msra.mxu1 %v10433_v37  ;;  %1730 = vmatpush1.bf16.msra.mxu0 %v10433_v37 }
 0x1d5   : > { %1368 = vmatprep.subr.bf16.mxu1 %v10248_v20  ;;  %1731 = vmatprep.subr.bf16.mxu0 %v10248_v20 }
 0x1d6   : > { %8078 = vmatprep.mubr.msk.bf16.mxu1 %vm736_vm3, %v8074_v13  ;;  %8135 = vmatprep.mubr.msk.bf16.mxu0 %vm736_vm3, %v8131_v16  ;;  %v9230_v13 = vld [vmem:[%s13601_s3 + $0x1c0] ss:$8 sps:$4 sm:$0xff]  }
 0x1d7   : > { %v9130_v16 = vld [vmem:[%s13600_s2 + $0x188] ss:$8 sps:$4 sm:$0xff]  }
 0x1d8   : > { %1369 = vmatpush1.bf16.msra.mxu1 %v10441_v45  ;;  %1732 = vmatpush1.bf16.msra.mxu0 %v10441_v45 }
 0x1d9   : > { %1370 = vmatprep.subr.bf16.mxu1 %v10248_v20  ;;  %1733 = vmatprep.subr.bf16.mxu0 %v10248_v20 }
 0x1db   : > { %1173 = vmatmul.mubr.bf16.gmra.mxu1 %v8073_v18  ;;  %1536 = vmatmul.mubr.bf16.gmra.mxu0 %v8130_v15  ;;  %v9235_v15 = vld [vmem:[%s13601_s3 + $0x1b4] ss:$8 sps:$4 sm:$0xff]  }
 0x1dc   : > { %1371 = vmatpush1.bf16.msra.mxu1 %v10381_v40  ;;  %1734 = vmatpush1.bf16.msra.mxu0 %v10381_v40 }
 0x1dd   : > { %1372 = vmatprep.subr.bf16.mxu1 %v10248_v20  ;;  %1735 = vmatprep.subr.bf16.mxu0 %v10248_v20 }
 0x1de   : > { %8113 = vmatprep.mubr.msk.bf16.mxu1 %vm736_vm3, %v9110_v8  ;;  %8170 = vmatprep.mubr.msk.bf16.mxu0 %vm736_vm3, %v9129_v19  ;;  %v9135_v8 = vld [vmem:[%s13601_s3 + $0x70] ss:$8 sps:$4 sm:$0xff]   ;;  %v9142_v19 = vld [vmem:[%s13600_s2 + $0x19c] ss:$8 sps:$4 sm:$0xff]  }
 0x1e0   : > { %1373 = vmatpush1.bf16.msra.mxu1 %v10379_v31  ;;  %1736 = vmatpush1.bf16.msra.mxu0 %v10379_v31 }
 0x1e1   : > { %1380 = vmatprep.subr.bf16.mxu1 %v10248_v20  ;;  %1743 = vmatprep.subr.bf16.mxu0 %v10248_v20 }
 0x1e4   : > { %1381 = vmatpush2.bf16.msra.mxu1 %v10455_v60  ;;  %1744 = vmatpush2.bf16.msra.mxu0 %v10455_v60 }
 0x1e5   : > { %1382 = vmatprep.subr.bf16.mxu1 %v10248_v20  ;;  %1745 = vmatprep.subr.bf16.mxu0 %v10248_v20 }
 0x1e8   : > { %1383 = vmatpush2.bf16.msra.mxu1 %v10461_v0  ;;  %1746 = vmatpush2.bf16.msra.mxu0 %v10461_v0 }
 0x1e9   : > { %1384 = vmatprep.subr.bf16.mxu1 %v10248_v20  ;;  %1747 = vmatprep.subr.bf16.mxu0 %v10248_v20 }
 0x1ec   : > { %1385 = vmatpush2.bf16.msra.mxu1 %v10471_v5  ;;  %1748 = vmatpush2.bf16.msra.mxu0 %v10471_v5 }
 0x1ed   : > { %1386 = vmatprep.subr.bf16.mxu1 %v10248_v20  ;;  %1749 = vmatprep.subr.bf16.mxu0 %v10248_v20 }
 0x1f0   : > { %1387 = vmatpush2.bf16.msra.mxu1 %v10483_v12  ;;  %1750 = vmatpush2.bf16.msra.mxu0 %v10483_v12 }
 0x1f1   : > { %1388 = vmatprep.subr.bf16.mxu1 %v10248_v20  ;;  %1751 = vmatprep.subr.bf16.mxu0 %v10248_v20 }
 0x1f4   : > { %1389 = vmatpush2.bf16.msra.mxu1 %v10491_v17  ;;  %1752 = vmatpush2.bf16.msra.mxu0 %v10491_v17 }
 0x1f5   : > { %1600 = vmatprep.subr.bf16.mxu1 %v10248_v20  ;;  %2724 = vmatprep.subr.bf16.mxu0 %v9178_v21 }
 0x1f7   : > { %1391 = vmatmul.mubr.bf16.vlgmr.msra.gmra.mxu1 %v9108_v23  ;;  %1754 = vmatmul.mubr.bf16.vlgmr.msra.gmra.mxu0 %v9127_v24  ;;  %v9141_v24 = vld [vmem:[%s13601_s3 + $0x64] ss:$8 sps:$4 sm:$0xff]  }
 0x1f8   : > { %1601 = vmatpush1.bf16.msra.mxu1 %v10391_v7  ;;  %8114 = vmatprep.mubr.msk.bf16.mxu1 %vm736_vm3, %v9111_v25  ;;  %v9114_v7 = vld [vmem:[%s13600_s2 + $0x13c] ss:$8 sps:$4 sm:$0xff]  }
 0x1f9   : > { %1602 = vmatprep.subr.bf16.mxu1 %v10248_v20  ;;  %8171 = vmatprep.mubr.msk.bf16.mxu0 %vm736_vm3, %v9133_v26  ;;  %v9233_v26 = vld [vmem:[%s13601_s3 + $0x1b0] ss:$8 sps:$4 sm:$0xff]  }
 0x1fa   : > { %2725 = vmatpush1.bf16.msra.mxu0 %v9176_v27 }
 0x1fb   : > { %2726 = vmatprep.subr.bf16.mxu0 %v9184_v28 }
 0x1fc   : > { %1603 = vmatpush1.bf16.msra.mxu1 %v10399_v14  ;;  %v9188_v14 = vld [vmem:[%s13601_s3 + $0x150] ss:$8 sps:$4 sm:$0xff]  }
 0x1fd   : > { %1604 = vmatprep.subr.bf16.mxu1 %v10248_v20 }
 0x1fe   : > { %2727 = vmatpush1.bf16.msra.mxu0 %v9182_v30  ;;  %v9238_v30 = vld [vmem:[%s13601_s3 + $0x1a4] ss:$8 sps:$4 sm:$0xff]  }
 0x1ff   : > { %1399 = vmatmul.mubr.bf16.gmra.mxu1 %v9113_v32  ;;  %1762 = vmatmul.mubr.bf16.gmra.mxu0 %v9138_v33  ;;  %v9139_v32 = vld [vmem:[%s13601_s3 + $0x60] ss:$8 sps:$4 sm:$0xff]   ;;  %v9149_v33 = vld [vmem:[%s13601_s3 + $0x54] ss:$8 sps:$4 sm:$0xff]  }
 0x200   : > { %1605 = vmatpush1.bf16.msra.mxu1 %v10407_v22  ;;  %8115 = vmatprep.mubr.msk.bf16.mxu1 %vm736_vm3, %v9114_v7  ;;  %v9116_v22 = vld [vmem:[%s13600_s2 + $0x138] ss:$8 sps:$4 sm:$0xff]  }
 0x201   : > { %1606 = vmatprep.subr.bf16.mxu1 %v10248_v20  ;;  %8172 = vmatprep.mubr.msk.bf16.mxu0 %vm736_vm3, %v9145_v34 }
 0x202   : > { %2728 = vmatprep.subr.bf16.mxu0 %v9190_v35  ;;  %v9236_v35 = vld [vmem:[%s13601_s3 + $0x1a0] ss:$8 sps:$4 sm:$0xff]  }
 0x203   : > { %2729 = vmatpush1.bf16.msra.mxu0 %v9188_v14  ;;  %v9144_v14 = vld [vmem:[%s13600_s2 + $0x198] ss:$8 sps:$4 sm:$0xff]  }
 0x204   : > { %1607 = vmatpush1.bf16.msra.mxu1 %v10419_v29  ;;  %2730 = vmatprep.subr.bf16.mxu0 %v9196_v36  ;;  %v9200_v29 = vld [vmem:[%s13601_s3 + $0x130] ss:$8 sps:$4 sm:$0xff]  }
 0x205   : > { %1608 = vmatprep.subr.bf16.mxu1 %v10248_v20 }
 0x207   : > { %1407 = vmatmul.mubr.bf16.gmra.mxu1 %v9116_v22  ;;  %1770 = vmatmul.mubr.bf16.gmra.mxu0 %v9150_v42  ;;  %v9147_v22 = vld [vmem:[%s13601_s3 + $0x50] ss:$8 sps:$4 sm:$0xff]   ;;  %v9154_v42 = vld [vmem:[%s13600_s2 + $0x1ac] ss:$8 sps:$4 sm:$0xff]  }
 0x208   : > { %1609 = vmatpush1.bf16.msra.mxu1 %v10433_v37  ;;  %8116 = vmatprep.mubr.msk.bf16.mxu1 %vm736_vm3, %v8112_v44  ;;  %v9132_v37 = vld [vmem:[%s13600_s2 + $0x18c] ss:$8 sps:$4 sm:$0xff]  }
 0x209   : > { %1610 = vmatprep.subr.bf16.mxu1 %v10248_v20  ;;  %8173 = vmatprep.mubr.msk.bf16.mxu0 %vm736_vm3, %v8169_v46 }
 0x20a   : > { %2731 = vmatpush1.bf16.msra.mxu0 %v9194_v47  ;;  %v9153_v47 = vld [vmem:[%s13601_s3 + $0x44] ss:$8 sps:$4 sm:$0xff]  }
 0x20b   : > { %2732 = vmatprep.subr.bf16.mxu0 %v9202_v43 }
 0x20c   : > { %1611 = vmatpush1.bf16.msra.mxu1 %v10441_v45  ;;  %v9214_v45 = vld [vmem:[%s13601_s3 + $0x114] ss:$8 sps:$4 sm:$0xff]  }
 0x20d   : > { %1612 = vmatprep.subr.bf16.mxu1 %v10248_v20 }
 0x20e   : > { %2733 = vmatpush1.bf16.msra.mxu0 %v9200_v29 }
 0x20f   : > { %1415 = vmatmul.mubr.bf16.gmra.mxu1 %v8111_v48  ;;  %1778 = vmatmul.mubr.bf16.gmra.mxu0 %v8168_v41  ;;  %v9242_v48 = vld [vmem:[%s13601_s3 + $0x190] ss:$8 sps:$4 sm:$0xff]  }
 0x210   : > { %1613 = vmatpush1.bf16.msra.mxu1 %v10381_v40  ;;  %8151 = vmatprep.mubr.msk.bf16.mxu1 %vm736_vm3, %v9132_v37  ;;  %v9218_v40 = vld [vmem:[%s13601_s3 + $0x100] ss:$8 sps:$4 sm:$0xff]  }
 0x211   : > { %1614 = vmatprep.subr.bf16.mxu1 %v10248_v20  ;;  %2734 = vmatprep.subr.bf16.mxu0 %v9208_v49  ;;  %v9250_v49 = vld [vmem:[%s13601_s3 + $0x184] ss:$8 sps:$4 sm:$0xff]  }
 0x212   : > { %2735 = vmatpush1.bf16.msra.mxu0 %v9206_v50  ;;  %v9151_v50 = vld [vmem:[%s13601_s3 + $0x40] ss:$8 sps:$4 sm:$0xff]  }
 0x213   : > { %2736 = vmatprep.subr.bf16.mxu0 %v9214_v45  ;;  %v9159_v45 = vld [vmem:[%s13601_s3 + $0x34] ss:$8 sps:$4 sm:$0xff]  }
 0x214   : > { %1615 = vmatpush1.bf16.msra.mxu1 %v10379_v31  ;;  %v9221_v31 = vld [vmem:[%s13601_s3 + $0x1f0] ss:$8 sps:$4 sm:$0xff]  }
 0x215   : > { %1622 = vmatprep.subr.bf16.mxu1 %v10248_v20 }
 0x216   : > { %2737 = vmatpush1.bf16.msra.mxu0 %v9212_v51  ;;  %v8142_v51 = vld [vmem:[%s13600_s2 + $0x1b8] sm:$0xff] }
 0x217   : > { %2738 = vmatprep.subr.bf16.mxu0 %v9220_v52 }
 0x218   : > { %1623 = vmatpush2.bf16.msra.mxu1 %v10455_v60 }
 0x219   : > { %1624 = vmatprep.subr.bf16.mxu1 %v10248_v20 }
 0x21a   : > { %2739 = vmatpush1.bf16.msra.mxu0 %v9218_v40 }
 0x21b   : > { %v10920_v54 = vpop.f32.mrf.mxu1  ;;  %v10922_v55 = vpop.f32.mrf.mxu0  ;;  %2740 = vmatprep.subr.bf16.mxu0 %v9223_v53  ;;  %v9248_v53 = vld [vmem:[%s13601_s3 + $0x180] ss:$8 sps:$4 sm:$0xff]  }
 0x21c   : > { %1625 = vmatpush2.bf16.msra.mxu1 %v10461_v0 }
 0x21d   : > { %v789_v57 = vpop.f32.mrf.mxu1  ;;  %1626 = vmatprep.subr.bf16.mxu1 %v10248_v20  ;;  %v1031_v60 = vpop.f32.mrf.mxu0 }
 0x21e   : > { %2741 = vmatpush2.bf16.msra.mxu0 %v9221_v31  ;;  %v9156_v31 = vld [vmem:[%s13600_s2 + $0x1a8] ss:$8 sps:$4 sm:$0xff]   ;;  %v9289_v60 = vld [vmem:[%s13601_s3 + $0x374] ss:$8 sps:$4 sm:$0xff]  }
 0x21f   : > { %v10932_v59 = vpop.f32.mrf.mxu1  ;;  %v10934_v61 = vpop.f32.mrf.mxu0  ;;  %2742 = vmatprep.subr.bf16.mxu0 %v9226_v56 }
 0x220   : > { %v817_v0 = vpack.c.bf16 %v10932_v59, %v10920_v54  ;;  %1627 = vmatpush2.bf16.msra.mxu1 %v10471_v5  ;;  %v1059_v63 = vpack.c.bf16 %v10934_v61, %v10922_v55  ;;  %v9232_v5 = vld [vmem:[%s13601_s3 + $0x1c4] ss:$8 sps:$4 sm:$0xff]   ;;  %v9251_v54 = vld [vmem:[%s13601_s3 + $0x250] ss:$8 sps:$4 sm:$0xff]   ;;  %v9301_v55 = vld [vmem:[%s13601_s3 + $0x354] ss:$8 sps:$4 sm:$0xff]  }
 0x221   : > { %v792_v1 = vpop.f32.mrf.mxu1  ;;  %1628 = vmatprep.subr.bf16.mxu1 %v10248_v20  ;;  %v1034_v2 = vpop.f32.mrf.mxu0  ;;  %v9256_v59 = vld [vmem:[%s13601_s3 + $0x244] ss:$8 sps:$4 sm:$0xff]  }
 0x222   : > { %2743 = vmatpush2.bf16.msra.mxu0 %v9224_v58  ;;  %v9157_v58 = vld [vmem:[%s13601_s3 + $0x30] ss:$8 sps:$4 sm:$0xff]   ;;  %v9162_v1 = vld [vmem:[%s13601_s3 + $0x24] ss:$8 sps:$4 sm:$0xff]  }
 0x223   : > { %v10948_v4 = vpop.f32.mrf.mxu1  ;;  %v10950_v6 = vpop.f32.mrf.mxu0  ;;  %2744 = vmatprep.subr.bf16.mxu0 %v9229_v62  ;;  %v8150_v62 = vcombine.high %v8142_v51, %v8142_v51 }
 0x224   : > { %1629 = vmatpush2.bf16.msra.mxu1 %v10483_v12 }
 0x225   : > { %1630 = vmatprep.subr.bf16.mxu1 %v10248_v20  ;;  %v797_v10 = vpop.f32.mrf.mxu1  ;;  %v1039_v11 = vpop.f32.mrf.mxu0 }
 0x226   : > { %2745 = vmatpush2.bf16.msra.mxu0 %v9227_v3  ;;  %v8149_v10 = vcombine.low %v8142_v51, %v8142_v51  ;;  %v9166_v11 = vld [vmem:[%s13601_s3 + $0x10] ss:$8 sps:$4 sm:$0xff]  }
 0x227   : > { %v10966_v18 = vpop.f32.mrf.mxu1  ;;  %v10968_v12 = vpop.f32.mrf.mxu0  ;;  %2746 = vmatprep.subr.bf16.mxu0 %v9232_v5  ;;  %v9160_v5 = vld [vmem:[%s13601_s3 + $0x20] ss:$8 sps:$4 sm:$0xff]  }
 0x228   : > { %1631 = vmatpush2.bf16.msra.mxu1 %v10491_v17  ;;  %v818_v21 = vpack.c.bf16 %v10966_v18, %v10948_v4  ;;  %v1060_v23 = vpack.c.bf16 %v10968_v12, %v10950_v6  ;;  %v9262_v4 = vld [vmem:[%s13601_s3 + $0x224] ss:$8 sps:$4 sm:$0xff]   ;;  %v9260_v18 = vld [vmem:[%s13601_s3 + $0x220] ss:$8 sps:$4 sm:$0xff]   ;;  %v9307_v6 = vld [vmem:[%s13601_s3 + $0x334] ss:$8 sps:$4 sm:$0xff]  }
 0x229   : > { %2653 = vmatprep.subr.bf16.mxu1 %v9137_v9  ;;  %v800_v17 = vpop.f32.mrf.mxu1  ;;  %v1042_v25 = vpop.f32.mrf.mxu0  ;;  %v9168_v9 = vld [vmem:[%s13601_s3 + $0x14] ss:$8 sps:$4 sm:$0xff]  }
 0x22a   : > { %2747 = vmatpush2.bf16.msra.mxu0 %v9230_v13  ;;  %v9172_v13 = vld [vmem:[%s13601_s3 + $0x4] ss:$8 sps:$4 sm:$0xff]   ;;  %v9187_v17 = vld [vmem:[%s13601_s3 + $0xd4] ss:$8 sps:$4 sm:$0xff]  }
 0x22b   : > { %1633 = vmatmul.mubr.bf16.vlgmr.msra.gmra.mxu1 %v9130_v16  ;;  %v10990_v27 = vpop.f32.mrf.mxu1  ;;  %v10992_v28 = vpop.f32.mrf.mxu0  ;;  %2748 = vmatprep.subr.bf16.mxu0 %v9235_v15  ;;  %v9170_v16 = vld [vmem:[%s13601_s3] ss:$8 sps:$4 sm:$0xff]   ;;  %v9175_v15 = vld [vmem:[%s13601_s3 + $0xf4] ss:$8 sps:$4 sm:$0xff]  }
 0x22c   : > { %2654 = vmatpush1.bf16.msra.mxu1 %v9135_v8  ;;  %8152 = vmatprep.mubr.msk.bf16.mxu1 %vm736_vm3, %v9142_v19  ;;  %v9173_v8 = vld [vmem:[%s13601_s3 + $0xf0] ss:$8 sps:$4 sm:$0xff]   ;;  %v9181_v19 = vld [vmem:[%s13601_s3 + $0xe4] ss:$8 sps:$4 sm:$0xff]  }
 0x22d   : > { %2655 = vmatprep.subr.bf16.mxu1 %v9141_v24  ;;  %v805_v7 = vpop.f32.mrf.mxu1  ;;  %v1047_v34 = vpop.f32.mrf.mxu0  ;;  %v9179_v24 = vld [vmem:[%s13601_s3 + $0xe0] ss:$8 sps:$4 sm:$0xff]  }
 0x22e   : > { %2749 = vmatpush2.bf16.msra.mxu0 %v9233_v26 }
 0x22f   : > { %v11010_v36 = vpop.f32.mrf.mxu1  ;;  %v11012_v38 = vpop.f32.mrf.mxu0  ;;  %2750 = vmatprep.subr.bf16.mxu0 %v9238_v30  ;;  %v9185_v30 = vld [vmem:[%s13601_s3 + $0xd0] ss:$8 sps:$4 sm:$0xff]  }
 0x230   : > { %2656 = vmatpush1.bf16.msra.mxu1 %v9139_v32  ;;  %v819_v44 = vpack.c.bf16 %v11010_v36, %v10990_v27  ;;  %v1061_v46 = vpack.c.bf16 %v11012_v38, %v10992_v28  ;;  %v9268_v36 = vld [vmem:[%s13601_s3 + $0x204] ss:$8 sps:$4 sm:$0xff]   ;;  %v9292_v28 = vld [vmem:[%s13601_s3 + $0x294] ss:$8 sps:$4 sm:$0xff]  }
 0x231   : > { %2657 = vmatprep.subr.bf16.mxu1 %v9149_v33  ;;  %v808_v43 = vpop.f32.mrf.mxu1  ;;  %v1050_v29 = vpop.f32.mrf.mxu0  ;;  %v9193_v33 = vld [vmem:[%s13601_s3 + $0xc4] ss:$8 sps:$4 sm:$0xff]   ;;  %v9313_v38 = vld [vmem:[%s13601_s3 + $0x314] ss:$8 sps:$4 sm:$0xff]  }
 0x232   : > { %2751 = vmatpush2.bf16.msra.mxu0 %v9236_v35 }
 0x233   : > { %1641 = vmatmul.mubr.bf16.gmra.mxu1 %v9144_v14  ;;  %v11033_v41 = vpop.f32.mrf.mxu1  ;;  %v11035_v37 = vpop.f32.mrf.mxu0  ;;  %2752 = vmatprep.subr.bf16.mxu0 %v9244_v39  ;;  %v9191_v39 = vld [vmem:[%s13601_s3 + $0xc0] ss:$8 sps:$4 sm:$0xff]  }
 0x234   : > { %2658 = vmatpush1.bf16.msra.mxu1 %v9147_v22  ;;  %8153 = vmatprep.mubr.msk.bf16.mxu1 %vm736_vm3, %v9154_v42  ;;  %v820_v27 = vpack.c.bf16 %v11033_v41, %v11033_v41  ;;  %v9271_v41 = vld [vmem:[%s13601_s3 + $0x2f4] ss:$8 sps:$4 sm:$0xff]  }
 0x235   : > { %2659 = vmatprep.subr.bf16.mxu1 %v9153_v47  ;;  %v813_v52 = vpop.f32.mrf.mxu1  ;;  %v1055_v40 = vpop.f32.mrf.mxu0  ;;  %v9199_v47 = vld [vmem:[%s13601_s3 + $0xb4] ss:$8 sps:$4 sm:$0xff]  }
 0x236   : > { %2753 = vmatpush2.bf16.msra.mxu0 %v9242_v48 }
 0x237   : > { %v814_v56 = vpop.f32.mrf.mxu1  ;;  %v1056_v57 = vpop.f32.mrf.mxu0  ;;  %2754 = vmatprep.subr.bf16.mxu0 %v9250_v49  ;;  %v9197_v49 = vld [vmem:[%s13601_s3 + $0xb0] ss:$8 sps:$4 sm:$0xff]  }
 0x238   : > { %2660 = vmatpush1.bf16.msra.mxu1 %v9151_v50  ;;  %v9205_v50 = vld [vmem:[%s13601_s3 + $0xa4] ss:$8 sps:$4 sm:$0xff]   ;;  %v9211_v56 = vld [vmem:[%s13601_s3 + $0x94] ss:$8 sps:$4 sm:$0xff]  }
 0x239   : > { %2661 = vmatprep.subr.bf16.mxu1 %v9159_v45  ;;  %v815_v2 = vpop.f32.mrf.mxu1  ;;  %v1057_v3 = vpop.f32.mrf.mxu0 }
 0x23a   : > { %2755 = vmatpush2.bf16.msra.mxu0 %v9248_v53  ;;  %v9203_v53 = vld [vmem:[%s13601_s3 + $0xa0] ss:$8 sps:$4 sm:$0xff]   ;;  %v9217_v2 = vld [vmem:[%s13601_s3 + $0x84] ss:$8 sps:$4 sm:$0xff]  }
 0x23b   : > { %1649 = vmatmul.mubr.bf16.gmra.mxu1 %v9156_v31  ;;  %2866 = vmatprep.subr.bf16.mxu0 %v9289_v60 }
 0x23c   : > { %2662 = vmatpush1.bf16.msra.mxu1 %v9157_v58  ;;  %8154 = vmatprep.mubr.msk.bf16.mxu1 %vm736_vm3, %v8150_v62 }
 0x23d   : > { %2663 = vmatprep.subr.bf16.mxu1 %v9162_v1  ;;  %v9209_v1 = vld [vmem:[%s13601_s3 + $0x90] ss:$8 sps:$4 sm:$0xff]  }
 0x240   : > { %2664 = vmatpush1.bf16.msra.mxu1 %v9160_v5 }
 0x241   : > { %2665 = vmatprep.subr.bf16.mxu1 %v9168_v9 }
 0x243   : > { %1657 = vmatmul.mubr.bf16.gmra.mxu1 %v8149_v10 }
 0x244   : > { %2666 = vmatpush1.bf16.msra.mxu1 %v9166_v11  ;;  %v9215_v11 = vld [vmem:[%s13601_s3 + $0x80] ss:$8 sps:$4 sm:$0xff]  }
 0x245   : > { %2667 = vmatprep.subr.bf16.mxu1 %v9172_v13 }
 0x248   : > { %2668 = vmatpush1.bf16.msra.mxu1 %v9170_v16 }
 0x249   : > { %2669 = vmatprep.subr.bf16.mxu1 %v9175_v15  ;;  %v9241_v15 = vld [vmem:[%s13601_s3 + $0x274] ss:$8 sps:$4 sm:$0xff]  }
 0x24c   : > { %2670 = vmatpush2.bf16.msra.mxu1 %v9173_v8 }
 0x24d   : > { %2671 = vmatprep.subr.bf16.mxu1 %v9181_v19 }
 0x24f   : > { %v908_v25 = vpop.f32.mrf.mxu1  ;;  %v11096_v26 = vpop.f32.mrf.mxu0 }
 0x250   : > { %2672 = vmatpush2.bf16.msra.mxu1 %v9179_v24 }
 0x251   : > { %v910_v32 = vpop.f32.mrf.mxu1  ;;  %2673 = vmatprep.subr.bf16.mxu1 %v9187_v17  ;;  %v1273_v7 = vpop.f32.mrf.mxu0 }
 0x252   : > { %v9247_v32 = vld [vmem:[%s13601_s3 + $0x264] ss:$8 sps:$4 sm:$0xff]  }
 0x253   : > { %v911_v34 = vpop.f32.mrf.mxu1  ;;  %v11104_v35 = vpop.f32.mrf.mxu0 }
 0x254   : > { %v938_v14 = vpack.c.bf16 %v911_v34, %v908_v25  ;;  %2674 = vmatpush2.bf16.msra.mxu1 %v9185_v30  ;;  %v1301_v22 = vpack.c.bf16 %v11104_v35, %v11096_v26  ;;  %v9239_v25 = vld [vmem:[%s13601_s3 + $0x270] ss:$8 sps:$4 sm:$0xff]   ;;  %v9364_v35 = vld [vmem:[%s13601_s3 + $0x384] ss:$8 sps:$4 sm:$0xff]  }
 0x255   : > { %v913_v42 = vpop.f32.mrf.mxu1  ;;  %2675 = vmatprep.subr.bf16.mxu1 %v9193_v33  ;;  %v1276_v43 = vpop.f32.mrf.mxu0 }
 0x256   : > { %2685 = vmatprep.mubr.bf16.mxu1 %v938_v14  ;;  %v9245_v14 = vld [vmem:[%s13601_s3 + $0x260] ss:$8 sps:$4 sm:$0xff]   ;;  %v9253_v42 = vld [vmem:[%s13601_s3 + $0x254] ss:$8 sps:$4 sm:$0xff]  }
 0x257   : > { %v916_v29 = vpop.f32.mrf.mxu1  ;;  %v11114_v48 = vpop.f32.mrf.mxu0 }
 0x258   : > { %2676 = vmatpush2.bf16.msra.mxu1 %v9191_v39 }
 0x259   : > { %2677 = vmatprep.subr.bf16.mxu1 %v9199_v47  ;;  %v918_v45 = vpop.f32.mrf.mxu1  ;;  %v1281_v51 = vpop.f32.mrf.mxu0 }
 0x25a   : > { %v9263_v45 = vld [vmem:[%s13601_s3 + $0x210] ss:$8 sps:$4 sm:$0xff]  }
 0x25b   : > { %v919_v52 = vpop.f32.mrf.mxu1  ;;  %v11122_v40 = vpop.f32.mrf.mxu0 }
 0x25c   : > { %2678 = vmatpush2.bf16.msra.mxu1 %v9197_v49  ;;  %v1302_v31 = vpack.c.bf16 %v11122_v40, %v11114_v48  ;;  %v939_v17 = vpack.c.bf16 %v919_v52, %v916_v29  ;;  %v9259_v29 = vld [vmem:[%s13601_s3 + $0x234] ss:$8 sps:$4 sm:$0xff]   ;;  %v9266_v52 = vld [vmem:[%s13601_s3 + $0x200] ss:$8 sps:$4 sm:$0xff]   ;;  %v9338_v48 = vld [vmem:[%s13601_s3 + $0x430] ss:$8 sps:$4 sm:$0xff]  }
 0x25d   : > { %2679 = vmatprep.subr.bf16.mxu1 %v9205_v50  ;;  %v921_v57 = vpop.f32.mrf.mxu1  ;;  %v1284_v60 = vpop.f32.mrf.mxu0  ;;  %v9257_v50 = vld [vmem:[%s13601_s3 + $0x230] ss:$8 sps:$4 sm:$0xff]  }
 0x25f   : > { %v924_v58 = vpop.f32.mrf.mxu1  ;;  %v11132_v62 = vpop.f32.mrf.mxu0 }
 0x260   : > { %2680 = vmatpush2.bf16.msra.mxu1 %v9203_v53 }
 0x261   : > { %2681 = vmatprep.subr.bf16.mxu1 %v9211_v56  ;;  %v926_v3 = vpop.f32.mrf.mxu1  ;;  %v1289_v5 = vpop.f32.mrf.mxu0 }
 0x263   : > { %v927_v9 = vpop.f32.mrf.mxu1  ;;  %v11140_v10 = vpop.f32.mrf.mxu0 }
 0x264   : > { %2682 = vmatpush2.bf16.msra.mxu1 %v9209_v1  ;;  %v1303_v13 = vpack.c.bf16 %v11140_v10, %v11132_v62  ;;  %v940_v43 = vpack.c.bf16 %v927_v9, %v924_v58  ;;  %v9269_v1 = vld [vmem:[%s13601_s3 + $0x2f0] ss:$8 sps:$4 sm:$0xff]   ;;  %v9274_v9 = vld [vmem:[%s13601_s3 + $0x2e4] ss:$8 sps:$4 sm:$0xff]  }
 0x265   : > { %2683 = vmatprep.subr.bf16.mxu1 %v9217_v2  ;;  %v929_v16 = vpop.f32.mrf.mxu1  ;;  %v1292_v8 = vpop.f32.mrf.mxu0  ;;  %v9287_v2 = vld [vmem:[%s13601_s3 + $0x370] ss:$8 sps:$4 sm:$0xff]  }
 0x266   : > { %v9350_v62 = vld [vmem:[%s13601_s3 + $0x410] ss:$8 sps:$4 sm:$0xff]  }
 0x267   : > { %v932_v19 = vpop.f32.mrf.mxu1  ;;  %v11150_v24 = vpop.f32.mrf.mxu0 }
 0x268   : > { %2684 = vmatpush2.bf16.msra.mxu1 %v9215_v11  ;;  %v941_v49 = vpack.c.bf16 %v932_v19, %v932_v19  ;;  %v9295_v11 = vld [vmem:[%s13601_s3 + $0x364] ss:$8 sps:$4 sm:$0xff]   ;;  %v9272_v19 = vld [vmem:[%s13601_s3 + $0x2e0] ss:$8 sps:$4 sm:$0xff]   ;;  %v1304_v10 = vpack.c.bf16 %v11150_v24, %v11150_v24 }
 0x269   : > { %v934_v30 = vpop.f32.mrf.mxu1  ;;  %2795 = vmatprep.subr.bf16.mxu1 %v9241_v15  ;;  %v1297_v33 = vpop.f32.mrf.mxu0 }
 0x26a   : > { %v9277_v30 = vld [vmem:[%s13601_s3 + $0x2d4] ss:$8 sps:$4 sm:$0xff]  }
 0x26b   : > { %2686 = vmatmul.mubr.bf16.vlgmr.msra.gmra.mxu1 %v817_v0  ;;  %v935_v7 = vpop.f32.mrf.mxu1  ;;  %v1298_v34 = vpop.f32.mrf.mxu0  ;;  %v9254_v0 = vld [vmem:[%s13601_s3 + $0x240] ss:$8 sps:$4 sm:$0xff]  }
 0x26c   : > { %2695 = vmatprep.mubr.bf16.mxu1 %v939_v17  ;;  %2796 = vmatpush1.bf16.msra.mxu1 %v9239_v25  ;;  %v9293_v17 = vld [vmem:[%s13601_s3 + $0x360] ss:$8 sps:$4 sm:$0xff]   ;;  %v9275_v7 = vld [vmem:[%s13601_s3 + $0x2d0] ss:$8 sps:$4 sm:$0xff]  }
 0x26d   : > { %v936_v39 = vpop.f32.mrf.mxu1  ;;  %2797 = vmatprep.subr.bf16.mxu1 %v9247_v32  ;;  %v1299_v47 = vpop.f32.mrf.mxu0  ;;  %v9299_v34 = vld [vmem:[%s13601_s3 + $0x350] ss:$8 sps:$4 sm:$0xff]  }
 0x26e   : > { %v9304_v47 = vld [vmem:[%s13601_s3 + $0x344] ss:$8 sps:$4 sm:$0xff]  }
 0x270   : > { %2798 = vmatpush1.bf16.msra.mxu1 %v9245_v14 }
 0x271   : > { %2799 = vmatprep.subr.bf16.mxu1 %v9253_v42  ;;  %v9280_v42 = vld [vmem:[%s13601_s3 + $0x2c4] ss:$8 sps:$4 sm:$0xff]  }
 0x273   : > { %2696 = vmatmul.mubr.bf16.gmra.mxu1 %v818_v21  ;;  %v9265_v21 = vld [vmem:[%s13601_s3 + $0x214] ss:$8 sps:$4 sm:$0xff]  }
 0x274   : > { %2705 = vmatprep.mubr.bf16.mxu1 %v940_v43  ;;  %2800 = vmatpush1.bf16.msra.mxu1 %v9251_v54 }
 0x275   : > { %2801 = vmatprep.subr.bf16.mxu1 %v9256_v59 }
 0x278   : > { %2802 = vmatpush1.bf16.msra.mxu1 %v9254_v0  ;;  %v9278_v0 = vld [vmem:[%s13601_s3 + $0x2c0] ss:$8 sps:$4 sm:$0xff]  }
 0x279   : > { %2803 = vmatprep.subr.bf16.mxu1 %v9259_v29  ;;  %v9302_v29 = vld [vmem:[%s13601_s3 + $0x340] ss:$8 sps:$4 sm:$0xff]  }
 0x27b   : > { %2706 = vmatmul.mubr.bf16.gmra.mxu1 %v819_v44 }
 0x27c   : > { %2715 = vmatprep.mubr.bf16.mxu1 %v941_v49  ;;  %2804 = vmatpush1.bf16.msra.mxu1 %v9257_v50  ;;  %v9283_v50 = vld [vmem:[%s13601_s3 + $0x2b4] ss:$8 sps:$4 sm:$0xff]  }
 0x27d   : > { %2805 = vmatprep.subr.bf16.mxu1 %v9262_v4 }
 0x280   : > { %2806 = vmatpush1.bf16.msra.mxu1 %v9260_v18 }
 0x281   : > { %2807 = vmatprep.subr.bf16.mxu1 %v9265_v21  ;;  %v9281_v21 = vld [vmem:[%s13601_s3 + $0x2b0] ss:$8 sps:$4 sm:$0xff]  }
 0x283   : > { %v1150_v44 = vpop.f32.mrf.mxu1  ;;  %2716 = vmatmul.mubr.bf16.gmra.mxu1 %v820_v27  ;;  %v11205_v51 = vpop.f32.mrf.mxu0 }
 0x284   : > { %2808 = vmatpush1.bf16.msra.mxu1 %v9263_v45  ;;  %v9305_v45 = vld [vmem:[%s13601_s3 + $0x330] ss:$8 sps:$4 sm:$0xff]  }
 0x285   : > { %v1152_v53 = vpop.f32.mrf.mxu1  ;;  %2809 = vmatprep.subr.bf16.mxu1 %v9268_v36  ;;  %v1515_v56 = vpop.f32.mrf.mxu0 }
 0x287   : > { %v1153_v57 = vpop.f32.mrf.mxu1  ;;  %v11213_v60 = vpop.f32.mrf.mxu0 }
 0x288   : > { %v1180_v58 = vpack.c.bf16 %v1153_v57, %v1150_v44  ;;  %2810 = vmatpush1.bf16.msra.mxu1 %v9266_v52  ;;  %v1543_v3 = vpack.c.bf16 %v11213_v60, %v11205_v51  ;;  %v9286_v44 = vld [vmem:[%s13601_s3 + $0x2a4] ss:$8 sps:$4 sm:$0xff]  }
 0x289   : > { %v1155_v5 = vpop.f32.mrf.mxu1  ;;  %2811 = vmatprep.subr.bf16.mxu1 %v9271_v41  ;;  %v1518_v16 = vpop.f32.mrf.mxu0  ;;  %v9310_v52 = vld [vmem:[%s13601_s3 + $0x324] ss:$8 sps:$4 sm:$0xff]  }
 0x28a   : > { %2756 = vmatprep.mubr.bf16.mxu0 %v1180_v58  ;;  %v9284_v58 = vld [vmem:[%s13601_s3 + $0x2a0] ss:$8 sps:$4 sm:$0xff]   ;;  %v9311_v16 = vld [vmem:[%s13601_s3 + $0x310] ss:$8 sps:$4 sm:$0xff]  }
 0x28b   : > { %v1158_v15 = vpop.f32.mrf.mxu1  ;;  %2757 = vmatmul.mubr.bf16.vlgmr.msra.gmra.mxu0 %v1059_v63  ;;  %v11232_v8 = vpop.f32.mrf.mxu0 }
 0x28c   : > { %2812 = vmatpush2.bf16.msra.mxu1 %v9269_v1  ;;  %2867 = vmatpush1.bf16.msra.mxu0 %v9287_v2  ;;  %v9308_v1 = vld [vmem:[%s13601_s3 + $0x320] ss:$8 sps:$4 sm:$0xff]  }
 0x28d   : > { %v1160_v25 = vpop.f32.mrf.mxu1  ;;  %2813 = vmatprep.subr.bf16.mxu1 %v9274_v9  ;;  %2868 = vmatprep.subr.bf16.mxu0 %v9295_v11  ;;  %v1523_v61 = vpop.f32.mrf.mxu0  ;;  %v9290_v11 = vld [vmem:[%s13601_s3 + $0x290] ss:$8 sps:$4 sm:$0xff]  }
 0x28e   : > { %v9319_v25 = vld [vmem:[%s13601_s3 + $0x304] ss:$8 sps:$4 sm:$0xff]   ;;  %v9316_v61 = vld [vmem:[%s13601_s3 + $0x474] ss:$8 sps:$4 sm:$0xff]  }
 0x28f   : > { %v1161_v63 = vpop.f32.mrf.mxu1  ;;  %v11246_v32 = vpop.f32.mrf.mxu0 }
 0x290   : > { %v1181_v33 = vpack.c.bf16 %v1161_v63, %v1158_v15  ;;  %2814 = vmatpush2.bf16.msra.mxu1 %v9272_v19  ;;  %2869 = vmatpush1.bf16.msra.mxu0 %v9293_v17  ;;  %v1544_v14 = vpack.c.bf16 %v11246_v32, %v11232_v8  ;;  %v1062_v15 = vpack.c.bf16 %v11035_v37, %v11035_v37  ;;  %v9298_v17 = vld [vmem:[%s13601_s3 + $0x284] ss:$8 sps:$4 sm:$0xff]   ;;  %v9317_v37 = vld [vmem:[%s13601_s3 + $0x300] ss:$8 sps:$4 sm:$0xff]   ;;  %v9325_v63 = vld [vmem:[%s13601_s3 + $0x3f4] ss:$8 sps:$4 sm:$0xff]  }
 0x291   : > { %v1163_v39 = vpop.f32.mrf.mxu1  ;;  %2815 = vmatprep.subr.bf16.mxu1 %v9277_v30  ;;  %2870 = vmatprep.subr.bf16.mxu0 %v9301_v55  ;;  %v1526_v43 = vpop.f32.mrf.mxu0  ;;  %v9296_v55 = vld [vmem:[%s13601_s3 + $0x280] ss:$8 sps:$4 sm:$0xff]  }
 0x292   : > { %2766 = vmatprep.mubr.bf16.mxu0 %v1181_v33  ;;  %v9323_v33 = vld [vmem:[%s13601_s3 + $0x3f0] ss:$8 sps:$4 sm:$0xff]   ;;  %v9337_v39 = vld [vmem:[%s13601_s3 + $0x3d4] ss:$8 sps:$4 sm:$0xff]   ;;  %v9341_v43 = vld [vmem:[%s13601_s3 + $0x3c0] ss:$8 sps:$4 sm:$0xff]  }
 0x293   : > { %v1166_v54 = vpop.f32.mrf.mxu1  ;;  %2767 = vmatmul.mubr.bf16.gmra.mxu0 %v1060_v23  ;;  %v11265_v59 = vpop.f32.mrf.mxu0 }
 0x294   : > { %2816 = vmatpush2.bf16.msra.mxu1 %v9275_v7  ;;  %2871 = vmatpush1.bf16.msra.mxu0 %v9299_v34  ;;  %v9331_v7 = vld [vmem:[%s13601_s3 + $0x3e4] ss:$8 sps:$4 sm:$0xff]   ;;  %v9329_v34 = vld [vmem:[%s13601_s3 + $0x3e0] ss:$8 sps:$4 sm:$0xff]  }
 0x295   : > { %v1168_v49 = vpop.f32.mrf.mxu1  ;;  %2817 = vmatprep.subr.bf16.mxu1 %v9280_v42  ;;  %2872 = vmatprep.subr.bf16.mxu0 %v9304_v47  ;;  %v1531_v12 = vpop.f32.mrf.mxu0  ;;  %v9335_v42 = vld [vmem:[%s13601_s3 + $0x3d0] ss:$8 sps:$4 sm:$0xff]   ;;  %v9343_v47 = vld [vmem:[%s13601_s3 + $0x3c4] ss:$8 sps:$4 sm:$0xff]  }
 0x296   : > { %v9347_v49 = vld [vmem:[%s13601_s3 + $0x3b0] ss:$8 sps:$4 sm:$0xff]   ;;  %v9355_v12 = vld [vmem:[%s13601_s3 + $0x3a4] ss:$8 sps:$4 sm:$0xff]  }
 0x297   : > { %v1169_v23 = vpop.f32.mrf.mxu1  ;;  %v11279_v4 = vpop.f32.mrf.mxu0 }
 0x298   : > { %v1182_v18 = vpack.c.bf16 %v1169_v23, %v1166_v54  ;;  %2818 = vmatpush2.bf16.msra.mxu1 %v9278_v0  ;;  %2873 = vmatpush1.bf16.msra.mxu0 %v9302_v29  ;;  %v1545_v27 = vpack.c.bf16 %v11279_v4, %v11265_v59  ;;  %v9349_v54 = vld [vmem:[%s13601_s3 + $0x3b4] ss:$8 sps:$4 sm:$0xff]  }
 0x299   : > { %v1171_v36 = vpop.f32.mrf.mxu1  ;;  %2819 = vmatprep.subr.bf16.mxu1 %v9283_v50  ;;  %2874 = vmatprep.subr.bf16.mxu0 %v9307_v6  ;;  %v1534_v53 = vpop.f32.mrf.mxu0 }
 0x29a   : > { %2776 = vmatprep.mubr.bf16.mxu0 %v1182_v18  ;;  %v9353_v36 = vld [vmem:[%s13601_s3 + $0x3a0] ss:$8 sps:$4 sm:$0xff]  }
 0x29b   : > { %2777 = vmatmul.mubr.bf16.gmra.mxu0 %v1061_v46  ;;  %v1174_v41 = vpop.f32.mrf.mxu1  ;;  %v11298_v56 = vpop.f32.mrf.mxu0 }
 0x29c   : > { %v1183_v57 = vpack.c.bf16 %v1174_v41, %v1174_v41  ;;  %2820 = vmatpush2.bf16.msra.mxu1 %v9281_v21  ;;  %2875 = vmatpush1.bf16.msra.mxu0 %v9305_v45  ;;  %v9314_v45 = vld [vmem:[%s13601_s3 + $0x470] ss:$8 sps:$4 sm:$0xff]   ;;  %v9361_v41 = vld [vmem:[%s13601_s3 + $0x394] ss:$8 sps:$4 sm:$0xff]  }
 0x29d   : > { %v1176_v2 = vpop.f32.mrf.mxu1  ;;  %2821 = vmatprep.subr.bf16.mxu1 %v9286_v44  ;;  %2876 = vmatprep.subr.bf16.mxu0 %v9310_v52  ;;  %v1539_v46 = vpop.f32.mrf.mxu0  ;;  %v9322_v52 = vld [vmem:[%s13601_s3 + $0x464] ss:$8 sps:$4 sm:$0xff]  }
 0x29e   : > { %2786 = vmatprep.mubr.bf16.mxu0 %v1183_v57  ;;  %v9359_v2 = vld [vmem:[%s13601_s3 + $0x390] ss:$8 sps:$4 sm:$0xff]  }
 0x29f   : > { %v1177_v5 = vpop.f32.mrf.mxu1  ;;  %v1540_v9 = vpop.f32.mrf.mxu0 }
 0x2a0   : > { %2822 = vmatpush2.bf16.msra.mxu1 %v9284_v58  ;;  %2877 = vmatpush1.bf16.msra.mxu0 %v9308_v1  ;;  %v9320_v1 = vld [vmem:[%s13601_s3 + $0x460] ss:$8 sps:$4 sm:$0xff]   ;;  %v9326_v9 = vld [vmem:[%s13601_s3 + $0x450] ss:$8 sps:$4 sm:$0xff]  }
 0x2a1   : > { %v1178_v19 = vpop.f32.mrf.mxu1  ;;  %2823 = vmatprep.subr.bf16.mxu1 %v9292_v28  ;;  %2878 = vmatprep.subr.bf16.mxu0 %v9313_v38  ;;  %v1541_v30 = vpop.f32.mrf.mxu0  ;;  %v9328_v38 = vld [vmem:[%s13601_s3 + $0x454] ss:$8 sps:$4 sm:$0xff]  }
 0x2a2   : > { %v9332_v30 = vld [vmem:[%s13601_s3 + $0x440] ss:$8 sps:$4 sm:$0xff]  }
 0x2a3   : > { %2787 = vmatmul.mubr.bf16.gmra.mxu0 %v1062_v15  ;;  %v9334_v15 = vld [vmem:[%s13601_s3 + $0x444] ss:$8 sps:$4 sm:$0xff]  }
 0x2a4   : > { %2824 = vmatpush2.bf16.msra.mxu1 %v9290_v11  ;;  %2879 = vmatpush1.bf16.msra.mxu0 %v9311_v16  ;;  %v9362_v11 = vld [vmem:[%s13601_s3 + $0x380] ss:$8 sps:$4 sm:$0xff]  }
 0x2a5   : > { %2825 = vmatprep.subr.bf16.mxu1 %v9298_v17  ;;  %2880 = vmatprep.subr.bf16.mxu0 %v9319_v25 }
 0x2a8   : > { %2826 = vmatpush2.bf16.msra.mxu1 %v9296_v55  ;;  %2881 = vmatpush1.bf16.msra.mxu0 %v9317_v37  ;;  %v9340_v37 = vld [vmem:[%s13601_s3 + $0x434] ss:$8 sps:$4 sm:$0xff]  }
 0x2a9   : > { %2937 = vmatprep.subr.bf16.mxu1 %v9316_v61  ;;  %2882 = vmatprep.subr.bf16.mxu0 %v9325_v63 }
 0x2ac   : > { %2883 = vmatpush2.bf16.msra.mxu0 %v9323_v33 }
 0x2ad   : > { %2884 = vmatprep.subr.bf16.mxu0 %v9331_v7 }
 0x2b0   : > { %2885 = vmatpush2.bf16.msra.mxu0 %v9329_v34 }
 0x2b1   : > { %2886 = vmatprep.subr.bf16.mxu0 %v9337_v39 }
 0x2b4   : > { %2887 = vmatpush2.bf16.msra.mxu0 %v9335_v42 }
 0x2b5   : > { %2888 = vmatprep.subr.bf16.mxu0 %v9343_v47 }
 0x2b7   : > { %v1392_v0 = vpop.f32.mrf.mxu1  ;;  %v11362_v29 = vpop.f32.mrf.mxu0 }
 0x2b8   : > { %2889 = vmatpush2.bf16.msra.mxu0 %v9341_v43  ;;  %v9344_v43 = vld [vmem:[%s13601_s3 + $0x420] ss:$8 sps:$4 sm:$0xff]  }
 0x2b9   : > { %v1394_v50 = vpop.f32.mrf.mxu1  ;;  %2890 = vmatprep.subr.bf16.mxu0 %v9349_v54  ;;  %v1757_v6 = vpop.f32.mrf.mxu0 }
 0x2bb   : > { %v1395_v23 = vpop.f32.mrf.mxu1  ;;  %v11370_v18 = vpop.f32.mrf.mxu0 }
 0x2bc   : > { %v1422_v21 = vpack.c.bf16 %v1395_v23, %v1392_v0  ;;  %2891 = vmatpush2.bf16.msra.mxu0 %v9347_v49  ;;  %v9352_v0 = vld [vmem:[%s13601_s3 + $0x414] ss:$8 sps:$4 sm:$0xff]  }
 0x2bd   : > { %v1397_v44 = vpop.f32.mrf.mxu1  ;;  %2892 = vmatprep.subr.bf16.mxu0 %v9355_v12  ;;  %v1760_v53 = vpop.f32.mrf.mxu0  ;;  %v9358_v12 = vld [vmem:[%s13601_s3 + $0x404] ss:$8 sps:$4 sm:$0xff]  }
 0x2be   : > { %2827 = vmatprep.mubr.bf16.mxu1 %v1422_v21  ;;  %v9356_v21 = vld [vmem:[%s13601_s3 + $0x400] ss:$8 sps:$4 sm:$0xff]  }
 0x2bf   : > { %v1400_v57 = vpop.f32.mrf.mxu1  ;;  %2828 = vmatmul.mubr.bf16.vlgmr.msra.gmra.mxu1 %v1301_v22  ;;  %v11387_v58 = vpop.f32.mrf.mxu0 }
 0x2c0   : > { %2938 = vmatpush1.bf16.msra.mxu1 %v9314_v45  ;;  %2893 = vmatpush2.bf16.msra.mxu0 %v9353_v36  ;;  %v1785_v45 = vpack.c.bf16 %v11370_v18, %v11362_v29 }
 0x2c1   : > { %v1402_v28 = vpop.f32.mrf.mxu1  ;;  %2939 = vmatprep.subr.bf16.mxu1 %v9322_v52  ;;  %2894 = vmatprep.subr.bf16.mxu0 %v9361_v41  ;;  %v1765_v26 = vpop.f32.mrf.mxu0 }
 0x2c3   : > { %v1403_v22 = vpop.f32.mrf.mxu1  ;;  %v1766_v46 = vpop.f32.mrf.mxu0 }
 0x2c4   : > { %v1423_v5 = vpack.c.bf16 %v1403_v22, %v1400_v57  ;;  %2940 = vmatpush1.bf16.msra.mxu1 %v9320_v1  ;;  %2895 = vmatpush2.bf16.msra.mxu0 %v9359_v2  ;;  %v1786_v24 = vpack.c.bf16 %v1766_v46, %v11387_v58 }
 0x2c5   : > { %v1405_v16 = vpop.f32.mrf.mxu1  ;;  %2941 = vmatprep.subr.bf16.mxu1 %v9328_v38  ;;  %2896 = vmatprep.subr.bf16.mxu0 %v9364_v35  ;;  %v1768_v19 = vpop.f32.mrf.mxu0 }
 0x2c6   : > { %2837 = vmatprep.mubr.bf16.mxu1 %v1423_v5 }
 0x2c7   : > { %v1408_v17 = vpop.f32.mrf.mxu1  ;;  %2838 = vmatmul.mubr.bf16.gmra.mxu1 %v1302_v31  ;;  %v1771_v25 = vpop.f32.mrf.mxu0  ;;  %v9346_v31 = vld [vmem:[%s13601_s3 + $0x424] ss:$8 sps:$4 sm:$0xff]  }
 0x2c8   : > { %2942 = vmatpush1.bf16.msra.mxu1 %v9326_v9  ;;  %2897 = vmatpush2.bf16.msra.mxu0 %v9362_v11  ;;  %v1546_v9 = vpack.c.bf16 %v11298_v56, %v11298_v56 }
 0x2c9   : > { %v1410_v55 = vpop.f32.mrf.mxu1  ;;  %2943 = vmatprep.subr.bf16.mxu1 %v9334_v15  ;;  %v1773_v61 = vpop.f32.mrf.mxu0 }
 0x2cb   : > { %v1411_v63 = vpop.f32.mrf.mxu1  ;;  %v1774_v33 = vpop.f32.mrf.mxu0 }
 0x2cc   : > { %v1424_v7 = vpack.c.bf16 %v1411_v63, %v1408_v17  ;;  %2944 = vmatpush1.bf16.msra.mxu1 %v9332_v30  ;;  %v1787_v44 = vpack.c.bf16 %v1774_v33, %v1771_v25 }
 0x2cd   : > { %v1413_v40 = vpop.f32.mrf.mxu1  ;;  %2945 = vmatprep.subr.bf16.mxu1 %v9340_v37  ;;  %v1776_v34 = vpop.f32.mrf.mxu0 }
 0x2ce   : > { %2847 = vmatprep.mubr.bf16.mxu1 %v1424_v7 }
 0x2cf   : > { %2848 = vmatmul.mubr.bf16.gmra.mxu1 %v1303_v13  ;;  %v1416_v39 = vpop.f32.mrf.mxu1  ;;  %v1779_v42 = vpop.f32.mrf.mxu0 }
 0x2d0   : > { %v1425_v47 = vpack.c.bf16 %v1416_v39, %v1416_v39  ;;  %2946 = vmatpush1.bf16.msra.mxu1 %v9338_v48  ;;  %v1788_v18 = vpack.c.bf16 %v1779_v42, %v1779_v42 }
 0x2d1   : > { %v1418_v54 = vpop.f32.mrf.mxu1  ;;  %2947 = vmatprep.subr.bf16.mxu1 %v9346_v31  ;;  %v1781_v49 = vpop.f32.mrf.mxu0 }
 0x2d2   : > { %2857 = vmatprep.mubr.bf16.mxu1 %v1425_v47 }
 0x2d3   : > { %v1419_v50 = vpop.f32.mrf.mxu1  ;;  %v1782_v6 = vpop.f32.mrf.mxu0 }
 0x2d4   : > { %2948 = vmatpush1.bf16.msra.mxu1 %v9344_v43 }
 0x2d5   : > { %v1420_v13 = vpop.f32.mrf.mxu1  ;;  %2949 = vmatprep.subr.bf16.mxu1 %v9352_v0  ;;  %v1783_v23 = vpop.f32.mrf.mxu0 }
 0x2d7   : > { %2858 = vmatmul.mubr.bf16.gmra.mxu1 %v1304_v10 }
 0x2d8   : > { %2950 = vmatpush1.bf16.msra.mxu1 %v9350_v62  ;;  %2969 = vmatprep.mubr.bf16.mxu1 %v10248_v20 }
 0x2d9   : > { %2951 = vmatprep.subr.bf16.mxu1 %v9358_v12 }
 0x2dc   : > { %2952 = vmatpush1.bf16.msra.mxu1 %v9356_v21 }
 0x2df   : > { %2970 = vmatmul.mubr.bf16.vlgmr.msra.gmra.mxu1 %v1785_v45 }
 0x2e0   : > { %2979 = vmatprep.mubr.bf16.mxu1 %v10248_v20 }
 0x2e7   : > { %2980 = vmatmul.mubr.bf16.gmra.mxu1 %v1786_v24 }
 0x2e8   : > { %2989 = vmatprep.mubr.bf16.mxu1 %v10248_v20 }
 0x2eb   : > { %v1634_v36 = vpop.f32.mrf.mxu1 }
 0x2ed   : > { %v1636_v52 = vpop.f32.mrf.mxu1 }
 0x2ef   : > { %v1637_v53 = vpop.f32.mrf.mxu1  ;;  %2990 = vmatmul.mubr.bf16.gmra.mxu1 %v1787_v44 }
 0x2f0   : > { %v1664_v41 = vpack.c.bf16 %v1637_v53, %v1634_v36  ;;  %2999 = vmatprep.mubr.bf16.mxu1 %v10248_v20 }
 0x2f1   : > { %v1639_v57 = vpop.f32.mrf.mxu1 }
 0x2f2   : > { %2898 = vmatprep.mubr.bf16.mxu0 %v1664_v41 }
 0x2f3   : > { %v1642_v29 = vpop.f32.mrf.mxu1  ;;  %2899 = vmatmul.mubr.bf16.vlgmr.msra.gmra.mxu0 %v1543_v3 }
 0x2f5   : > { %v1644_v58 = vpop.f32.mrf.mxu1 }
 0x2f7   : > { %v1645_v1 = vpop.f32.mrf.mxu1  ;;  %3000 = vmatmul.mubr.bf16.gmra.mxu1 %v1788_v18 }
 0x2f8   : > { %v1665_v2 = vpack.c.bf16 %v1645_v1, %v1642_v29  ;;  %3163 = vmatprep.mubr.bf16.mxu1 %v10248_v20 }
 0x2f9   : > { %v1647_v28 = vpop.f32.mrf.mxu1 }
 0x2fa   : > { %2908 = vmatprep.mubr.bf16.mxu0 %v1665_v2 }
 0x2fb   : > { %v1650_v38 = vpop.f32.mrf.mxu1  ;;  %2909 = vmatmul.mubr.bf16.gmra.mxu0 %v1544_v14 }
 0x2fd   : > { %v1652_v26 = vpop.f32.mrf.mxu1 }
 0x2ff   : > { %v1653_v35 = vpop.f32.mrf.mxu1 }
 0x300   : > { %v1666_v22 = vpack.c.bf16 %v1653_v35, %v1650_v38 }
 0x301   : > { %v1655_v46 = vpop.f32.mrf.mxu1 }
 0x302   : > { %2918 = vmatprep.mubr.bf16.mxu0 %v1666_v22 }
 0x303   : > { %v1658_v51 = vpop.f32.mrf.mxu1  ;;  %2919 = vmatmul.mubr.bf16.gmra.mxu0 %v1545_v27 }
 0x304   : > { %v1667_v60 = vpack.c.bf16 %v1658_v51, %v1658_v51 }
 0x305   : > { %v1660_v3 = vpop.f32.mrf.mxu1 }
 0x306   : > { %2928 = vmatprep.mubr.bf16.mxu0 %v1667_v60 }
 0x307   : > { %v1661_v5 = vpop.f32.mrf.mxu1 }
 0x309   : > { %v1662_v11 = vpop.f32.mrf.mxu1 }
 0x30b   : > { %2929 = vmatmul.mubr.bf16.gmra.mxu0 %v1546_v9 }
 0x30c   : > { %3107 = vmatprep.mubr.bf16.mxu0 %v10248_v20 }
 0x32b   : > { %v2687_v8 = vpop.f32.mrf.mxu1 }
 0x32d   : > { %v2689_v32 = vpop.f32.mrf.mxu1 }
 0x32f   : > { %v2691_v14 = vpop.f32.mrf.mxu1 }
 0x331   : > { %v2693_v16 = vpop.f32.mrf.mxu1 }
 0x333   : > { %v2697_v15 = vpop.f32.mrf.mxu1 }
 0x335   : > { %v2699_v19 = vpop.f32.mrf.mxu1 }
 0x337   : > { %v2701_v17 = vpop.f32.mrf.mxu1 }
 0x339   : > { %v2703_v59 = vpop.f32.mrf.mxu1 }
 0x33b   : > { %v2707_v4 = vpop.f32.mrf.mxu1 }
 0x33d   : > { %v2709_v27 = vpop.f32.mrf.mxu1 }
 0x33f   : > { %v2711_v25 = vpop.f32.mrf.mxu1 }
 0x341   : > { %v2713_v30 = vpop.f32.mrf.mxu1 }
 0x343   : > { %v2717_v55 = vpop.f32.mrf.mxu1 }
 0x345   : > { %v2719_v37 = vpop.f32.mrf.mxu1 }
 0x347   : > { %v2721_v61 = vpop.f32.mrf.mxu1 }
 0x349   : > { %v2722_v56 = vpop.f32.mrf.mxu1 }
 0x34b   : > { %v2758_v63 = vpop.f32.mrf.mxu0 }
 0x34c   : > { %v2759_v33 = vadd.f32 %v2758_v63, %v2687_v8 }
 0x34d   : > { %v2760_v7 = vpop.f32.mrf.mxu0 }
 0x34e   : > { %v2761_v48 = vadd.f32 %v2760_v7, %v2689_v32 }
 0x34f   : > { %v2762_v40 = vpop.f32.mrf.mxu0 }
 0x350   : > { %v2763_v31 = vadd.f32 %v2762_v40, %v2691_v14 }
 0x351   : > { %v2764_v34 = vpop.f32.mrf.mxu0 }
 0x352   : > { %v2765_v39 = vadd.f32 %v2764_v34, %v2693_v16 }
 0x353   : > { %v2768_v42 = vpop.f32.mrf.mxu0 }
 0x354   : > { %v2769_v47 = vadd.f32 %v2768_v42, %v2697_v15 }
 0x355   : > { %v2770_v43 = vpop.f32.mrf.mxu0 }
 0x356   : > { %v2771_v54 = vadd.f32 %v2770_v43, %v2699_v19 }
 0x357   : > { %v2772_v0 = vpop.f32.mrf.mxu0 }
 0x358   : > { %v2773_v49 = vadd.f32 %v2772_v0, %v2701_v17 }
 0x359   : > { %v2774_v50 = vpop.f32.mrf.mxu0 }
 0x35a   : > { %v2775_v6 = vadd.f32 %v2774_v50, %v2703_v59 }
 0x35b   : > { %v2778_v62 = vpop.f32.mrf.mxu0 }
 0x35c   : > { %v2779_v10 = vadd.f32 %v2778_v62, %v2707_v4 }
 0x35d   : > { %v2780_v13 = vpop.f32.mrf.mxu0 }
 0x35e   : > { %v11465_v12 = vadd.f32 %v2780_v13, %v2709_v27 }
 0x35f   : > { %v2782_v23 = vpop.f32.mrf.mxu0 }
 0x360   : > { %v11467_v21 = vadd.f32 %v2782_v23, %v2711_v25 }
 0x361   : > { %v2784_v45 = vpop.f32.mrf.mxu0 }
 0x362   : > { %v11469_v24 = vadd.f32 %v2784_v45, %v2713_v30 }
 0x363   : > { %v2788_v36 = vpop.f32.mrf.mxu0 }
 0x364   : > { %v11471_v44 = vadd.f32 %v2788_v36, %v2717_v55 }
 0x365   : > { %v2790_v52 = vpop.f32.mrf.mxu0 }
 0x366   : > { %v11473_v53 = vadd.f32 %v2790_v52, %v2719_v37 }
 0x367   : > { %v2792_v41 = vpop.f32.mrf.mxu0 }
 0x369   : > { %v2793_v57 = vpop.f32.mrf.mxu0 }
 0x37f   : > { %v2829_v29 = vpop.f32.mrf.mxu1 }
 0x380   : > { %v2830_v18 = vadd.f32 %v2829_v29, %v2759_v33 }
 0x381   : > { %v2831_v58 = vpop.f32.mrf.mxu1 }
 0x382   : > { %v2832_v1 = vadd.f32 %v2831_v58, %v2761_v48 }
 0x383   : > { %v2833_v2 = vpop.f32.mrf.mxu1 }
 0x384   : > { %v2834_v28 = vadd.f32 %v2833_v2, %v2763_v31 }
 0x385   : > { %v2835_v38 = vpop.f32.mrf.mxu1 }
 0x386   : > { %v2836_v26 = vadd.f32 %v2835_v38, %v2765_v39 }
 0x387   : > { %v2839_v35 = vpop.f32.mrf.mxu1 }
 0x388   : > { %v2840_v22 = vadd.f32 %v2839_v35, %v2769_v47 }
 0x389   : > { %v2841_v46 = vpop.f32.mrf.mxu1 }
 0x38a   : > { %v2842_v51 = vadd.f32 %v2841_v46, %v2771_v54 }
 0x38b   : > { %v2843_v60 = vpop.f32.mrf.mxu1 }
 0x38c   : > { %v2844_v3 = vadd.f32 %v2843_v60, %v2773_v49 }
 0x38d   : > { %v2845_v5 = vpop.f32.mrf.mxu1 }
 0x38e   : > { %v11475_v9 = vadd.f32 %v2845_v5, %v2775_v6 }
 0x38f   : > { %v2849_v11 = vpop.f32.mrf.mxu1 }
 0x390   : > { %v11477_v8 = vadd.f32 %v2849_v11, %v2779_v10 }
 0x391   : > { %v11479_v32 = vpop.f32.mrf.mxu1 }
 0x393   : > { %v11481_v14 = vpop.f32.mrf.mxu1 }
 0x395   : > { %v11483_v16 = vpop.f32.mrf.mxu1 }
 0x397   : > { %v11485_v15 = vpop.f32.mrf.mxu1 }
 0x399   : > { %v11487_v19 = vpop.f32.mrf.mxu1 }
 0x39b   : > { %v2863_v17 = vpop.f32.mrf.mxu1 }
 0x39d   : > { %v2864_v59 = vpop.f32.mrf.mxu1 }
 0x39f   : > { %v2971_v4 = vpop.f32.mrf.mxu1 }
 0x3a1   : > { %v2973_v27 = vpop.f32.mrf.mxu1 }
 0x3a3   : > { %v2975_v25 = vpop.f32.mrf.mxu1 }
 0x3a5   : > { %v2977_v30 = vpop.f32.mrf.mxu1 }
 0x3a7   : > { %v2981_v55 = vpop.f32.mrf.mxu1 }
 0x3a9   : > { %v2983_v37 = vpop.f32.mrf.mxu1 }
 0x3ab   : > { %v2985_v61 = vpop.f32.mrf.mxu1 }
 0x3ad   : > { %v2987_v56 = vpop.f32.mrf.mxu1 }
 0x3af   : > { %v2991_v63 = vpop.f32.mrf.mxu1 }
 0x3b1   : > { %v11489_v33 = vpop.f32.mrf.mxu1 }
 0x3b3   : > { %v2900_v7 = vpop.f32.mrf.mxu0  ;;  %v11491_v48 = vpop.f32.mrf.mxu1 }
 0x3b4   : > { %v2901_v40 = vadd.f32 %v2900_v7, %v2830_v18 }
 0x3b5   : > { %v2902_v31 = vpop.f32.mrf.mxu0  ;;  %v11493_v34 = vpop.f32.mrf.mxu1 }
 0x3b6   : > { %v2972_v39 = vadd.f32 %v2971_v4, %v2901_v40  ;;  %v2903_v42 = vadd.f32 %v2902_v31, %v2832_v1 }
 0x3b7   : > { %v2904_v47 = vpop.f32.mrf.mxu0  ;;  %v11495_v43 = vpop.f32.mrf.mxu1 }
 0x3b8   : > { %v2905_v54 = vadd.f32 %v2904_v47, %v2834_v28  ;;  %v3022_v0 = vmul.f32 0.01, %v2972_v39  ;;  %v2974_v49 = vadd.f32 %v2973_v27, %v2903_v42  ;;  %vm3008_vm3 = vcmp.gt.f32.partialorder %v2972_v39, 0.0 }
 0x3b9   : > { %v2906_v50 = vpop.f32.mrf.mxu0  ;;  %v11497_v6 = vpop.f32.mrf.mxu1 }
 0x3ba   : > { %v2976_v62 = vadd.f32 %v2975_v25, %v2905_v54  ;;  %v2907_v10 = vadd.f32 %v2906_v50, %v2836_v26  ;;  %v3036_v52 = vsel %vm3008_vm3, %v2972_v39, %v3022_v0  ;;  %v3023_v41 = vmul.f32 0.01, %v2974_v49 }
 0x3bb   : > { %v2910_v13 = vpop.f32.mrf.mxu0  ;;  %v3005_v23 = vpop.f32.mrf.mxu1  ;;  %vm3009_vm2 = vcmp.gt.f32.partialorder %v2974_v49, 0.0 }
 0x3bc   : > { %vm3010_vm1 = vcmp.gt.f32.partialorder %v2976_v62, 0.0  ;;  %v3024_v45 = vmul.f32 0.01, %v2976_v62  ;;  %v2911_v36 = vadd.f32 %v2910_v13, %v2840_v22  ;;  %v2978_v57 = vadd.f32 %v2977_v30, %v2907_v10 }
 0x3bd   : > { %v2912_v29 = vpop.f32.mrf.mxu0  ;;  %v3006_v18 = vpop.f32.mrf.mxu1  ;;  %v3037_v46 = vsel %vm3009_vm2, %v2974_v49, %v3023_v41 }
 0x3be   : > { %v3038_v58 = vsel %vm3010_vm1, %v2976_v62, %v3024_v45  ;;  %v2982_v1 = vadd.f32 %v2981_v55, %v2911_v36  ;;  %v2913_v2 = vadd.f32 %v2912_v29, %v2842_v51  ;;  %vm3011_vm4 = vcmp.gt.f32.partialorder %v2978_v57, 0.0 }
 0x3bf   : > { %v11499_v28 = vpack.c.bf16 %v3038_v58, %v3036_v52  ;;  %v3025_v38 = vmul.f32 0.01, %v2978_v57  ;;  %v2914_v35 = vpop.f32.mrf.mxu0  ;;  %v2852_v51 = vadd.f32 %v11479_v32, %v11465_v12  ;;  %v2856_v12 = vadd.f32 %v11483_v16, %v11469_v24 }
 0x3c0   : > { %v2915_v26 = vadd.f32 %v2914_v35, %v2844_v3  ;;  %v2984_v5 = vadd.f32 %v2983_v37, %v2913_v2  ;;  %v3026_v17 = vmul.f32 0.01, %v2982_v1  ;;  %vm3012_vm5 = vcmp.gt.f32.partialorder %v2982_v1, 0.0 }
 0x3c1   : > { %v3039_v60 = vsel %vm3011_vm4, %v2978_v57, %v3025_v38  ;;  %v2916_v11 = vpop.f32.mrf.mxu0  ;;  %v2854_v37 = vadd.f32 %v11481_v14, %v11467_v21  ;;  %v2860_v21 = vadd.f32 %v11485_v15, %v11471_v44  ;;  %v2862_v24 = vadd.f32 %v11487_v19, %v11473_v53 }
 0x3c2   : > { %v11501_v22 = vpack.c.bf16 %v3039_v60, %v3037_v46  ;;  %v2986_v59 = vadd.f32 %v2985_v61, %v2915_v26  ;;  %v2917_v4 = vadd.f32 %v2916_v11, %v11475_v9  ;;  %v3027_v30 = vmul.f32 0.01, %v2984_v5  ;;  %v9366_v26 = vld [vmem:[%s13602_s4 + $0x8] sm:$0xff]   ;;  %v9367_v46 = vld [vmem:[%s13602_s4 + $0x10] sm:$0xff]   ;;  %v9368_v60 = vld [vmem:[%s13602_s4 + $0x18] sm:$0xff]  }
 0x3c3   : > { %v2920_v27 = vpop.f32.mrf.mxu0  ;;  %v3040_v40 = vsel %vm3012_vm5, %v2982_v1, %v3026_v17  ;;  %vm3013_vm7 = vcmp.gt.f32.partialorder %v2984_v5, 0.0  ;;  %v9370_v11 = vld [vmem:[%s13602_s4 + $0x28] sm:$0xff]   ;;  %v9374_v17 = vld [vmem:[%s13603_s5 + $0xe4] ss:$16 sps:$4 sm:$0xff]   ;;  %vm7866_vm4 = vcmask 523264  }
 0x3c4   : > { %v2921_v25 = vadd.f32 %v2920_v27, %v11477_v8  ;;  %vm3014_vm6 = vcmp.gt.f32.partialorder %v2986_v59, 0.0  ;;  %v3028_v3 = vmul.f32 0.01, %v2986_v59  ;;  %v2988_v55 = vadd.f32 %v2987_v56, %v2917_v4  ;;  %v9378_v4 = vld [vmem:[%s13602_s4 + $0x38] sm:$0xff]   ;;  %v9372_v27 = vld [vmem:[%s13603_s5 + $0xe0] ss:$16 sps:$4 sm:$0xff]  }
 0x3c5   : > { %v2922_v7 = vpop.f32.mrf.mxu0  ;;  %v3041_v32 = vsel %vm3013_vm7, %v2984_v5, %v3027_v30  ;;  %v9369_v5 = vld [vmem:[%s13602_s4 + $0x20] sm:$0xff]  }
 0x3c6   : > { %v2923_v31 = vadd.f32 %v2922_v7, %v2852_v51  ;;  %v3042_v61 = vsel %vm3014_vm6, %v2986_v59, %v3028_v3  ;;  %vm3015_vm8 = vcmp.gt.f32.partialorder %v2988_v55, 0.0  ;;  %v3029_v9 = vmul.f32 0.01, %v2988_v55  ;;  %v9371_v59 = vld [vmem:[%s13602_s4 + $0x30] sm:$0xff]  }
 0x3c7   : > { %v2992_v39 = vadd.f32 %v2991_v63, %v2921_v25  ;;  %v2924_v42 = vpop.f32.mrf.mxu0  ;;  %v11511_v8 = vpack.c.bf16 %v3042_v61, %v3040_v40  ;;  %v9382_v51 = vld [vmem:[%s13603_s5 + $0xc4] ss:$16 sps:$4 sm:$0xff]   ;;  %v9380_v25 = vld [vmem:[%s13603_s5 + $0xc0] ss:$16 sps:$4 sm:$0xff]  }
 0x3c8   : > { %v3043_v47 = vsel %vm3015_vm8, %v2988_v55, %v3029_v9  ;;  %v2994_v56 = vadd.f32 %v11489_v33, %v2923_v31  ;;  %v2925_v54 = vadd.f32 %v2924_v42, %v2854_v37  ;;  %v9388_v30 = vld [vmem:[%s13603_s5 + $0xa4] ss:$16 sps:$4 sm:$0xff]   ;;  %v9392_v7 = vld [vmem:[%s13603_s5 + $0x80] ss:$16 sps:$4 sm:$0xff]  }
 0x3c9   : > { %v2926_v0 = vpop.f32.mrf.mxu0  ;;  %v11516_v14 = vpack.c.bf16 %v3043_v47, %v3041_v32  ;;  %v3030_v49 = vmul.f32 0.01, %v2992_v39  ;;  %vm3016_vm9 = vcmp.gt.f32.partialorder %v2992_v39, 0.0  ;;  %v9394_v3 = vld [vmem:[%s13603_s5 + $0x84] ss:$16 sps:$4 sm:$0xff]  }
 0x3ca   : > { %v2996_v63 = vadd.f32 %v11491_v48, %v2925_v54  ;;  %v2927_v50 = vadd.f32 %v2926_v0, %v2856_v12  ;;  %v3031_v10 = vmul.f32 0.01, %v2994_v56  ;;  %vm3017_vm11 = vcmp.gt.f32.partialorder %v2994_v56, 0.0  ;;  %v9377_v55 = vld [vmem:[%s13603_s5 + $0x2e4] ss:$16 sps:$4 sm:$0xff]  }
 0x3cb   : > { %v2930_v62 = vpop.f32.mrf.mxu0  ;;  %v3044_v45 = vsel %vm3016_vm9, %v2992_v39, %v3030_v49  ;;  %v9400_v37 = vld [vmem:[%s13603_s5 + $0x64] ss:$16 sps:$4 sm:$0xff]   ;;  %v9398_v61 = vld [vmem:[%s13603_s5 + $0x60] ss:$16 sps:$4 sm:$0xff]   ;;  %vm7907_vm9 = vcmask 7168  }
 0x3cc   : > { %v2931_v16 = vadd.f32 %v2930_v62, %v2860_v21  ;;  %vm3018_vm10 = vcmp.gt.f32.partialorder %v2996_v63, 0.0  ;;  %v3032_v33 = vmul.f32 0.01, %v2996_v63  ;;  %v2998_v13 = vadd.f32 %v11493_v34, %v2927_v50  ;;  %v9379_v40 = vld [vmem:[%s13602_s4 + $0x40] sm:$0xff]  }
 0x3cd   : > { %v2932_v23 = vpop.f32.mrf.mxu0  ;;  %v3045_v57 = vsel %vm3017_vm11, %v2994_v56, %v3031_v10  ;;  %v9385_v31 = vld [vmem:[%s13603_s5 + $0x2c4] ss:$16 sps:$4 sm:$0xff]   ;;  %v9404_v42 = vld [vmem:[%s13603_s5 + $0x40] ss:$16 sps:$4 sm:$0xff]   ;;  %vm7911_vm11 = vcmask 23552  }
 0x3ce   : > { %v3002_v44 = vadd.f32 %v11495_v43, %v2931_v16  ;;  %v2933_v15 = vadd.f32 %v2932_v23, %v2862_v24  ;;  %v3046_v36 = vsel %vm3018_vm10, %v2996_v63, %v3032_v33  ;;  %vm3019_vm12 = vcmp.gt.f32.partialorder %v2998_v13, 0.0  ;;  %v9406_v9 = vld [vmem:[%s13603_s5 + $0x44] ss:$16 sps:$4 sm:$0xff]   ;;  %v9410_v47 = vld [vmem:[%s13603_s5 + $0x20] ss:$16 sps:$4 sm:$0xff]  }
 0x3cf   : > { %v3033_v48 = vmul.f32 0.01, %v2998_v13  ;;  %v2934_v52 = vpop.f32.mrf.mxu0  ;;  %v11523_v41 = vpack.c.bf16 %v3046_v36, %v3044_v45  ;;  %v9391_v39 = vld [vmem:[%s13603_s5 + $0x2a4] ss:$16 sps:$4 sm:$0xff]   ;;  %v9395_v54 = vld [vmem:[%s13603_s5 + $0x280] ss:$16 sps:$4 sm:$0xff]  }
 0x3d0   : > { %vm3020_vm13 = vcmp.gt.f32.partialorder %v3002_v44, 0.0  ;;  %v3034_v53 = vmul.f32 0.01, %v3002_v44  ;;  %v3004_v19 = vadd.f32 %v11497_v6, %v2933_v15  ;;  %v9365_v6 = vld [vmem:[%s13602_s4] sm:$0xff]   ;;  %vm7909_vm10 = vcmask 15360  }
 0x3d1   : > { %v3047_v29 = vsel %vm3019_vm12, %v2998_v13, %v3033_v48  ;;  %v2935_v18 = vpop.f32.mrf.mxu0  ;;  %v9412_v12 = vld [vmem:[%s13603_s5 + $0x24] ss:$16 sps:$4 sm:$0xff]   ;;  %v9416_v21 = vld [vmem:[%s13603_s5] ss:$16 sps:$4 sm:$0xff]   ;;  %vm7913_vm12 = vcmask 31744  }
 0x3d2   : > { %v11526_v34 = vpack.c.bf16 %v3047_v29, %v3045_v57  ;;  %v3048_v58 = vsel %vm3020_vm13, %v3002_v44, %v3034_v53  ;;  %vm3021_vm14 = vcmp.gt.f32.partialorder %v3004_v19, 0.0  ;;  %v3035_v43 = vmul.f32 0.01, %v3004_v19  ;;  %v9397_v32 = vld [vmem:[%s13603_s5 + $0x284] ss:$16 sps:$4 sm:$0xff]  }
 0x3d3   : > { %v3056_v1 = vpack.c.bf16 %v3048_v58, %v3048_v58  ;;  %v9418_v56 = vld [vmem:[%s13603_s5 + $0x4] ss:$16 sps:$4 sm:$0xff]   ;;  %v9401_v49 = vld [vmem:[%s13603_s5 + $0x260] ss:$16 sps:$4 sm:$0xff]   ;;  %vm7915_vm13 = vcmask 39936  }
 0x3d4   : > { %v3049_v2 = vsel %vm3021_vm14, %v3004_v19, %v3035_v43  ;;  %v9403_v0 = vld [vmem:[%s13603_s5 + $0x264] ss:$16 sps:$4 sm:$0xff]   ;;  %v9422_v50 = vld [vmem:[%s13603_s5 + $0x1e0] ss:$16 sps:$4 sm:$0xff]   ;;  %vm7917_vm14 = vcmask 48128  }
 0x3d5   : > { %v11528_v38 = vpack.c.bf16 %v3049_v2, %v3049_v2  ;;  %v11531_v35 = vsel %vm468_vm0, %v3056_v1, 0  ;;  %v9409_v63 = vld [vmem:[%s13603_s5 + $0x244] ss:$16 sps:$4 sm:$0xff]   ;;  %v9407_v24 = vld [vmem:[%s13603_s5 + $0x240] ss:$16 sps:$4 sm:$0xff]  }
 0x3d6   : > { %v9430_v62 = vld [vmem:[%s13603_s5 + $0x1c4] ss:$16 sps:$4 sm:$0xff]   ;;  %v9428_v10 = vld [vmem:[%s13603_s5 + $0x1c0] ss:$16 sps:$4 sm:$0xff]  }
 0x3d7   : > { %8319 = vmatprep.subr.msk.bf16.mxu0 %vm468_vm0, %v11528_v38  ;;  %8324 = vmatprep.subr.msk.bf16.mxu1 %vm468_vm0, %v11528_v38  ;;  %v9415_v16 = vld [vmem:[%s13603_s5 + $0x224] ss:$16 sps:$4 sm:$0xff]   ;;  %v9413_v13 = vld [vmem:[%s13603_s5 + $0x220] ss:$16 sps:$4 sm:$0xff]  }
 0x3d8   : > { %3084 = vmatpush1.bf16.msra.mxu0 %v11531_v35  ;;  %3140 = vmatpush1.bf16.msra.mxu1 %v11531_v35  ;;  %v9436_v33 = vld [vmem:[%s13603_s5 + $0x1a4] ss:$16 sps:$4 sm:$0xff]   ;;  %v9434_v44 = vld [vmem:[%s13603_s5 + $0x1a0] ss:$16 sps:$4 sm:$0xff]  }
 0x3d9   : > { %3085 = vmatprep.subr.bf16.mxu0 %v11526_v34  ;;  %3141 = vmatprep.subr.bf16.mxu1 %v11526_v34  ;;  %v9421_v23 = vld [vmem:[%s13603_s5 + $0x204] ss:$16 sps:$4 sm:$0xff]   ;;  %v9419_v45 = vld [vmem:[%s13603_s5 + $0x200] ss:$16 sps:$4 sm:$0xff]  }
 0x3da   : > { %v9442_v15 = vld [vmem:[%s13603_s5 + $0x184] ss:$16 sps:$4 sm:$0xff]   ;;  %v9440_v48 = vld [vmem:[%s13603_s5 + $0x180] ss:$16 sps:$4 sm:$0xff]  }
 0x3db   : > { %v9427_v36 = vld [vmem:[%s13603_s5 + $0x3e4] ss:$16 sps:$4 sm:$0xff]   ;;  %v9446_v19 = vld [vmem:[%s13603_s5 + $0x160] ss:$16 sps:$4 sm:$0xff]  }
 0x3dc   : > { %3086 = vmatpush1.bf16.msra.mxu0 %v11523_v41  ;;  %3142 = vmatpush1.bf16.msra.mxu1 %v11523_v41  ;;  %v9448_v52 = vld [vmem:[%s13603_s5 + $0x164] ss:$16 sps:$4 sm:$0xff]   ;;  %v9431_v29 = vld [vmem:[%s13603_s5 + $0x3c0] ss:$16 sps:$4 sm:$0xff]  }
 0x3dd   : > { %3087 = vmatprep.subr.bf16.mxu0 %v11516_v14  ;;  %3143 = vmatprep.subr.bf16.mxu1 %v11516_v14  ;;  %v9433_v53 = vld [vmem:[%s13603_s5 + $0x3c4] ss:$16 sps:$4 sm:$0xff]   ;;  %v9437_v43 = vld [vmem:[%s13603_s5 + $0x3a0] ss:$16 sps:$4 sm:$0xff]  }
 0x3de   : > { %v9454_v57 = vld [vmem:[%s13603_s5 + $0x144] ss:$16 sps:$4 sm:$0xff]   ;;  %v9458_v2 = vld [vmem:[%s13603_s5 + $0x120] ss:$16 sps:$4 sm:$0xff]  }
 0x3df   : > { %v9439_v18 = vld [vmem:[%s13603_s5 + $0x3a4] ss:$16 sps:$4 sm:$0xff]  }
 0x3e0   : > { %3088 = vmatpush1.bf16.msra.mxu0 %v11511_v8  ;;  %3144 = vmatpush1.bf16.msra.mxu1 %v11511_v8  ;;  %v9460_v58 = vld [vmem:[%s13603_s5 + $0x124] ss:$16 sps:$4 sm:$0xff]  }
 0x3e1   : > { %3089 = vmatprep.subr.bf16.mxu0 %v11501_v22  ;;  %3145 = vmatprep.subr.bf16.mxu1 %v11501_v22  ;;  %v9445_v1 = vld [vmem:[%s13603_s5 + $0x384] ss:$16 sps:$4 sm:$0xff]  }
 0x3e4   : > { %3090 = vmatpush1.bf16.msra.mxu0 %v11499_v28  ;;  %3146 = vmatpush1.bf16.msra.mxu1 %v11499_v28 }
 0x3e5   : > { %8329 = vmatprep.subr.msk.bf16.mxu0 %vm468_vm0, %v11528_v38  ;;  %8334 = vmatprep.subr.msk.bf16.mxu1 %vm468_vm0, %v11528_v38 }
 0x3e7   : > { %8320 = vmatmul.mubr.msk.bf16.vlgmr.msra.gmra.mxu0 %vm3065_vm15, %v9365_v6  ;;  %8325 = vmatmul.mubr.msk.bf16.vlgmr.msra.gmra.mxu1 %vm3065_vm15, %v9366_v26  ;;  %v9451_v6 = vld [vmem:[%s13603_s5 + $0x364] ss:$16 sps:$4 sm:$0xff]   ;;  %v9464_v26 = vld [vmem:[%s13603_s5 + $0x100] ss:$16 sps:$4 sm:$0xff]  }
 0x3e8   : > { %3196 = vmatpush1.bf16.msra.mxu0 %v11531_v35  ;;  %3252 = vmatpush1.bf16.msra.mxu1 %v11531_v35 }
 0x3e9   : > { %3197 = vmatprep.subr.bf16.mxu0 %v11526_v34  ;;  %3253 = vmatprep.subr.bf16.mxu1 %v11526_v34 }
 0x3ea   : > { %3219 = vmatprep.mubr.bf16.mxu0 %v10248_v20  ;;  %3275 = vmatprep.mubr.bf16.mxu1 %v10248_v20 }
 0x3ec   : > { %3198 = vmatpush1.bf16.msra.mxu0 %v11523_v41  ;;  %3254 = vmatpush1.bf16.msra.mxu1 %v11523_v41 }
 0x3ed   : > { %3199 = vmatprep.subr.bf16.mxu0 %v11516_v14  ;;  %3255 = vmatprep.subr.bf16.mxu1 %v11516_v14 }
 0x3f0   : > { %3200 = vmatpush1.bf16.msra.mxu0 %v11511_v8  ;;  %3256 = vmatpush1.bf16.msra.mxu1 %v11511_v8 }
 0x3f1   : > { %3201 = vmatprep.subr.bf16.mxu0 %v11501_v22  ;;  %3257 = vmatprep.subr.bf16.mxu1 %v11501_v22 }
 0x3f4   : > { %3202 = vmatpush1.bf16.msra.mxu0 %v11499_v28  ;;  %3258 = vmatpush1.bf16.msra.mxu1 %v11499_v28 }
 0x3f5   : > { %8339 = vmatprep.subr.msk.bf16.mxu0 %vm468_vm0, %v11528_v38  ;;  %8344 = vmatprep.subr.msk.bf16.mxu1 %vm468_vm0, %v11528_v38 }
 0x3f7   : > { %8330 = vmatmul.mubr.msk.bf16.vlgmr.msra.gmra.mxu0 %vm3065_vm15, %v9367_v46  ;;  %8335 = vmatmul.mubr.msk.bf16.vlgmr.msra.gmra.mxu1 %vm3065_vm15, %v9368_v60  ;;  %v9472_v46 = vld [vmem:[%s13603_s5 + $0x4e4] ss:$16 sps:$4 sm:$0xff]   ;;  %v9449_v60 = vld [vmem:[%s13603_s5 + $0x360] ss:$16 sps:$4 sm:$0xff]  }
 0x3f8   : > { %3308 = vmatpush1.bf16.msra.mxu0 %v11531_v35  ;;  %3364 = vmatpush1.bf16.msra.mxu1 %v11531_v35 }
 0x3f9   : > { %3309 = vmatprep.subr.bf16.mxu0 %v11526_v34  ;;  %3365 = vmatprep.subr.bf16.mxu1 %v11526_v34 }
 0x3fa   : > { %3331 = vmatprep.mubr.bf16.mxu0 %v10248_v20  ;;  %3387 = vmatprep.mubr.bf16.mxu1 %v10248_v20 }
 0x3fc   : > { %3310 = vmatpush1.bf16.msra.mxu0 %v11523_v41  ;;  %3366 = vmatpush1.bf16.msra.mxu1 %v11523_v41 }
 0x3fd   : > { %3311 = vmatprep.subr.bf16.mxu0 %v11516_v14  ;;  %3367 = vmatprep.subr.bf16.mxu1 %v11516_v14 }
 0x400   : > { %3312 = vmatpush1.bf16.msra.mxu0 %v11511_v8  ;;  %3368 = vmatpush1.bf16.msra.mxu1 %v11511_v8 }
 0x401   : > { %3313 = vmatprep.subr.bf16.mxu0 %v11501_v22  ;;  %3369 = vmatprep.subr.bf16.mxu1 %v11501_v22 }
 0x404   : > { %3314 = vmatpush1.bf16.msra.mxu0 %v11499_v28  ;;  %3370 = vmatpush1.bf16.msra.mxu1 %v11499_v28 }
 0x405   : > { %8349 = vmatprep.subr.msk.bf16.mxu0 %vm468_vm0, %v11528_v38  ;;  %8354 = vmatprep.subr.msk.bf16.mxu1 %vm468_vm0, %v11528_v38 }
 0x407   : > { %8340 = vmatmul.mubr.msk.bf16.vlgmr.msra.gmra.mxu0 %vm3065_vm15, %v9369_v5  ;;  %8345 = vmatmul.mubr.msk.bf16.vlgmr.msra.gmra.mxu1 %vm3065_vm15, %v9370_v11  ;;  %v9457_v5 = vld [vmem:[%s13603_s5 + $0x344] ss:$16 sps:$4 sm:$0xff]   ;;  %v9455_v11 = vld [vmem:[%s13603_s5 + $0x340] ss:$16 sps:$4 sm:$0xff]  }
 0x408   : > { %3420 = vmatpush1.bf16.msra.mxu0 %v11531_v35  ;;  %3476 = vmatpush1.bf16.msra.mxu1 %v11531_v35 }
 0x409   : > { %3421 = vmatprep.subr.bf16.mxu0 %v11526_v34  ;;  %3477 = vmatprep.subr.bf16.mxu1 %v11526_v34 }
 0x40a   : > { %3443 = vmatprep.mubr.bf16.mxu0 %v10248_v20  ;;  %3499 = vmatprep.mubr.bf16.mxu1 %v10248_v20 }
 0x40c   : > { %3422 = vmatpush1.bf16.msra.mxu0 %v11523_v41  ;;  %3478 = vmatpush1.bf16.msra.mxu1 %v11523_v41 }
 0x40d   : > { %3423 = vmatprep.subr.bf16.mxu0 %v11516_v14  ;;  %3479 = vmatprep.subr.bf16.mxu1 %v11516_v14 }
 0x410   : > { %3424 = vmatpush1.bf16.msra.mxu0 %v11511_v8  ;;  %3480 = vmatpush1.bf16.msra.mxu1 %v11511_v8 }
 0x411   : > { %3425 = vmatprep.subr.bf16.mxu0 %v11501_v22  ;;  %3481 = vmatprep.subr.bf16.mxu1 %v11501_v22 }
 0x414   : > { %3426 = vmatpush1.bf16.msra.mxu0 %v11499_v28  ;;  %3482 = vmatpush1.bf16.msra.mxu1 %v11499_v28 }
 0x415   : > { %8359 = vmatprep.subr.msk.bf16.mxu0 %vm468_vm0, %v11528_v38  ;;  %7024 = vmatprep.subr.bf16.mxu1 %v9374_v17  ;;  %v9466_v38 = vld [vmem:[%s13603_s5 + $0x104] ss:$16 sps:$4 sm:$0xff]  }
 0x416   : > { %v9463_v17 = vld [vmem:[%s13603_s5 + $0x324] ss:$16 sps:$4 sm:$0xff]  }
 0x417   : > { %8350 = vmatmul.mubr.msk.bf16.vlgmr.msra.gmra.mxu0 %vm3065_vm15, %v9371_v59  ;;  %8355 = vmatmul.mubr.msk.bf16.vlgmr.msra.gmra.mxu1 %vm3065_vm15, %v9378_v4  ;;  %v9461_v59 = vld [vmem:[%s13603_s5 + $0x320] ss:$16 sps:$4 sm:$0xff]   ;;  %v9469_v4 = vld [vmem:[%s13603_s5 + $0x304] ss:$16 sps:$4 sm:$0xff]  }
 0x418   : > { %3532 = vmatpush1.bf16.msra.mxu0 %v11531_v35  ;;  %3555 = vmatprep.mubr.bf16.mxu0 %v10248_v20  ;;  %v9386_v20 = vld [vmem:[%s13603_s5 + $0xa0] ss:$16 sps:$4 sm:$0xff]  }
 0x419   : > { %3533 = vmatprep.subr.bf16.mxu0 %v11526_v34  ;;  %7025 = vmatpush1.bf16.msra.mxu1 %v9372_v27  ;;  %v9452_v34 = vld [vmem:[%s13603_s5 + $0x140] ss:$16 sps:$4 sm:$0xff]  }
 0x41a   : > { %7026 = vmatprep.subr.bf16.mxu1 %v9382_v51  ;;  %v9443_v35 = vld [vmem:[%s13603_s5 + $0x380] ss:$16 sps:$4 sm:$0xff]   ;;  %v9475_v51 = vld [vmem:[%s13603_s5 + $0x6e4] ss:$16 sps:$4 sm:$0xff]  }
 0x41b   : > { %v9467_v27 = vld [vmem:[%s13603_s5 + $0x300] ss:$16 sps:$4 sm:$0xff]  }
 0x41c   : > { %3534 = vmatpush1.bf16.msra.mxu0 %v11523_v41  ;;  %v9425_v41 = vld [vmem:[%s13603_s5 + $0x3e0] ss:$16 sps:$4 sm:$0xff]  }
 0x41d   : > { %3535 = vmatprep.subr.bf16.mxu0 %v11516_v14  ;;  %7027 = vmatpush1.bf16.msra.mxu1 %v9380_v25  ;;  %v9424_v14 = vld [vmem:[%s13603_s5 + $0x1e4] ss:$16 sps:$4 sm:$0xff]  }
 0x41e   : > { %7028 = vmatprep.subr.bf16.mxu1 %v9388_v30 }
 0x420   : > { %3536 = vmatpush1.bf16.msra.mxu0 %v11511_v8  ;;  %v9389_v8 = vld [vmem:[%s13603_s5 + $0x2a0] ss:$16 sps:$4 sm:$0xff]  }
 0x421   : > { %3537 = vmatprep.subr.bf16.mxu0 %v11501_v22  ;;  %7029 = vmatpush1.bf16.msra.mxu1 %v9386_v20  ;;  %v9375_v22 = vld [vmem:[%s13603_s5 + $0x2e0] ss:$16 sps:$4 sm:$0xff]  }
 0x422   : > { %7030 = vmatprep.subr.bf16.mxu1 %v9394_v3 }
 0x424   : > { %3538 = vmatpush1.bf16.msra.mxu0 %v11499_v28  ;;  %v9383_v28 = vld [vmem:[%s13603_s5 + $0x2c0] ss:$16 sps:$4 sm:$0xff]  }
 0x425   : > { %7067 = vmatprep.subr.bf16.mxu0 %v9377_v55  ;;  %7031 = vmatpush1.bf16.msra.mxu1 %v9392_v7 }
 0x426   : > { %7032 = vmatprep.subr.bf16.mxu1 %v9400_v37 }
 0x427   : > { %8360 = vmatmul.mubr.msk.bf16.vlgmr.msra.gmra.mxu0 %vm3065_vm15, %v9379_v40  ;;  %vm7919_vm15 = vcmask 56320  }
 0x428   : > { %7068 = vmatpush1.bf16.msra.mxu0 %v9375_v22 }
 0x429   : > { %7069 = vmatprep.subr.bf16.mxu0 %v9385_v31  ;;  %7033 = vmatpush1.bf16.msra.mxu1 %v9398_v61  ;;  %v9470_v61 = vld [vmem:[%s13603_s5 + $0x4e0] ss:$16 sps:$4 sm:$0xff]  }
 0x42a   : > { %7034 = vmatprep.subr.bf16.mxu1 %v9406_v9  ;;  %v9473_v9 = vld [vmem:[%s13603_s5 + $0x6e0] ss:$16 sps:$4 sm:$0xff]  }
 0x42c   : > { %7070 = vmatpush1.bf16.msra.mxu0 %v9383_v28 }
 0x42d   : > { %7071 = vmatprep.subr.bf16.mxu0 %v9391_v39  ;;  %7035 = vmatpush1.bf16.msra.mxu1 %v9404_v42  ;;  %v9478_v42 = vld [vmem:[%s13603_s5 + $0x4c4] ss:$16 sps:$4 sm:$0xff]  }
 0x42e   : > { %7036 = vmatprep.subr.bf16.mxu1 %v9412_v12  ;;  %v9481_v12 = vld [vmem:[%s13603_s5 + $0x6c4] ss:$16 sps:$4 sm:$0xff]  }
 0x430   : > { %7072 = vmatpush1.bf16.msra.mxu0 %v9389_v8  ;;  %v9476_v8 = vld [vmem:[%s13603_s5 + $0x4c0] ss:$16 sps:$4 sm:$0xff]  }
 0x431   : > { %7073 = vmatprep.subr.bf16.mxu0 %v9397_v32  ;;  %7037 = vmatpush1.bf16.msra.mxu1 %v9410_v47  ;;  %v9479_v32 = vld [vmem:[%s13603_s5 + $0x6c0] ss:$16 sps:$4 sm:$0xff]   ;;  %v9484_v47 = vld [vmem:[%s13603_s5 + $0x4a4] ss:$16 sps:$4 sm:$0xff]  }
 0x432   : > { %7038 = vmatprep.subr.bf16.mxu1 %v9418_v56  ;;  %v9487_v56 = vld [vmem:[%s13603_s5 + $0x6a4] ss:$16 sps:$4 sm:$0xff]  }
 0x434   : > { %7074 = vmatpush1.bf16.msra.mxu0 %v9395_v54  ;;  %v9482_v54 = vld [vmem:[%s13603_s5 + $0x4a0] ss:$16 sps:$4 sm:$0xff]  }
 0x435   : > { %7075 = vmatprep.subr.bf16.mxu0 %v9403_v0  ;;  %7039 = vmatpush1.bf16.msra.mxu1 %v9416_v21  ;;  %v9485_v0 = vld [vmem:[%s13603_s5 + $0x6a0] ss:$16 sps:$4 sm:$0xff]   ;;  %v9490_v21 = vld [vmem:[%s13603_s5 + $0x484] ss:$16 sps:$4 sm:$0xff]  }
 0x436   : > { %7040 = vmatprep.subr.bf16.mxu1 %v9424_v14  ;;  %v9493_v14 = vld [vmem:[%s13603_s5 + $0x684] ss:$16 sps:$4 sm:$0xff]  }
 0x438   : > { %7076 = vmatpush1.bf16.msra.mxu0 %v9401_v49 }
 0x439   : > { %7077 = vmatprep.subr.bf16.mxu0 %v9409_v63  ;;  %7041 = vmatpush2.bf16.msra.mxu1 %v9422_v50 }
 0x43a   : > { %7042 = vmatprep.subr.bf16.mxu1 %v9430_v62 }
 0x43c   : > { %7078 = vmatpush1.bf16.msra.mxu0 %v9407_v24  ;;  %v9488_v24 = vld [vmem:[%s13603_s5 + $0x480] ss:$16 sps:$4 sm:$0xff]  }
 0x43d   : > { %7079 = vmatprep.subr.bf16.mxu0 %v9415_v16  ;;  %7043 = vmatpush2.bf16.msra.mxu1 %v9428_v10  ;;  %v9491_v16 = vld [vmem:[%s13603_s5 + $0x680] ss:$16 sps:$4 sm:$0xff]   ;;  %v9496_v10 = vld [vmem:[%s13603_s5 + $0x464] ss:$16 sps:$4 sm:$0xff]  }
 0x43e   : > { %7044 = vmatprep.subr.bf16.mxu1 %v9436_v33  ;;  %v9499_v33 = vld [vmem:[%s13603_s5 + $0x664] ss:$16 sps:$4 sm:$0xff]  }
 0x440   : > { %7080 = vmatpush1.bf16.msra.mxu0 %v9413_v13 }
 0x441   : > { %7081 = vmatprep.subr.bf16.mxu0 %v9421_v23  ;;  %7045 = vmatpush2.bf16.msra.mxu1 %v9434_v44 }
 0x442   : > { %7046 = vmatprep.subr.bf16.mxu1 %v9442_v15 }
 0x444   : > { %7082 = vmatpush1.bf16.msra.mxu0 %v9419_v45  ;;  %v9494_v45 = vld [vmem:[%s13603_s5 + $0x460] ss:$16 sps:$4 sm:$0xff]  }
 0x445   : > { %7083 = vmatprep.subr.bf16.mxu0 %v9427_v36  ;;  %7047 = vmatpush2.bf16.msra.mxu1 %v9440_v48  ;;  %v9497_v36 = vld [vmem:[%s13603_s5 + $0x660] ss:$16 sps:$4 sm:$0xff]  }
 0x446   : > { %7048 = vmatprep.subr.bf16.mxu1 %v9448_v52 }
 0x448   : > { %7084 = vmatpush2.bf16.msra.mxu0 %v9425_v41  ;;  %v9502_v41 = vld [vmem:[%s13603_s5 + $0x444] ss:$16 sps:$4 sm:$0xff]  }
 0x449   : > { %7085 = vmatprep.subr.bf16.mxu0 %v9433_v53  ;;  %7049 = vmatpush2.bf16.msra.mxu1 %v9446_v19  ;;  %v9505_v53 = vld [vmem:[%s13603_s5 + $0x644] ss:$16 sps:$4 sm:$0xff]   ;;  %v9500_v19 = vld [vmem:[%s13603_s5 + $0x440] ss:$16 sps:$4 sm:$0xff]  }
 0x44a   : > { %7050 = vmatprep.subr.bf16.mxu1 %v9454_v57  ;;  %v9503_v57 = vld [vmem:[%s13603_s5 + $0x640] ss:$16 sps:$4 sm:$0xff]  }
 0x44c   : > { %7086 = vmatpush2.bf16.msra.mxu0 %v9431_v29  ;;  %v9508_v29 = vld [vmem:[%s13603_s5 + $0x424] ss:$16 sps:$4 sm:$0xff]  }
 0x44d   : > { %7087 = vmatprep.subr.bf16.mxu0 %v9439_v18  ;;  %7051 = vmatpush2.bf16.msra.mxu1 %v9452_v34  ;;  %v9511_v18 = vld [vmem:[%s13603_s5 + $0x624] ss:$16 sps:$4 sm:$0xff]   ;;  %v9506_v34 = vld [vmem:[%s13603_s5 + $0x420] ss:$16 sps:$4 sm:$0xff]  }
 0x44e   : > { %7052 = vmatprep.subr.bf16.mxu1 %v9460_v58  ;;  %v9509_v58 = vld [vmem:[%s13603_s5 + $0x620] ss:$16 sps:$4 sm:$0xff]  }
 0x450   : > { %7088 = vmatpush2.bf16.msra.mxu0 %v9437_v43  ;;  %v9514_v43 = vld [vmem:[%s13603_s5 + $0x404] ss:$16 sps:$4 sm:$0xff]  }
 0x451   : > { %7089 = vmatprep.subr.bf16.mxu0 %v9445_v1  ;;  %7053 = vmatpush2.bf16.msra.mxu1 %v9458_v2  ;;  %v9517_v1 = vld [vmem:[%s13603_s5 + $0x604] ss:$16 sps:$4 sm:$0xff]   ;;  %v9512_v2 = vld [vmem:[%s13603_s5 + $0x400] ss:$16 sps:$4 sm:$0xff]  }
 0x452   : > { %7054 = vmatprep.subr.bf16.mxu1 %v9466_v38  ;;  %v9515_v38 = vld [vmem:[%s13603_s5 + $0x600] ss:$16 sps:$4 sm:$0xff]  }
 0x454   : > { %7090 = vmatpush2.bf16.msra.mxu0 %v9443_v35  ;;  %v9520_v35 = vld [vmem:[%s13603_s5 + $0x5e4] ss:$16 sps:$4 sm:$0xff]  }
 0x455   : > { %7091 = vmatprep.subr.bf16.mxu0 %v9451_v6  ;;  %7055 = vmatpush2.bf16.msra.mxu1 %v9464_v26  ;;  %v9523_v6 = vld [vmem:[%s13603_s5 + $0x7e4] ss:$16 sps:$4 sm:$0xff]  }
 0x456   : > { %7110 = vmatprep.subr.bf16.mxu1 %v9472_v46  ;;  %v9518_v46 = vld [vmem:[%s13603_s5 + $0x5e0] ss:$16 sps:$4 sm:$0xff]  }
 0x458   : > { %7092 = vmatpush2.bf16.msra.mxu0 %v9449_v60  ;;  %v9521_v60 = vld [vmem:[%s13603_s5 + $0x7e0] ss:$16 sps:$4 sm:$0xff]  }
 0x459   : > { %7093 = vmatprep.subr.bf16.mxu0 %v9457_v5  ;;  %v9526_v5 = vld [vmem:[%s13603_s5 + $0x5c4] ss:$16 sps:$4 sm:$0xff]  }
 0x45c   : > { %7094 = vmatpush2.bf16.msra.mxu0 %v9455_v11  ;;  %v9529_v11 = vld [vmem:[%s13603_s5 + $0x7c4] ss:$16 sps:$4 sm:$0xff]  }
 0x45d   : > { %7095 = vmatprep.subr.bf16.mxu0 %v9463_v17 }
 0x460   : > { %7096 = vmatpush2.bf16.msra.mxu0 %v9461_v59  ;;  %v9524_v59 = vld [vmem:[%s13603_s5 + $0x5c0] ss:$16 sps:$4 sm:$0xff]  }
 0x461   : > { %7097 = vmatprep.subr.bf16.mxu0 %v9469_v4  ;;  %v9527_v4 = vld [vmem:[%s13603_s5 + $0x7c0] ss:$16 sps:$4 sm:$0xff]  }
 0x464   : > { %7098 = vmatpush2.bf16.msra.mxu0 %v9467_v27  ;;  %v9532_v27 = vld [vmem:[%s13603_s5 + $0x5a4] ss:$16 sps:$4 sm:$0xff]  }
 0x465   : > { %7153 = vmatprep.subr.bf16.mxu0 %v9475_v51  ;;  %v9535_v51 = vld [vmem:[%s13603_s5 + $0x7a4] ss:$16 sps:$4 sm:$0xff]  }
 0x4a7   : > { %v3109_v25 = vpop.f32.mrf.mxu0  ;;  %v3165_v30 = vpop.f32.mrf.mxu1 }
 0x4a9   : > { %v3111_v20 = vpop.f32.mrf.mxu0  ;;  %v3167_v3 = vpop.f32.mrf.mxu1 }
 0x4ab   : > { %v3113_v55 = vpop.f32.mrf.mxu0  ;;  %v3169_v7 = vpop.f32.mrf.mxu1 }
 0x4ac   : > { %v11865_v28 = vpack.c.bf16 %v3113_v55, %v3109_v25  ;;  %v11867_v39 = vpack.c.bf16 %v3169_v7, %v3165_v30  ;;  %v9530_v30 = vld [vmem:[%s13603_s5 + $0x5a0] ss:$16 sps:$4 sm:$0xff]   ;;  %v9541_v55 = vld [vmem:[%s13603_s5 + $0x784] ss:$16 sps:$4 sm:$0xff]  }
 0x4ad   : > { %v3115_v37 = vpop.f32.mrf.mxu0  ;;  %v3171_v40 = vpop.f32.mrf.mxu1 }
 0x4ae   : > { %v11855_v22 = vpack.c.bf16 %v3115_v37, %v3111_v20  ;;  %v11857_v31 = vpack.c.bf16 %v3171_v40, %v3167_v3  ;;  %v9533_v20 = vld [vmem:[%s13603_s5 + $0x7a0] ss:$16 sps:$4 sm:$0xff]   ;;  %v9538_v3 = vld [vmem:[%s13603_s5 + $0x584] ss:$16 sps:$4 sm:$0xff]  }
 0x4af   : > { %v9536_v40 = vld [vmem:[%s13603_s5 + $0x580] ss:$16 sps:$4 sm:$0xff]  }
 0x4b0   : > { %7056 = vmatprep.mubr.bf16.mxu1 %v11855_v22  ;;  %7099 = vmatprep.mubr.bf16.mxu0 %v11857_v31 }
 0x4b1   : > { %7057 = vmatmul.mubr.bf16.vlgmr.msra.gmra.mxu1 %v11865_v28  ;;  %7100 = vmatmul.mubr.bf16.vlgmr.msra.gmra.mxu0 %v11867_v39 }
 0x4b2   : > { %7111 = vmatpush1.bf16.msra.mxu1 %v9470_v61  ;;  %7154 = vmatpush1.bf16.msra.mxu0 %v9473_v9  ;;  %v9539_v61 = vld [vmem:[%s13603_s5 + $0x780] ss:$16 sps:$4 sm:$0xff]   ;;  %v9544_v9 = vld [vmem:[%s13603_s5 + $0x564] ss:$16 sps:$4 sm:$0xff]  }
 0x4b3   : > { %7112 = vmatprep.subr.bf16.mxu1 %v9478_v42  ;;  %7155 = vmatprep.subr.bf16.mxu0 %v9481_v12  ;;  %v9547_v42 = vld [vmem:[%s13603_s5 + $0x764] ss:$16 sps:$4 sm:$0xff]  }
 0x4b6   : > { %7113 = vmatpush1.bf16.msra.mxu1 %v9476_v8  ;;  %7156 = vmatpush1.bf16.msra.mxu0 %v9479_v32  ;;  %v9542_v8 = vld [vmem:[%s13603_s5 + $0x560] ss:$16 sps:$4 sm:$0xff]  }
 0x4b7   : > { %7114 = vmatprep.subr.bf16.mxu1 %v9484_v47  ;;  %7157 = vmatprep.subr.bf16.mxu0 %v9487_v56  ;;  %v11903_v49 = vpop.f32.mrf.mxu0  ;;  %v11905_v63 = vpop.f32.mrf.mxu1  ;;  %v9545_v32 = vld [vmem:[%s13603_s5 + $0x760] ss:$16 sps:$4 sm:$0xff]   ;;  %v9550_v47 = vld [vmem:[%s13603_s5 + $0x544] ss:$16 sps:$4 sm:$0xff]  }
 0x4b8   : > { %v9553_v56 = vld [vmem:[%s13603_s5 + $0x744] ss:$16 sps:$4 sm:$0xff]  }
 0x4b9   : > { %v3223_v50 = vpop.f32.mrf.mxu0  ;;  %v3279_v62 = vpop.f32.mrf.mxu1 }
 0x4ba   : > { %7115 = vmatpush1.bf16.msra.mxu1 %v9482_v54  ;;  %7158 = vmatpush1.bf16.msra.mxu0 %v9485_v0 }
 0x4bb   : > { %7116 = vmatprep.subr.bf16.mxu1 %v9490_v21  ;;  %7159 = vmatprep.subr.bf16.mxu0 %v9493_v14  ;;  %v11919_v13 = vpop.f32.mrf.mxu0  ;;  %v11921_v23 = vpop.f32.mrf.mxu1  ;;  %v9548_v21 = vld [vmem:[%s13603_s5 + $0x540] ss:$16 sps:$4 sm:$0xff]  }
 0x4bc   : > { %v9551_v14 = vld [vmem:[%s13603_s5 + $0x740] ss:$16 sps:$4 sm:$0xff]  }
 0x4bd   : > { %v3227_v44 = vpop.f32.mrf.mxu0  ;;  %v3283_v15 = vpop.f32.mrf.mxu1 }
 0x4be   : > { %7117 = vmatpush1.bf16.msra.mxu1 %v9488_v24  ;;  %7160 = vmatpush1.bf16.msra.mxu0 %v9491_v16  ;;  %v11929_v48 = vpack.c.bf16 %v3227_v44, %v3223_v50  ;;  %v11931_v52 = vpack.c.bf16 %v3283_v15, %v3279_v62  ;;  %v9556_v50 = vld [vmem:[%s13603_s5 + $0x524] ss:$16 sps:$4 sm:$0xff]  }
 0x4bf   : > { %7118 = vmatprep.subr.bf16.mxu1 %v9496_v10  ;;  %7161 = vmatprep.subr.bf16.mxu0 %v9499_v33  ;;  %v9559_v62 = vld [vmem:[%s13603_s5 + $0x724] ss:$16 sps:$4 sm:$0xff]   ;;  %v9554_v10 = vld [vmem:[%s13603_s5 + $0x520] ss:$16 sps:$4 sm:$0xff]  }
 0x4c0   : > { %7142 = vmatprep.mubr.bf16.mxu1 %v11929_v48  ;;  %7185 = vmatprep.mubr.bf16.mxu0 %v11931_v52  ;;  %v9557_v33 = vld [vmem:[%s13603_s5 + $0x720] ss:$16 sps:$4 sm:$0xff]   ;;  %v9562_v44 = vld [vmem:[%s13603_s5 + $0x504] ss:$16 sps:$4 sm:$0xff]  }
 0x4c1   : > { %v9565_v15 = vld [vmem:[%s13603_s5 + $0x704] ss:$16 sps:$4 sm:$0xff]  }
 0x4c2   : > { %7119 = vmatpush1.bf16.msra.mxu1 %v9494_v45  ;;  %7162 = vmatpush1.bf16.msra.mxu0 %v9497_v36 }
 0x4c3   : > { %7120 = vmatprep.subr.bf16.mxu1 %v9502_v41  ;;  %7163 = vmatprep.subr.bf16.mxu0 %v9505_v53  ;;  %v9560_v53 = vld [vmem:[%s13603_s5 + $0x500] ss:$16 sps:$4 sm:$0xff]  }
 0x4c6   : > { %7121 = vmatpush1.bf16.msra.mxu1 %v9500_v19  ;;  %7164 = vmatpush1.bf16.msra.mxu0 %v9503_v57  ;;  %v9563_v19 = vld [vmem:[%s13603_s5 + $0x700] ss:$16 sps:$4 sm:$0xff]   ;;  %v9568_v57 = vld [vmem:[%s13603_s5 + $0x8e4] ss:$16 sps:$4 sm:$0xff]  }
 0x4c7   : > { %7122 = vmatprep.subr.bf16.mxu1 %v9508_v29  ;;  %7165 = vmatprep.subr.bf16.mxu0 %v9511_v18  ;;  %v11977_v26 = vpop.f32.mrf.mxu0  ;;  %v12049_v54 = vpop.f32.mrf.mxu1  ;;  %v9571_v29 = vld [vmem:[%s13603_s5 + $0xae4] ss:$16 sps:$4 sm:$0xff]  }
 0x4c9   : > { %v11991_v17 = vpop.f32.mrf.mxu0  ;;  %v3391_v24 = vpop.f32.mrf.mxu1 }
 0x4ca   : > { %7123 = vmatpush1.bf16.msra.mxu1 %v9506_v34  ;;  %7166 = vmatpush1.bf16.msra.mxu0 %v9509_v58 }
 0x4cb   : > { %7124 = vmatprep.subr.bf16.mxu1 %v9514_v43  ;;  %7167 = vmatprep.subr.bf16.mxu0 %v9517_v1  ;;  %v12005_v25 = vpop.f32.mrf.mxu0  ;;  %v12079_v36 = vpop.f32.mrf.mxu1  ;;  %v9566_v43 = vld [vmem:[%s13603_s5 + $0x8e0] ss:$16 sps:$4 sm:$0xff]  }
 0x4cc   : > { %v9569_v1 = vld [vmem:[%s13603_s5 + $0xae0] ss:$16 sps:$4 sm:$0xff]  }
 0x4cd   : > { %v12019_v7 = vpop.f32.mrf.mxu0  ;;  %v3395_v58 = vpop.f32.mrf.mxu1 }
 0x4ce   : > { %7125 = vmatpush1.bf16.msra.mxu1 %v9512_v2  ;;  %7168 = vmatpush1.bf16.msra.mxu0 %v9515_v38  ;;  %v12105_v2 = vpack.c.bf16 %v11919_v13, %v11903_v49  ;;  %v12109_v38 = vpack.c.bf16 %v11921_v23, %v11905_v63  ;;  %v12121_v49 = vpack.c.bf16 %v3395_v58, %v3391_v24  ;;  %v9572_v63 = vld [vmem:[%s13603_s5 + $0x8c0] ss:$16 sps:$4 sm:$0xff]   ;;  %v9580_v23 = vld [vmem:[%s13603_s5 + $0x8a4] ss:$16 sps:$4 sm:$0xff]  }
 0x4cf   : > { %7126 = vmatprep.subr.bf16.mxu1 %v9520_v35  ;;  %7169 = vmatprep.subr.bf16.mxu0 %v9523_v6  ;;  %v9574_v35 = vld [vmem:[%s13603_s5 + $0x8c4] ss:$16 sps:$4 sm:$0xff]   ;;  %v9575_v13 = vld [vmem:[%s13603_s5 + $0xac0] ss:$16 sps:$4 sm:$0xff]  }
 0x4d0   : > { %v9577_v6 = vld [vmem:[%s13603_s5 + $0xac4] ss:$16 sps:$4 sm:$0xff]   ;;  %v9614_v24 = vld [vmem:[%s13603_s5 + $0x9e0] ss:$16 sps:$4 sm:$0xff]  }
 0x4d1   : > { %v9637_v58 = vld [vmem:[%s13603_s5 + $0xb84] ss:$16 sps:$4 sm:$0xff]  }
 0x4d2   : > { %7127 = vmatpush2.bf16.msra.mxu1 %v9518_v46  ;;  %7170 = vmatpush2.bf16.msra.mxu0 %v9521_v60  ;;  %v12119_v46 = vpack.c.bf16 %v12019_v7, %v11991_v17  ;;  %v9583_v60 = vld [vmem:[%s13603_s5 + $0xaa4] ss:$16 sps:$4 sm:$0xff]  }
 0x4d3   : > { %7128 = vmatprep.subr.bf16.mxu1 %v9526_v5  ;;  %7171 = vmatprep.subr.bf16.mxu0 %v9529_v11  ;;  %v9578_v5 = vld [vmem:[%s13603_s5 + $0x8a0] ss:$16 sps:$4 sm:$0xff]   ;;  %v9586_v17 = vld [vmem:[%s13603_s5 + $0x884] ss:$16 sps:$4 sm:$0xff]  }
 0x4d4   : > { %v9581_v11 = vld [vmem:[%s13603_s5 + $0xaa0] ss:$16 sps:$4 sm:$0xff]   ;;  %v9601_v7 = vld [vmem:[%s13603_s5 + $0xa44] ss:$16 sps:$4 sm:$0xff]  }
 0x4d6   : > { %7129 = vmatpush2.bf16.msra.mxu1 %v9524_v59  ;;  %7172 = vmatpush2.bf16.msra.mxu0 %v9527_v4  ;;  %v9589_v59 = vld [vmem:[%s13603_s5 + $0xa84] ss:$16 sps:$4 sm:$0xff]   ;;  %v9584_v4 = vld [vmem:[%s13603_s5 + $0x880] ss:$16 sps:$4 sm:$0xff]  }
 0x4d7   : > { %7130 = vmatprep.subr.bf16.mxu1 %v9532_v27  ;;  %7173 = vmatprep.subr.bf16.mxu0 %v9535_v51  ;;  %v12021_v37 = vpop.f32.mrf.mxu0  ;;  %v9587_v27 = vld [vmem:[%s13603_s5 + $0xa80] ss:$16 sps:$4 sm:$0xff]   ;;  %v9592_v51 = vld [vmem:[%s13603_s5 + $0x864] ss:$16 sps:$4 sm:$0xff]  }
 0x4d9   : > { %v12035_v12 = vpop.f32.mrf.mxu0 }
 0x4da   : > { %7131 = vmatpush2.bf16.msra.mxu1 %v9530_v30  ;;  %7174 = vmatpush2.bf16.msra.mxu0 %v9533_v20  ;;  %v9595_v30 = vld [vmem:[%s13603_s5 + $0xa64] ss:$16 sps:$4 sm:$0xff]   ;;  %v9590_v20 = vld [vmem:[%s13603_s5 + $0x860] ss:$16 sps:$4 sm:$0xff]  }
 0x4db   : > { %7132 = vmatprep.subr.bf16.mxu1 %v9538_v3  ;;  %7175 = vmatprep.subr.bf16.mxu0 %v9541_v55  ;;  %v12051_v0 = vpop.f32.mrf.mxu0  ;;  %v9593_v3 = vld [vmem:[%s13603_s5 + $0xa60] ss:$16 sps:$4 sm:$0xff]   ;;  %v9598_v55 = vld [vmem:[%s13603_s5 + $0x844] ss:$16 sps:$4 sm:$0xff]  }
 0x4dd   : > { %v12065_v16 = vpop.f32.mrf.mxu0 }
 0x4de   : > { %7133 = vmatpush2.bf16.msra.mxu1 %v9536_v40  ;;  %7176 = vmatpush2.bf16.msra.mxu0 %v9539_v61  ;;  %v9596_v40 = vld [vmem:[%s13603_s5 + $0x840] ss:$16 sps:$4 sm:$0xff]  }
 0x4df   : > { %7134 = vmatprep.subr.bf16.mxu1 %v9544_v9  ;;  %7177 = vmatprep.subr.bf16.mxu0 %v9547_v42  ;;  %v9599_v61 = vld [vmem:[%s13603_s5 + $0xa40] ss:$16 sps:$4 sm:$0xff]   ;;  %v9604_v9 = vld [vmem:[%s13603_s5 + $0x824] ss:$16 sps:$4 sm:$0xff]  }
 0x4e0   : > { %v9607_v42 = vld [vmem:[%s13603_s5 + $0xa24] ss:$16 sps:$4 sm:$0xff]  }
 0x4e2   : > { %7135 = vmatpush2.bf16.msra.mxu1 %v9542_v8  ;;  %7178 = vmatpush2.bf16.msra.mxu0 %v9545_v32  ;;  %v9602_v8 = vld [vmem:[%s13603_s5 + $0x820] ss:$16 sps:$4 sm:$0xff]  }
 0x4e3   : > { %7136 = vmatprep.subr.bf16.mxu1 %v9550_v47  ;;  %7179 = vmatprep.subr.bf16.mxu0 %v9553_v56  ;;  %v9605_v32 = vld [vmem:[%s13603_s5 + $0xa20] ss:$16 sps:$4 sm:$0xff]   ;;  %v9610_v47 = vld [vmem:[%s13603_s5 + $0x804] ss:$16 sps:$4 sm:$0xff]  }
 0x4e4   : > { %v9613_v56 = vld [vmem:[%s13603_s5 + $0xa04] ss:$16 sps:$4 sm:$0xff]  }
 0x4e6   : > { %7137 = vmatpush2.bf16.msra.mxu1 %v9548_v21  ;;  %7180 = vmatpush2.bf16.msra.mxu0 %v9551_v14  ;;  %v9608_v21 = vld [vmem:[%s13603_s5 + $0x800] ss:$16 sps:$4 sm:$0xff]  }
 0x4e7   : > { %7138 = vmatprep.subr.bf16.mxu1 %v9556_v50  ;;  %7181 = vmatprep.subr.bf16.mxu0 %v9559_v62  ;;  %v3557_v45 = vpop.f32.mrf.mxu0  ;;  %v9611_v14 = vld [vmem:[%s13603_s5 + $0xa00] ss:$16 sps:$4 sm:$0xff]   ;;  %v9616_v50 = vld [vmem:[%s13603_s5 + $0x9e4] ss:$16 sps:$4 sm:$0xff]  }
 0x4e8   : > { %v9619_v62 = vld [vmem:[%s13603_s5 + $0xbe4] ss:$16 sps:$4 sm:$0xff]  }
 0x4e9   : > { %v12081_v41 = vpop.f32.mrf.mxu0 }
 0x4ea   : > { %7139 = vmatpush2.bf16.msra.mxu1 %v9554_v10  ;;  %7182 = vmatpush2.bf16.msra.mxu0 %v9557_v33  ;;  %v9617_v10 = vld [vmem:[%s13603_s5 + $0xbe0] ss:$16 sps:$4 sm:$0xff]   ;;  %v9622_v33 = vld [vmem:[%s13603_s5 + $0x9c4] ss:$16 sps:$4 sm:$0xff]  }
 0x4eb   : > { %7140 = vmatprep.subr.bf16.mxu1 %v9562_v44  ;;  %7183 = vmatprep.subr.bf16.mxu0 %v9565_v15  ;;  %v3561_v18 = vpop.f32.mrf.mxu0  ;;  %v9625_v44 = vld [vmem:[%s13603_s5 + $0xbc4] ss:$16 sps:$4 sm:$0xff]   ;;  %v9620_v15 = vld [vmem:[%s13603_s5 + $0x9c0] ss:$16 sps:$4 sm:$0xff]  }
 0x4ec   : > { %v12095_v34 = vpack.c.bf16 %v3561_v18, %v3557_v45  ;;  %v9623_v45 = vld [vmem:[%s13603_s5 + $0xbc0] ss:$16 sps:$4 sm:$0xff]   ;;  %v9634_v18 = vld [vmem:[%s13603_s5 + $0x984] ss:$16 sps:$4 sm:$0xff]  }
 0x4ee   : > { %7141 = vmatpush2.bf16.msra.mxu1 %v9560_v53  ;;  %7184 = vmatpush2.bf16.msra.mxu0 %v9563_v19  ;;  %v9628_v53 = vld [vmem:[%s13603_s5 + $0x9a4] ss:$16 sps:$4 sm:$0xff]  }
 0x4ef   : > { %7196 = vmatprep.subr.bf16.mxu1 %v9568_v57  ;;  %7239 = vmatprep.subr.bf16.mxu0 %v9571_v29  ;;  %v9631_v19 = vld [vmem:[%s13603_s5 + $0xba4] ss:$16 sps:$4 sm:$0xff]   ;;  %v9626_v57 = vld [vmem:[%s13603_s5 + $0x9a0] ss:$16 sps:$4 sm:$0xff]  }
 0x4f0   : > { %v9629_v29 = vld [vmem:[%s13603_s5 + $0xba0] ss:$16 sps:$4 sm:$0xff]  }
 0x4f1   : > { %7143 = vmatmul.mubr.bf16.vlgmr.msra.gmra.mxu1 %v12105_v2  ;;  %7186 = vmatmul.mubr.bf16.vlgmr.msra.gmra.mxu0 %v12109_v38 }
 0x4f2   : > { %7197 = vmatpush1.bf16.msra.mxu1 %v9566_v43  ;;  %7240 = vmatpush1.bf16.msra.mxu0 %v9569_v1  ;;  %v9632_v43 = vld [vmem:[%s13603_s5 + $0x980] ss:$16 sps:$4 sm:$0xff]  }
 0x4f3   : > { %7198 = vmatprep.subr.bf16.mxu1 %v9574_v35  ;;  %7241 = vmatprep.subr.bf16.mxu0 %v9577_v6  ;;  %v9635_v1 = vld [vmem:[%s13603_s5 + $0xb80] ss:$16 sps:$4 sm:$0xff]   ;;  %v9640_v35 = vld [vmem:[%s13603_s5 + $0x964] ss:$16 sps:$4 sm:$0xff]  }
 0x4f4   : > { %7228 = vmatprep.mubr.bf16.mxu1 %v12119_v46  ;;  %7271 = vmatprep.mubr.bf16.mxu0 %v12121_v49  ;;  %v9643_v6 = vld [vmem:[%s13603_s5 + $0xb64] ss:$16 sps:$4 sm:$0xff]  }
 0x4f6   : > { %7199 = vmatpush1.bf16.msra.mxu1 %v9572_v63  ;;  %7242 = vmatpush1.bf16.msra.mxu0 %v9575_v13  ;;  %v9638_v63 = vld [vmem:[%s13603_s5 + $0x960] ss:$16 sps:$4 sm:$0xff]  }
 0x4f7   : > { %7200 = vmatprep.subr.bf16.mxu1 %v9580_v23  ;;  %7243 = vmatprep.subr.bf16.mxu0 %v9583_v60  ;;  %v9641_v13 = vld [vmem:[%s13603_s5 + $0xb60] ss:$16 sps:$4 sm:$0xff]   ;;  %v9646_v23 = vld [vmem:[%s13603_s5 + $0x944] ss:$16 sps:$4 sm:$0xff]  }
 0x4f8   : > { %v9649_v60 = vld [vmem:[%s13603_s5 + $0xb44] ss:$16 sps:$4 sm:$0xff]  }
 0x4fa   : > { %7201 = vmatpush1.bf16.msra.mxu1 %v9578_v5  ;;  %7244 = vmatpush1.bf16.msra.mxu0 %v9581_v11  ;;  %v12271_v5 = vpop.f32.mrf.mxu1  ;;  %v9644_v11 = vld [vmem:[%s13603_s5 + $0x940] ss:$16 sps:$4 sm:$0xff]  }
 0x4fb   : > { %7202 = vmatprep.subr.bf16.mxu1 %v9586_v17  ;;  %7245 = vmatprep.subr.bf16.mxu0 %v9589_v59  ;;  %v9647_v17 = vld [vmem:[%s13603_s5 + $0xb40] ss:$16 sps:$4 sm:$0xff]   ;;  %v9652_v59 = vld [vmem:[%s13603_s5 + $0x924] ss:$16 sps:$4 sm:$0xff]  }
 0x4fe   : > { %7203 = vmatpush1.bf16.msra.mxu1 %v9584_v4  ;;  %7246 = vmatpush1.bf16.msra.mxu0 %v9587_v27  ;;  %v9655_v4 = vld [vmem:[%s13603_s5 + $0xb24] ss:$16 sps:$4 sm:$0xff]   ;;  %v3503_v27 = vpop.f32.mrf.mxu1 }
 0x4ff   : > { %7204 = vmatprep.subr.bf16.mxu1 %v9592_v51  ;;  %7247 = vmatprep.subr.bf16.mxu0 %v9595_v30  ;;  %v9650_v51 = vld [vmem:[%s13603_s5 + $0x920] ss:$16 sps:$4 sm:$0xff]  }
 0x500   : > { %v9653_v30 = vld [vmem:[%s13603_s5 + $0xb20] ss:$16 sps:$4 sm:$0xff]  }
 0x502   : > { %7205 = vmatpush1.bf16.msra.mxu1 %v9590_v20  ;;  %7248 = vmatpush1.bf16.msra.mxu0 %v9593_v3  ;;  %v9658_v20 = vld [vmem:[%s13603_s5 + $0x904] ss:$16 sps:$4 sm:$0xff]  }
 0x503   : > { %7206 = vmatprep.subr.bf16.mxu1 %v9598_v55  ;;  %7249 = vmatprep.subr.bf16.mxu0 %v9601_v7  ;;  %v9661_v3 = vld [vmem:[%s13603_s5 + $0xb04] ss:$16 sps:$4 sm:$0xff]   ;;  %v12297_v55 = vpop.f32.mrf.mxu1  ;;  %v9656_v7 = vld [vmem:[%s13603_s5 + $0x900] ss:$16 sps:$4 sm:$0xff]  }
 0x506   : > { %7207 = vmatpush1.bf16.msra.mxu1 %v9596_v40  ;;  %7250 = vmatpush1.bf16.msra.mxu0 %v9599_v61  ;;  %v9659_v40 = vld [vmem:[%s13603_s5 + $0xb00] ss:$16 sps:$4 sm:$0xff]   ;;  %v9664_v61 = vld [vmem:[%s13603_s5 + $0xce4] ss:$16 sps:$4 sm:$0xff]  }
 0x507   : > { %7208 = vmatprep.subr.bf16.mxu1 %v9604_v9  ;;  %7251 = vmatprep.subr.bf16.mxu0 %v9607_v42  ;;  %v9667_v9 = vld [vmem:[%s13603_s5 + $0xee4] ss:$16 sps:$4 sm:$0xff]   ;;  %v3507_v42 = vpop.f32.mrf.mxu1 }
 0x50a   : > { %7209 = vmatpush1.bf16.msra.mxu1 %v9602_v8  ;;  %7252 = vmatpush1.bf16.msra.mxu0 %v9605_v32  ;;  %v9662_v8 = vld [vmem:[%s13603_s5 + $0xce0] ss:$16 sps:$4 sm:$0xff]  }
 0x50b   : > { %7210 = vmatprep.subr.bf16.mxu1 %v9610_v47  ;;  %7253 = vmatprep.subr.bf16.mxu0 %v9613_v56  ;;  %v9665_v32 = vld [vmem:[%s13603_s5 + $0xee0] ss:$16 sps:$4 sm:$0xff]   ;;  %v12319_v47 = vpack.c.bf16 %v12005_v25, %v11977_v26  ;;  %v12323_v56 = vpack.c.bf16 %v12079_v36, %v12049_v54  ;;  %v12337_v26 = vpack.c.bf16 %v12065_v16, %v12035_v12  ;;  %v9676_v36 = vld [vmem:[%s13603_s5 + $0xca4] ss:$16 sps:$4 sm:$0xff]  }
 0x50c   : > { %v9668_v25 = vld [vmem:[%s13603_s5 + $0xcc0] ss:$16 sps:$4 sm:$0xff]  }
 0x50d   : > { %v9671_v54 = vld [vmem:[%s13603_s5 + $0xec0] ss:$16 sps:$4 sm:$0xff]  }
 0x50e   : > { %7211 = vmatpush1.bf16.msra.mxu1 %v9608_v21  ;;  %7254 = vmatpush1.bf16.msra.mxu0 %v9611_v14  ;;  %v9670_v21 = vld [vmem:[%s13603_s5 + $0xcc4] ss:$16 sps:$4 sm:$0xff]   ;;  %v9674_v12 = vld [vmem:[%s13603_s5 + $0xca0] ss:$16 sps:$4 sm:$0xff]  }
 0x50f   : > { %7212 = vmatprep.subr.bf16.mxu1 %v9616_v50  ;;  %7255 = vmatprep.subr.bf16.mxu0 %v9619_v62  ;;  %v9673_v14 = vld [vmem:[%s13603_s5 + $0xec4] ss:$16 sps:$4 sm:$0xff]   ;;  %v12331_v50 = vpack.c.bf16 %v3507_v42, %v3503_v27  ;;  %v9677_v16 = vld [vmem:[%s13603_s5 + $0xea0] ss:$16 sps:$4 sm:$0xff]  }
 0x510   : > { %v9679_v62 = vld [vmem:[%s13603_s5 + $0xea4] ss:$16 sps:$4 sm:$0xff]  }
 0x511   : > { %v9718_v27 = vld [vmem:[%s13603_s5 + $0xdc4] ss:$16 sps:$4 sm:$0xff]  }
 0x512   : > { %7213 = vmatpush2.bf16.msra.mxu1 %v9614_v24  ;;  %7256 = vmatpush2.bf16.msra.mxu0 %v9617_v10  ;;  %v9682_v24 = vld [vmem:[%s13603_s5 + $0xc84] ss:$16 sps:$4 sm:$0xff]  }
 0x513   : > { %7214 = vmatprep.subr.bf16.mxu1 %v9622_v33  ;;  %7257 = vmatprep.subr.bf16.mxu0 %v9625_v44  ;;  %v9685_v10 = vld [vmem:[%s13603_s5 + $0xe84] ss:$16 sps:$4 sm:$0xff]   ;;  %v9680_v33 = vld [vmem:[%s13603_s5 + $0xc80] ss:$16 sps:$4 sm:$0xff]  }
 0x514   : > { %v9683_v44 = vld [vmem:[%s13603_s5 + $0xe80] ss:$16 sps:$4 sm:$0xff]   ;;  %v9733_v42 = vld [vmem:[%s13603_s5 + $0xf84] ss:$16 sps:$4 sm:$0xff]  }
 0x516   : > { %7215 = vmatpush2.bf16.msra.mxu1 %v9620_v15  ;;  %7258 = vmatpush2.bf16.msra.mxu0 %v9623_v45  ;;  %v9688_v15 = vld [vmem:[%s13603_s5 + $0xc64] ss:$16 sps:$4 sm:$0xff]  }
 0x517   : > { %7216 = vmatprep.subr.bf16.mxu1 %v9628_v53  ;;  %7259 = vmatprep.subr.bf16.mxu0 %v9631_v19  ;;  %v9691_v45 = vld [vmem:[%s13603_s5 + $0xe64] ss:$16 sps:$4 sm:$0xff]   ;;  %v9686_v53 = vld [vmem:[%s13603_s5 + $0xc60] ss:$16 sps:$4 sm:$0xff]  }
 0x518   : > { %v9689_v19 = vld [vmem:[%s13603_s5 + $0xe60] ss:$16 sps:$4 sm:$0xff]  }
 0x51a   : > { %7217 = vmatpush2.bf16.msra.mxu1 %v9626_v57  ;;  %7260 = vmatpush2.bf16.msra.mxu0 %v9629_v29  ;;  %v9694_v57 = vld [vmem:[%s13603_s5 + $0xc44] ss:$16 sps:$4 sm:$0xff]  }
 0x51b   : > { %7218 = vmatprep.subr.bf16.mxu1 %v9634_v18  ;;  %7261 = vmatprep.subr.bf16.mxu0 %v9637_v58  ;;  %v9697_v29 = vld [vmem:[%s13603_s5 + $0xe44] ss:$16 sps:$4 sm:$0xff]   ;;  %v9692_v18 = vld [vmem:[%s13603_s5 + $0xc40] ss:$16 sps:$4 sm:$0xff]  }
 0x51c   : > { %v9695_v58 = vld [vmem:[%s13603_s5 + $0xe40] ss:$16 sps:$4 sm:$0xff]  }
 0x51e   : > { %7219 = vmatpush2.bf16.msra.mxu1 %v9632_v43  ;;  %7262 = vmatpush2.bf16.msra.mxu0 %v9635_v1  ;;  %v9700_v43 = vld [vmem:[%s13603_s5 + $0xc24] ss:$16 sps:$4 sm:$0xff]  }
 0x51f   : > { %7220 = vmatprep.subr.bf16.mxu1 %v9640_v35  ;;  %7263 = vmatprep.subr.bf16.mxu0 %v9643_v6  ;;  %v9703_v1 = vld [vmem:[%s13603_s5 + $0xe24] ss:$16 sps:$4 sm:$0xff]   ;;  %v9698_v35 = vld [vmem:[%s13603_s5 + $0xc20] ss:$16 sps:$4 sm:$0xff]  }
 0x520   : > { %v9701_v6 = vld [vmem:[%s13603_s5 + $0xe20] ss:$16 sps:$4 sm:$0xff]  }
 0x522   : > { %7221 = vmatpush2.bf16.msra.mxu1 %v9638_v63  ;;  %7264 = vmatpush2.bf16.msra.mxu0 %v9641_v13  ;;  %v9706_v63 = vld [vmem:[%s13603_s5 + $0xc04] ss:$16 sps:$4 sm:$0xff]  }
 0x523   : > { %7222 = vmatprep.subr.bf16.mxu1 %v9646_v23  ;;  %7265 = vmatprep.subr.bf16.mxu0 %v9649_v60  ;;  %v9709_v13 = vld [vmem:[%s13603_s5 + $0xe04] ss:$16 sps:$4 sm:$0xff]   ;;  %v9704_v23 = vld [vmem:[%s13603_s5 + $0xc00] ss:$16 sps:$4 sm:$0xff]  }
 0x524   : > { %v9707_v60 = vld [vmem:[%s13603_s5 + $0xe00] ss:$16 sps:$4 sm:$0xff]  }
 0x526   : > { %7223 = vmatpush2.bf16.msra.mxu1 %v9644_v11  ;;  %7266 = vmatpush2.bf16.msra.mxu0 %v9647_v17  ;;  %v9712_v11 = vld [vmem:[%s13603_s5 + $0xde4] ss:$16 sps:$4 sm:$0xff]  }
 0x527   : > { %7224 = vmatprep.subr.bf16.mxu1 %v9652_v59  ;;  %7267 = vmatprep.subr.bf16.mxu0 %v9655_v4  ;;  %v9715_v17 = vld [vmem:[%s13603_s5 + $0xfe4] ss:$16 sps:$4 sm:$0xff]   ;;  %v9710_v59 = vld [vmem:[%s13603_s5 + $0xde0] ss:$16 sps:$4 sm:$0xff]  }
 0x528   : > { %v9713_v4 = vld [vmem:[%s13603_s5 + $0xfe0] ss:$16 sps:$4 sm:$0xff]  }
 0x52a   : > { %7225 = vmatpush2.bf16.msra.mxu1 %v9650_v51  ;;  %7268 = vmatpush2.bf16.msra.mxu0 %v9653_v30  ;;  %v9721_v51 = vld [vmem:[%s13603_s5 + $0xfc4] ss:$16 sps:$4 sm:$0xff]   ;;  %v9716_v30 = vld [vmem:[%s13603_s5 + $0xdc0] ss:$16 sps:$4 sm:$0xff]  }
 0x52b   : > { %7226 = vmatprep.subr.bf16.mxu1 %v9658_v20  ;;  %7269 = vmatprep.subr.bf16.mxu0 %v9661_v3  ;;  %v9719_v20 = vld [vmem:[%s13603_s5 + $0xfc0] ss:$16 sps:$4 sm:$0xff]   ;;  %v9724_v3 = vld [vmem:[%s13603_s5 + $0xda4] ss:$16 sps:$4 sm:$0xff]  }
 0x52e   : > { %7227 = vmatpush2.bf16.msra.mxu1 %v9656_v7  ;;  %7270 = vmatpush2.bf16.msra.mxu0 %v9659_v40  ;;  %v9727_v7 = vld [vmem:[%s13603_s5 + $0xfa4] ss:$16 sps:$4 sm:$0xff]   ;;  %v9722_v40 = vld [vmem:[%s13603_s5 + $0xda0] ss:$16 sps:$4 sm:$0xff]  }
 0x52f   : > { %7282 = vmatprep.subr.bf16.mxu1 %v9664_v61  ;;  %7325 = vmatprep.subr.bf16.mxu0 %v9667_v9  ;;  %v9725_v61 = vld [vmem:[%s13603_s5 + $0xfa0] ss:$16 sps:$4 sm:$0xff]   ;;  %v9730_v9 = vld [vmem:[%s13603_s5 + $0xd84] ss:$16 sps:$4 sm:$0xff]  }
 0x531   : > { %7229 = vmatmul.mubr.bf16.vlgmr.msra.gmra.mxu1 %v12319_v47  ;;  %7272 = vmatmul.mubr.bf16.vlgmr.msra.gmra.mxu0 %v12323_v56 }
 0x532   : > { %7283 = vmatpush1.bf16.msra.mxu1 %v9662_v8  ;;  %7326 = vmatpush1.bf16.msra.mxu0 %v9665_v32  ;;  %v9728_v8 = vld [vmem:[%s13603_s5 + $0xd80] ss:$16 sps:$4 sm:$0xff]  }
 0x533   : > { %7284 = vmatprep.subr.bf16.mxu1 %v9670_v21  ;;  %7327 = vmatprep.subr.bf16.mxu0 %v9673_v14  ;;  %v9731_v32 = vld [vmem:[%s13603_s5 + $0xf80] ss:$16 sps:$4 sm:$0xff]   ;;  %v9736_v21 = vld [vmem:[%s13603_s5 + $0xd64] ss:$16 sps:$4 sm:$0xff]  }
 0x534   : > { %7314 = vmatprep.mubr.bf16.mxu1 %v12337_v26  ;;  %7357 = vmatprep.mubr.bf16.mxu0 %v12331_v50  ;;  %v9739_v14 = vld [vmem:[%s13603_s5 + $0xf64] ss:$16 sps:$4 sm:$0xff]  }
 0x536   : > { %7285 = vmatpush1.bf16.msra.mxu1 %v9668_v25  ;;  %7328 = vmatpush1.bf16.msra.mxu0 %v9671_v54  ;;  %v9734_v25 = vld [vmem:[%s13603_s5 + $0xd60] ss:$16 sps:$4 sm:$0xff]  }
 0x537   : > { %7286 = vmatprep.subr.bf16.mxu1 %v9676_v36  ;;  %7329 = vmatprep.subr.bf16.mxu0 %v9679_v62  ;;  %v9737_v54 = vld [vmem:[%s13603_s5 + $0xf60] ss:$16 sps:$4 sm:$0xff]   ;;  %v9742_v36 = vld [vmem:[%s13603_s5 + $0xd44] ss:$16 sps:$4 sm:$0xff]  }
 0x538   : > { %v9745_v62 = vld [vmem:[%s13603_s5 + $0xf44] ss:$16 sps:$4 sm:$0xff]  }
 0x53a   : > { %7287 = vmatpush1.bf16.msra.mxu1 %v9674_v12  ;;  %7330 = vmatpush1.bf16.msra.mxu0 %v9677_v16  ;;  %v9740_v12 = vld [vmem:[%s13603_s5 + $0xd40] ss:$16 sps:$4 sm:$0xff]  }
 0x53b   : > { %7288 = vmatprep.subr.bf16.mxu1 %v9682_v24  ;;  %7331 = vmatprep.subr.bf16.mxu0 %v9685_v10  ;;  %v9743_v16 = vld [vmem:[%s13603_s5 + $0xf40] ss:$16 sps:$4 sm:$0xff]   ;;  %v9748_v24 = vld [vmem:[%s13603_s5 + $0xd24] ss:$16 sps:$4 sm:$0xff]  }
 0x53c   : > { %v9751_v10 = vld [vmem:[%s13603_s5 + $0xf24] ss:$16 sps:$4 sm:$0xff]  }
 0x53e   : > { %7289 = vmatpush1.bf16.msra.mxu1 %v9680_v33  ;;  %7332 = vmatpush1.bf16.msra.mxu0 %v9683_v44  ;;  %v9746_v33 = vld [vmem:[%s13603_s5 + $0xd20] ss:$16 sps:$4 sm:$0xff]  }
 0x53f   : > { %7290 = vmatprep.subr.bf16.mxu1 %v9688_v15  ;;  %7333 = vmatprep.subr.bf16.mxu0 %v9691_v45  ;;  %v9749_v44 = vld [vmem:[%s13603_s5 + $0xf20] ss:$16 sps:$4 sm:$0xff]   ;;  %v9754_v15 = vld [vmem:[%s13603_s5 + $0xd04] ss:$16 sps:$4 sm:$0xff]  }
 0x540   : > { %v9757_v45 = vld [vmem:[%s13603_s5 + $0xf04] ss:$16 sps:$4 sm:$0xff]  }
 0x542   : > { %7291 = vmatpush1.bf16.msra.mxu1 %v9686_v53  ;;  %7334 = vmatpush1.bf16.msra.mxu0 %v9689_v19  ;;  %v9752_v53 = vld [vmem:[%s13603_s5 + $0xd00] ss:$16 sps:$4 sm:$0xff]  }
 0x543   : > { %7292 = vmatprep.subr.bf16.mxu1 %v9694_v57  ;;  %7335 = vmatprep.subr.bf16.mxu0 %v9697_v29  ;;  %v9755_v19 = vld [vmem:[%s13603_s5 + $0xf00] ss:$16 sps:$4 sm:$0xff]   ;;  %v9760_v57 = vld [vmem:[%s13603_s5 + $0x10e4] ss:$16 sps:$4 sm:$0xff]   ;;  %v9763_v29 = vld [vmem:[%s13603_s5 + $0xec] ss:$16 sps:$4 sm:$0xff]  }
 0x546   : > { %7293 = vmatpush1.bf16.msra.mxu1 %v9692_v18  ;;  %7336 = vmatpush1.bf16.msra.mxu0 %v9695_v58  ;;  %v3563_v18 = vpop.f32.mrf.mxu0  ;;  %v9758_v58 = vld [vmem:[%s13603_s5 + $0x10e0] ss:$16 sps:$4 sm:$0xff]  }
 0x547   : > { %7294 = vmatprep.subr.bf16.mxu1 %v9700_v43  ;;  %7337 = vmatprep.subr.bf16.mxu0 %v9703_v1  ;;  %v12526_v43 = vpack.c.bf16 %v12051_v0, %v12021_v37  ;;  %v12530_v1 = vpack.c.bf16 %v12297_v55, %v12271_v5  ;;  %v9769_v37 = vld [vmem:[%s13603_s5 + $0xcc] ss:$16 sps:$4 sm:$0xff]   ;;  %v9764_v0 = vld [vmem:[%s13603_s5 + $0x10c0] ss:$16 sps:$4 sm:$0xff]   ;;  %v9772_v5 = vld [vmem:[%s13603_s5 + $0x10a4] ss:$16 sps:$4 sm:$0xff]  }
 0x548   : > { %v9775_v55 = vld [vmem:[%s13603_s5 + $0xac] ss:$16 sps:$4 sm:$0xff]  }
 0x54a   : > { %7295 = vmatpush1.bf16.msra.mxu1 %v9698_v35  ;;  %7338 = vmatpush1.bf16.msra.mxu0 %v9701_v6  ;;  %v9761_v35 = vld [vmem:[%s13603_s5 + $0xe8] ss:$16 sps:$4 sm:$0xff]   ;;  %v12536_v6 = vpack.c.bf16 %v3563_v18, %v12081_v41  ;;  %v9832_v18 = vld [vmem:[%s13603_s5 + $0x1164] ss:$16 sps:$4 sm:$0xff]  }
 0x54b   : > { %7296 = vmatprep.subr.bf16.mxu1 %v9706_v63  ;;  %7339 = vmatprep.subr.bf16.mxu0 %v9709_v13  ;;  %v9766_v63 = vld [vmem:[%s13603_s5 + $0x10c4] ss:$16 sps:$4 sm:$0xff]   ;;  %v9767_v41 = vld [vmem:[%s13603_s5 + $0xc8] ss:$16 sps:$4 sm:$0xff]   ;;  %v9770_v13 = vld [vmem:[%s13603_s5 + $0x10a0] ss:$16 sps:$4 sm:$0xff]  }
 0x54e   : > { %7297 = vmatpush1.bf16.msra.mxu1 %v9704_v23  ;;  %7340 = vmatpush1.bf16.msra.mxu0 %v9707_v60  ;;  %v9778_v23 = vld [vmem:[%s13603_s5 + $0x1084] ss:$16 sps:$4 sm:$0xff]   ;;  %v9781_v60 = vld [vmem:[%s13603_s5 + $0x8c] ss:$16 sps:$4 sm:$0xff]  }
 0x54f   : > { %7298 = vmatprep.subr.bf16.mxu1 %v9712_v11  ;;  %7341 = vmatprep.subr.bf16.mxu0 %v9715_v17  ;;  %v9776_v11 = vld [vmem:[%s13603_s5 + $0x1080] ss:$16 sps:$4 sm:$0xff]   ;;  %v9779_v17 = vld [vmem:[%s13603_s5 + $0x88] ss:$16 sps:$4 sm:$0xff]  }
 0x552   : > { %7299 = vmatpush2.bf16.msra.mxu1 %v9710_v59  ;;  %7342 = vmatpush2.bf16.msra.mxu0 %v9713_v4  ;;  %v9784_v59 = vld [vmem:[%s13603_s5 + $0x1064] ss:$16 sps:$4 sm:$0xff]   ;;  %v9787_v4 = vld [vmem:[%s13603_s5 + $0x6c] ss:$16 sps:$4 sm:$0xff]  }
 0x553   : > { %7300 = vmatprep.subr.bf16.mxu1 %v9718_v27  ;;  %7343 = vmatprep.subr.bf16.mxu0 %v9721_v51  ;;  %v9782_v27 = vld [vmem:[%s13603_s5 + $0x1060] ss:$16 sps:$4 sm:$0xff]   ;;  %v9785_v51 = vld [vmem:[%s13603_s5 + $0x68] ss:$16 sps:$4 sm:$0xff]  }
 0x556   : > { %7301 = vmatpush2.bf16.msra.mxu1 %v9716_v30  ;;  %7344 = vmatpush2.bf16.msra.mxu0 %v9719_v20  ;;  %v9790_v30 = vld [vmem:[%s13603_s5 + $0x1044] ss:$16 sps:$4 sm:$0xff]   ;;  %v9793_v20 = vld [vmem:[%s13603_s5 + $0x4c] ss:$16 sps:$4 sm:$0xff]  }
 0x557   : > { %7302 = vmatprep.subr.bf16.mxu1 %v9724_v3  ;;  %7345 = vmatprep.subr.bf16.mxu0 %v9727_v7  ;;  %v9788_v3 = vld [vmem:[%s13603_s5 + $0x1040] ss:$16 sps:$4 sm:$0xff]   ;;  %v9791_v7 = vld [vmem:[%s13603_s5 + $0x48] ss:$16 sps:$4 sm:$0xff]  }
 0x55a   : > { %7303 = vmatpush2.bf16.msra.mxu1 %v9722_v40  ;;  %7346 = vmatpush2.bf16.msra.mxu0 %v9725_v61  ;;  %v9796_v40 = vld [vmem:[%s13603_s5 + $0x1024] ss:$16 sps:$4 sm:$0xff]   ;;  %v9799_v61 = vld [vmem:[%s13603_s5 + $0x2c] ss:$16 sps:$4 sm:$0xff]  }
 0x55b   : > { %7304 = vmatprep.subr.bf16.mxu1 %v9730_v9  ;;  %7347 = vmatprep.subr.bf16.mxu0 %v9733_v42  ;;  %v9794_v9 = vld [vmem:[%s13603_s5 + $0x1020] ss:$16 sps:$4 sm:$0xff]   ;;  %v9797_v42 = vld [vmem:[%s13603_s5 + $0x28] ss:$16 sps:$4 sm:$0xff]  }
 0x55e   : > { %7305 = vmatpush2.bf16.msra.mxu1 %v9728_v8  ;;  %7348 = vmatpush2.bf16.msra.mxu0 %v9731_v32  ;;  %v9802_v8 = vld [vmem:[%s13603_s5 + $0x1004] ss:$16 sps:$4 sm:$0xff]   ;;  %v9805_v32 = vld [vmem:[%s13603_s5 + $0xc] ss:$16 sps:$4 sm:$0xff]  }
 0x55f   : > { %7306 = vmatprep.subr.bf16.mxu1 %v9736_v21  ;;  %7349 = vmatprep.subr.bf16.mxu0 %v9739_v14  ;;  %v9800_v21 = vld [vmem:[%s13603_s5 + $0x1000] ss:$16 sps:$4 sm:$0xff]   ;;  %v9803_v14 = vld [vmem:[%s13603_s5 + $0x8] ss:$16 sps:$4 sm:$0xff]  }
 0x562   : > { %7307 = vmatpush2.bf16.msra.mxu1 %v9734_v25  ;;  %7350 = vmatpush2.bf16.msra.mxu0 %v9737_v54  ;;  %v9808_v25 = vld [vmem:[%s13603_s5 + $0x11e4] ss:$16 sps:$4 sm:$0xff]   ;;  %v9811_v54 = vld [vmem:[%s13603_s5 + $0x1ec] ss:$16 sps:$4 sm:$0xff]  }
 0x563   : > { %7308 = vmatprep.subr.bf16.mxu1 %v9742_v36  ;;  %7351 = vmatprep.subr.bf16.mxu0 %v9745_v62  ;;  %v9806_v36 = vld [vmem:[%s13603_s5 + $0x11e0] ss:$16 sps:$4 sm:$0xff]   ;;  %v9809_v62 = vld [vmem:[%s13603_s5 + $0x1e8] ss:$16 sps:$4 sm:$0xff]  }
 0x566   : > { %7309 = vmatpush2.bf16.msra.mxu1 %v9740_v12  ;;  %7352 = vmatpush2.bf16.msra.mxu0 %v9743_v16  ;;  %v9814_v12 = vld [vmem:[%s13603_s5 + $0x11c4] ss:$16 sps:$4 sm:$0xff]   ;;  %v9817_v16 = vld [vmem:[%s13603_s5 + $0x1cc] ss:$16 sps:$4 sm:$0xff]  }
 0x567   : > { %7310 = vmatprep.subr.bf16.mxu1 %v9748_v24  ;;  %7353 = vmatprep.subr.bf16.mxu0 %v9751_v10  ;;  %v9812_v24 = vld [vmem:[%s13603_s5 + $0x11c0] ss:$16 sps:$4 sm:$0xff]   ;;  %v9815_v10 = vld [vmem:[%s13603_s5 + $0x1c8] ss:$16 sps:$4 sm:$0xff]  }
 0x56a   : > { %7311 = vmatpush2.bf16.msra.mxu1 %v9746_v33  ;;  %7354 = vmatpush2.bf16.msra.mxu0 %v9749_v44  ;;  %v9820_v33 = vld [vmem:[%s13603_s5 + $0x11a4] ss:$16 sps:$4 sm:$0xff]   ;;  %v9823_v44 = vld [vmem:[%s13603_s5 + $0x1ac] ss:$16 sps:$4 sm:$0xff]  }
 0x56b   : > { %7312 = vmatprep.subr.bf16.mxu1 %v9754_v15  ;;  %7355 = vmatprep.subr.bf16.mxu0 %v9757_v45  ;;  %v9818_v15 = vld [vmem:[%s13603_s5 + $0x11a0] ss:$16 sps:$4 sm:$0xff]   ;;  %v9821_v45 = vld [vmem:[%s13603_s5 + $0x1a8] ss:$16 sps:$4 sm:$0xff]  }
 0x56e   : > { %7313 = vmatpush2.bf16.msra.mxu1 %v9752_v53  ;;  %7356 = vmatpush2.bf16.msra.mxu0 %v9755_v19  ;;  %v9826_v53 = vld [vmem:[%s13603_s5 + $0x1184] ss:$16 sps:$4 sm:$0xff]   ;;  %v9829_v19 = vld [vmem:[%s13603_s5 + $0x18c] ss:$16 sps:$4 sm:$0xff]  }
 0x56f   : > { %7368 = vmatprep.subr.bf16.mxu1 %v9760_v57  ;;  %7411 = vmatprep.subr.bf16.mxu0 %v9763_v29  ;;  %v9824_v57 = vld [vmem:[%s13603_s5 + $0x1180] ss:$16 sps:$4 sm:$0xff]   ;;  %v9827_v29 = vld [vmem:[%s13603_s5 + $0x188] ss:$16 sps:$4 sm:$0xff]  }
 0x571   : > { %7315 = vmatmul.mubr.bf16.vlgmr.msra.gmra.mxu1 %v12526_v43  ;;  %7358 = vmatmul.mubr.bf16.vlgmr.msra.gmra.mxu0 %v12530_v1 }
 0x572   : > { %7369 = vmatpush1.bf16.msra.mxu1 %v9758_v58  ;;  %7400 = vmatprep.mubr.bf16.mxu1 %v12536_v6  ;;  %v9835_v58 = vld [vmem:[%s13603_s5 + $0x16c] ss:$16 sps:$4 sm:$0xff]  }
 0x573   : > { %7412 = vmatpush1.bf16.msra.mxu0 %v9761_v35  ;;  %7443 = vmatprep.mubr.bf16.mxu0 %v11855_v22  ;;  %v9773_v22 = vld [vmem:[%s13603_s5 + $0xa8] ss:$16 sps:$4 sm:$0xff]   ;;  %v9830_v35 = vld [vmem:[%s13603_s5 + $0x1160] ss:$16 sps:$4 sm:$0xff]  }
 0x574   : > { %7370 = vmatprep.subr.bf16.mxu1 %v9766_v63  ;;  %7413 = vmatprep.subr.bf16.mxu0 %v9769_v37  ;;  %v9833_v63 = vld [vmem:[%s13603_s5 + $0x168] ss:$16 sps:$4 sm:$0xff]   ;;  %v9838_v37 = vld [vmem:[%s13603_s5 + $0x1144] ss:$16 sps:$4 sm:$0xff]  }
 0x576   : > { %7371 = vmatpush1.bf16.msra.mxu1 %v9764_v0  ;;  %v9841_v0 = vld [vmem:[%s13603_s5 + $0x14c] ss:$16 sps:$4 sm:$0xff]  }
 0x577   : > { %7414 = vmatpush1.bf16.msra.mxu0 %v9767_v41  ;;  %7372 = vmatprep.subr.bf16.mxu1 %v9772_v5  ;;  %v9836_v41 = vld [vmem:[%s13603_s5 + $0x1140] ss:$16 sps:$4 sm:$0xff]   ;;  %v9839_v5 = vld [vmem:[%s13603_s5 + $0x148] ss:$16 sps:$4 sm:$0xff]  }
 0x578   : > { %7415 = vmatprep.subr.bf16.mxu0 %v9775_v55  ;;  %v9844_v55 = vld [vmem:[%s13603_s5 + $0x1124] ss:$16 sps:$4 sm:$0xff]  }
 0x57a   : > { %7373 = vmatpush1.bf16.msra.mxu1 %v9770_v13  ;;  %v9847_v13 = vld [vmem:[%s13603_s5 + $0x12c] ss:$16 sps:$4 sm:$0xff]  }
 0x57b   : > { %7416 = vmatpush1.bf16.msra.mxu0 %v9773_v22  ;;  %7374 = vmatprep.subr.bf16.mxu1 %v9778_v23  ;;  %v9842_v22 = vld [vmem:[%s13603_s5 + $0x1120] ss:$16 sps:$4 sm:$0xff]   ;;  %v9845_v23 = vld [vmem:[%s13603_s5 + $0x128] ss:$16 sps:$4 sm:$0xff]  }
 0x57c   : > { %7417 = vmatprep.subr.bf16.mxu0 %v9781_v60  ;;  %v9850_v60 = vld [vmem:[%s13603_s5 + $0x1104] ss:$16 sps:$4 sm:$0xff]  }
 0x57e   : > { %7375 = vmatpush1.bf16.msra.mxu1 %v9776_v11  ;;  %v9853_v11 = vld [vmem:[%s13603_s5 + $0x10c] ss:$16 sps:$4 sm:$0xff]  }
 0x57f   : > { %7418 = vmatpush1.bf16.msra.mxu0 %v9779_v17  ;;  %7376 = vmatprep.subr.bf16.mxu1 %v9784_v59  ;;  %v9848_v17 = vld [vmem:[%s13603_s5 + $0x1100] ss:$16 sps:$4 sm:$0xff]   ;;  %v9851_v59 = vld [vmem:[%s13603_s5 + $0x108] ss:$16 sps:$4 sm:$0xff]  }
 0x580   : > { %7419 = vmatprep.subr.bf16.mxu0 %v9787_v4  ;;  %v9856_v4 = vld [vmem:[%s13603_s5 + $0x2ec] ss:$16 sps:$4 sm:$0xff]  }
 0x582   : > { %7377 = vmatpush1.bf16.msra.mxu1 %v9782_v27  ;;  %v9859_v27 = vld [vmem:[%s13603_s5 + $0x4ec] ss:$16 sps:$4 sm:$0xff]  }
 0x583   : > { %7420 = vmatpush1.bf16.msra.mxu0 %v9785_v51  ;;  %7378 = vmatprep.subr.bf16.mxu1 %v9790_v30  ;;  %v9854_v51 = vld [vmem:[%s13603_s5 + $0x2e8] ss:$16 sps:$4 sm:$0xff]  }
 0x584   : > { %7421 = vmatprep.subr.bf16.mxu0 %v9793_v20  ;;  %v9857_v30 = vld [vmem:[%s13603_s5 + $0x4e8] ss:$16 sps:$4 sm:$0xff]   ;;  %v9862_v20 = vld [vmem:[%s13603_s5 + $0x2cc] ss:$16 sps:$4 sm:$0xff]  }
 0x586   : > { %7379 = vmatpush1.bf16.msra.mxu1 %v9788_v3  ;;  %v9865_v3 = vld [vmem:[%s13603_s5 + $0x4cc] ss:$16 sps:$4 sm:$0xff]  }
 0x587   : > { %7422 = vmatpush1.bf16.msra.mxu0 %v9791_v7  ;;  %7380 = vmatprep.subr.bf16.mxu1 %v9796_v40  ;;  %v9860_v7 = vld [vmem:[%s13603_s5 + $0x2c8] ss:$16 sps:$4 sm:$0xff]  }
 0x588   : > { %7423 = vmatprep.subr.bf16.mxu0 %v9799_v61  ;;  %v9863_v40 = vld [vmem:[%s13603_s5 + $0x4c8] ss:$16 sps:$4 sm:$0xff]   ;;  %v9868_v61 = vld [vmem:[%s13603_s5 + $0x2ac] ss:$16 sps:$4 sm:$0xff]  }
 0x58a   : > { %7381 = vmatpush1.bf16.msra.mxu1 %v9794_v9  ;;  %v9869_v9 = vld [vmem:[%s13603_s5 + $0x4a8] ss:$16 sps:$4 sm:$0xff]  }
 0x58b   : > { %7424 = vmatpush1.bf16.msra.mxu0 %v9797_v42  ;;  %7382 = vmatprep.subr.bf16.mxu1 %v9802_v8  ;;  %v9877_v42 = vld [vmem:[%s13603_s5 + $0x48c] ss:$16 sps:$4 sm:$0xff]   ;;  %v9872_v8 = vld [vmem:[%s13603_s5 + $0x288] ss:$16 sps:$4 sm:$0xff]  }
 0x58c   : > { %7425 = vmatprep.subr.bf16.mxu0 %v9805_v32  ;;  %v9875_v32 = vld [vmem:[%s13603_s5 + $0x488] ss:$16 sps:$4 sm:$0xff]  }
 0x58e   : > { %7383 = vmatpush1.bf16.msra.mxu1 %v9800_v21  ;;  %v9880_v21 = vld [vmem:[%s13603_s5 + $0x26c] ss:$16 sps:$4 sm:$0xff]  }
 0x58f   : > { %7426 = vmatpush1.bf16.msra.mxu0 %v9803_v14  ;;  %7384 = vmatprep.subr.bf16.mxu1 %v9808_v25  ;;  %v9883_v14 = vld [vmem:[%s13603_s5 + $0x46c] ss:$16 sps:$4 sm:$0xff]   ;;  %v9878_v25 = vld [vmem:[%s13603_s5 + $0x268] ss:$16 sps:$4 sm:$0xff]  }
 0x590   : > { %7427 = vmatprep.subr.bf16.mxu0 %v9811_v54  ;;  %v9881_v54 = vld [vmem:[%s13603_s5 + $0x468] ss:$16 sps:$4 sm:$0xff]  }
 0x592   : > { %7385 = vmatpush2.bf16.msra.mxu1 %v9806_v36  ;;  %v9886_v36 = vld [vmem:[%s13603_s5 + $0x24c] ss:$16 sps:$4 sm:$0xff]  }
 0x593   : > { %7428 = vmatpush2.bf16.msra.mxu0 %v9809_v62  ;;  %7386 = vmatprep.subr.bf16.mxu1 %v9814_v12  ;;  %v9889_v62 = vld [vmem:[%s13603_s5 + $0x44c] ss:$16 sps:$4 sm:$0xff]   ;;  %v9884_v12 = vld [vmem:[%s13603_s5 + $0x248] ss:$16 sps:$4 sm:$0xff]  }
 0x594   : > { %7429 = vmatprep.subr.bf16.mxu0 %v9817_v16  ;;  %v9887_v16 = vld [vmem:[%s13603_s5 + $0x448] ss:$16 sps:$4 sm:$0xff]  }
 0x596   : > { %7387 = vmatpush2.bf16.msra.mxu1 %v9812_v24  ;;  %v9892_v24 = vld [vmem:[%s13603_s5 + $0x22c] ss:$16 sps:$4 sm:$0xff]  }
 0x597   : > { %7430 = vmatpush2.bf16.msra.mxu0 %v9815_v10  ;;  %7388 = vmatprep.subr.bf16.mxu1 %v9820_v33  ;;  %v9895_v10 = vld [vmem:[%s13603_s5 + $0x42c] ss:$16 sps:$4 sm:$0xff]   ;;  %v9890_v33 = vld [vmem:[%s13603_s5 + $0x228] ss:$16 sps:$4 sm:$0xff]  }
 0x598   : > { %7431 = vmatprep.subr.bf16.mxu0 %v9823_v44  ;;  %v9893_v44 = vld [vmem:[%s13603_s5 + $0x428] ss:$16 sps:$4 sm:$0xff]  }
 0x59a   : > { %7389 = vmatpush2.bf16.msra.mxu1 %v9818_v15  ;;  %v9898_v15 = vld [vmem:[%s13603_s5 + $0x20c] ss:$16 sps:$4 sm:$0xff]  }
 0x59b   : > { %7432 = vmatpush2.bf16.msra.mxu0 %v9821_v45  ;;  %7390 = vmatprep.subr.bf16.mxu1 %v9826_v53  ;;  %v9901_v45 = vld [vmem:[%s13603_s5 + $0x40c] ss:$16 sps:$4 sm:$0xff]   ;;  %v9896_v53 = vld [vmem:[%s13603_s5 + $0x208] ss:$16 sps:$4 sm:$0xff]  }
 0x59c   : > { %7433 = vmatprep.subr.bf16.mxu0 %v9829_v19  ;;  %v9899_v19 = vld [vmem:[%s13603_s5 + $0x408] ss:$16 sps:$4 sm:$0xff]  }
 0x59e   : > { %7391 = vmatpush2.bf16.msra.mxu1 %v9824_v57  ;;  %v9904_v57 = vld [vmem:[%s13603_s5 + $0x3ec] ss:$16 sps:$4 sm:$0xff]  }
 0x59f   : > { %7434 = vmatpush2.bf16.msra.mxu0 %v9827_v29  ;;  %7392 = vmatprep.subr.bf16.mxu1 %v9832_v18  ;;  %v9907_v29 = vld [vmem:[%s13603_s5 + $0x5ec] ss:$16 sps:$4 sm:$0xff]   ;;  %v9902_v18 = vld [vmem:[%s13603_s5 + $0x3e8] ss:$16 sps:$4 sm:$0xff]  }
 0x5a0   : > { %7435 = vmatprep.subr.bf16.mxu0 %v9835_v58  ;;  %v9905_v58 = vld [vmem:[%s13603_s5 + $0x5e8] ss:$16 sps:$4 sm:$0xff]  }
 0x5a2   : > { %7393 = vmatpush2.bf16.msra.mxu1 %v9830_v35  ;;  %v9910_v35 = vld [vmem:[%s13603_s5 + $0x3cc] ss:$16 sps:$4 sm:$0xff]  }
 0x5a3   : > { %7436 = vmatpush2.bf16.msra.mxu0 %v9833_v63  ;;  %7394 = vmatprep.subr.bf16.mxu1 %v9838_v37  ;;  %v9913_v63 = vld [vmem:[%s13603_s5 + $0x5cc] ss:$16 sps:$4 sm:$0xff]   ;;  %v9908_v37 = vld [vmem:[%s13603_s5 + $0x3c8] ss:$16 sps:$4 sm:$0xff]  }
 0x5a4   : > { %7437 = vmatprep.subr.bf16.mxu0 %v9841_v0  ;;  %v9911_v0 = vld [vmem:[%s13603_s5 + $0x5c8] ss:$16 sps:$4 sm:$0xff]  }
 0x5a6   : > { %7395 = vmatpush2.bf16.msra.mxu1 %v9836_v41  ;;  %v9916_v41 = vld [vmem:[%s13603_s5 + $0x3ac] ss:$16 sps:$4 sm:$0xff]  }
 0x5a7   : > { %7438 = vmatpush2.bf16.msra.mxu0 %v9839_v5  ;;  %7396 = vmatprep.subr.bf16.mxu1 %v9844_v55  ;;  %v9919_v5 = vld [vmem:[%s13603_s5 + $0x5ac] ss:$16 sps:$4 sm:$0xff]   ;;  %v9914_v55 = vld [vmem:[%s13603_s5 + $0x3a8] ss:$16 sps:$4 sm:$0xff]  }
 0x5a8   : > { %7439 = vmatprep.subr.bf16.mxu0 %v9847_v13  ;;  %v9917_v13 = vld [vmem:[%s13603_s5 + $0x5a8] ss:$16 sps:$4 sm:$0xff]  }
 0x5aa   : > { %7397 = vmatpush2.bf16.msra.mxu1 %v9842_v22  ;;  %v9922_v22 = vld [vmem:[%s13603_s5 + $0x38c] ss:$16 sps:$4 sm:$0xff]  }
 0x5ab   : > { %7440 = vmatpush2.bf16.msra.mxu0 %v9845_v23  ;;  %7398 = vmatprep.subr.bf16.mxu1 %v9850_v60  ;;  %v9925_v23 = vld [vmem:[%s13603_s5 + $0x58c] ss:$16 sps:$4 sm:$0xff]   ;;  %v9920_v60 = vld [vmem:[%s13603_s5 + $0x388] ss:$16 sps:$4 sm:$0xff]  }
 0x5ac   : > { %7441 = vmatprep.subr.bf16.mxu0 %v9853_v11  ;;  %v9923_v11 = vld [vmem:[%s13603_s5 + $0x588] ss:$16 sps:$4 sm:$0xff]  }
 0x5ae   : > { %7399 = vmatpush2.bf16.msra.mxu1 %v9848_v17  ;;  %v9928_v17 = vld [vmem:[%s13603_s5 + $0x36c] ss:$16 sps:$4 sm:$0xff]  }
 0x5af   : > { %7442 = vmatpush2.bf16.msra.mxu0 %v9851_v59  ;;  %7454 = vmatprep.subr.bf16.mxu1 %v9856_v4  ;;  %v9931_v59 = vld [vmem:[%s13603_s5 + $0x56c] ss:$16 sps:$4 sm:$0xff]   ;;  %v9926_v4 = vld [vmem:[%s13603_s5 + $0x368] ss:$16 sps:$4 sm:$0xff]  }
 0x5b0   : > { %7497 = vmatprep.subr.bf16.mxu0 %v9859_v27  ;;  %v9929_v27 = vld [vmem:[%s13603_s5 + $0x568] ss:$16 sps:$4 sm:$0xff]  }
 0x5b1   : > { %7401 = vmatmul.mubr.bf16.vlgmr.msra.gmra.mxu1 %v12095_v34 }
 0x5b2   : > { %7444 = vmatmul.mubr.bf16.vlgmr.msra.gmra.mxu0 %v11865_v28  ;;  %7455 = vmatpush1.bf16.msra.mxu1 %v9854_v51  ;;  %v9871_v28 = vld [vmem:[%s13603_s5 + $0x4ac] ss:$16 sps:$4 sm:$0xff]  }
 0x5b3   : > { %7486 = vmatprep.mubr.bf16.mxu1 %v11857_v31  ;;  %7498 = vmatpush1.bf16.msra.mxu0 %v9857_v30  ;;  %v9866_v31 = vld [vmem:[%s13603_s5 + $0x2a8] ss:$16 sps:$4 sm:$0xff]   ;;  %v9934_v51 = vld [vmem:[%s13603_s5 + $0x34c] ss:$16 sps:$4 sm:$0xff]  }
 0x5b4   : > { %7529 = vmatprep.mubr.bf16.mxu0 %v11929_v48  ;;  %7456 = vmatprep.subr.bf16.mxu1 %v9862_v20  ;;  %v9874_v48 = vld [vmem:[%s13603_s5 + $0x28c] ss:$16 sps:$4 sm:$0xff]   ;;  %v9932_v20 = vld [vmem:[%s13603_s5 + $0x348] ss:$16 sps:$4 sm:$0xff]  }
 0x5b5   : > { %7499 = vmatprep.subr.bf16.mxu0 %v9865_v3  ;;  %v9937_v30 = vld [vmem:[%s13603_s5 + $0x54c] ss:$16 sps:$4 sm:$0xff]   ;;  %v9935_v3 = vld [vmem:[%s13603_s5 + $0x548] ss:$16 sps:$4 sm:$0xff]  }
 0x5b6   : > { %7457 = vmatpush1.bf16.msra.mxu1 %v9860_v7  ;;  %v9940_v7 = vld [vmem:[%s13603_s5 + $0x32c] ss:$16 sps:$4 sm:$0xff]  }
 0x5b7   : > { %7500 = vmatpush1.bf16.msra.mxu0 %v9863_v40  ;;  %7458 = vmatprep.subr.bf16.mxu1 %v9868_v61  ;;  %v9943_v40 = vld [vmem:[%s13603_s5 + $0x52c] ss:$16 sps:$4 sm:$0xff]   ;;  %v9938_v61 = vld [vmem:[%s13603_s5 + $0x328] ss:$16 sps:$4 sm:$0xff]  }
 0x5b8   : > { %7501 = vmatprep.subr.bf16.mxu0 %v9871_v28  ;;  %v9941_v28 = vld [vmem:[%s13603_s5 + $0x528] ss:$16 sps:$4 sm:$0xff]  }
 0x5ba   : > { %7459 = vmatpush1.bf16.msra.mxu1 %v9866_v31  ;;  %v9946_v31 = vld [vmem:[%s13603_s5 + $0x30c] ss:$16 sps:$4 sm:$0xff]  }
 0x5bb   : > { %7502 = vmatpush1.bf16.msra.mxu0 %v9869_v9  ;;  %7460 = vmatprep.subr.bf16.mxu1 %v9874_v48  ;;  %v9949_v9 = vld [vmem:[%s13603_s5 + $0x50c] ss:$16 sps:$4 sm:$0xff]   ;;  %v9944_v48 = vld [vmem:[%s13603_s5 + $0x308] ss:$16 sps:$4 sm:$0xff]  }
 0x5bc   : > { %7503 = vmatprep.subr.bf16.mxu0 %v9877_v42  ;;  %v9947_v42 = vld [vmem:[%s13603_s5 + $0x508] ss:$16 sps:$4 sm:$0xff]  }
 0x5be   : > { %7461 = vmatpush1.bf16.msra.mxu1 %v9872_v8  ;;  %v9952_v8 = vld [vmem:[%s13603_s5 + $0x6ec] ss:$16 sps:$4 sm:$0xff]  }
 0x5bf   : > { %7504 = vmatpush1.bf16.msra.mxu0 %v9875_v32  ;;  %7462 = vmatprep.subr.bf16.mxu1 %v9880_v21  ;;  %v9955_v32 = vld [vmem:[%s13603_s5 + $0x8ec] ss:$16 sps:$4 sm:$0xff]   ;;  %v9950_v21 = vld [vmem:[%s13603_s5 + $0x6e8] ss:$16 sps:$4 sm:$0xff]  }
 0x5c0   : > { %7505 = vmatprep.subr.bf16.mxu0 %v9883_v14  ;;  %v9953_v14 = vld [vmem:[%s13603_s5 + $0x8e8] ss:$16 sps:$4 sm:$0xff]  }
 0x5c2   : > { %7463 = vmatpush1.bf16.msra.mxu1 %v9878_v25  ;;  %v9958_v25 = vld [vmem:[%s13603_s5 + $0x6cc] ss:$16 sps:$4 sm:$0xff]  }
 0x5c3   : > { %7506 = vmatpush1.bf16.msra.mxu0 %v9881_v54  ;;  %7464 = vmatprep.subr.bf16.mxu1 %v9886_v36  ;;  %v9961_v54 = vld [vmem:[%s13603_s5 + $0x8cc] ss:$16 sps:$4 sm:$0xff]   ;;  %v9956_v36 = vld [vmem:[%s13603_s5 + $0x6c8] ss:$16 sps:$4 sm:$0xff]  }
 0x5c4   : > { %7507 = vmatprep.subr.bf16.mxu0 %v9889_v62  ;;  %v9959_v62 = vld [vmem:[%s13603_s5 + $0x8c8] ss:$16 sps:$4 sm:$0xff]  }
 0x5c6   : > { %7465 = vmatpush1.bf16.msra.mxu1 %v9884_v12  ;;  %v9965_v12 = vld [vmem:[%s13603_s5 + $0x8a8] ss:$16 sps:$4 sm:$0xff]  }
 0x5c7   : > { %7508 = vmatpush1.bf16.msra.mxu0 %v9887_v16  ;;  %7466 = vmatprep.subr.bf16.mxu1 %v9892_v24  ;;  %v9973_v16 = vld [vmem:[%s13603_s5 + $0x88c] ss:$16 sps:$4 sm:$0xff]   ;;  %v9968_v24 = vld [vmem:[%s13603_s5 + $0x688] ss:$16 sps:$4 sm:$0xff]  }
 0x5c8   : > { %7509 = vmatprep.subr.bf16.mxu0 %v9895_v10  ;;  %v9971_v10 = vld [vmem:[%s13603_s5 + $0x888] ss:$16 sps:$4 sm:$0xff]  }
 0x5ca   : > { %7467 = vmatpush1.bf16.msra.mxu1 %v9890_v33  ;;  %v9976_v33 = vld [vmem:[%s13603_s5 + $0x66c] ss:$16 sps:$4 sm:$0xff]  }
 0x5cb   : > { %7510 = vmatpush1.bf16.msra.mxu0 %v9893_v44  ;;  %7468 = vmatprep.subr.bf16.mxu1 %v9898_v15  ;;  %v9979_v44 = vld [vmem:[%s13603_s5 + $0x86c] ss:$16 sps:$4 sm:$0xff]   ;;  %v9974_v15 = vld [vmem:[%s13603_s5 + $0x668] ss:$16 sps:$4 sm:$0xff]  }
 0x5cc   : > { %7511 = vmatprep.subr.bf16.mxu0 %v9901_v45  ;;  %v9977_v45 = vld [vmem:[%s13603_s5 + $0x868] ss:$16 sps:$4 sm:$0xff]  }
 0x5ce   : > { %7469 = vmatpush1.bf16.msra.mxu1 %v9896_v53  ;;  %v9982_v53 = vld [vmem:[%s13603_s5 + $0x64c] ss:$16 sps:$4 sm:$0xff]  }
 0x5cf   : > { %7512 = vmatpush1.bf16.msra.mxu0 %v9899_v19  ;;  %7470 = vmatprep.subr.bf16.mxu1 %v9904_v57  ;;  %v9985_v19 = vld [vmem:[%s13603_s5 + $0x84c] ss:$16 sps:$4 sm:$0xff]   ;;  %v9980_v57 = vld [vmem:[%s13603_s5 + $0x648] ss:$16 sps:$4 sm:$0xff]  }
 0x5d0   : > { %7513 = vmatprep.subr.bf16.mxu0 %v9907_v29  ;;  %v9983_v29 = vld [vmem:[%s13603_s5 + $0x848] ss:$16 sps:$4 sm:$0xff]  }
 0x5d2   : > { %7471 = vmatpush2.bf16.msra.mxu1 %v9902_v18  ;;  %v9988_v18 = vld [vmem:[%s13603_s5 + $0x62c] ss:$16 sps:$4 sm:$0xff]  }
 0x5d3   : > { %7514 = vmatpush2.bf16.msra.mxu0 %v9905_v58  ;;  %7472 = vmatprep.subr.bf16.mxu1 %v9910_v35  ;;  %v9991_v58 = vld [vmem:[%s13603_s5 + $0x82c] ss:$16 sps:$4 sm:$0xff]   ;;  %v9986_v35 = vld [vmem:[%s13603_s5 + $0x628] ss:$16 sps:$4 sm:$0xff]  }
 0x5d4   : > { %7515 = vmatprep.subr.bf16.mxu0 %v9913_v63  ;;  %v9989_v63 = vld [vmem:[%s13603_s5 + $0x828] ss:$16 sps:$4 sm:$0xff]  }
 0x5d6   : > { %7473 = vmatpush2.bf16.msra.mxu1 %v9908_v37  ;;  %v9994_v37 = vld [vmem:[%s13603_s5 + $0x60c] ss:$16 sps:$4 sm:$0xff]  }
 0x5d7   : > { %7516 = vmatpush2.bf16.msra.mxu0 %v9911_v0  ;;  %7474 = vmatprep.subr.bf16.mxu1 %v9916_v41  ;;  %v9997_v0 = vld [vmem:[%s13603_s5 + $0x80c] ss:$16 sps:$4 sm:$0xff]   ;;  %v9992_v41 = vld [vmem:[%s13603_s5 + $0x608] ss:$16 sps:$4 sm:$0xff]  }
 0x5d8   : > { %7517 = vmatprep.subr.bf16.mxu0 %v9919_v5  ;;  %v9995_v5 = vld [vmem:[%s13603_s5 + $0x808] ss:$16 sps:$4 sm:$0xff]  }
 0x5da   : > { %7475 = vmatpush2.bf16.msra.mxu1 %v9914_v55  ;;  %v10000_v55 = vld [vmem:[%s13603_s5 + $0x7ec] ss:$16 sps:$4 sm:$0xff]  }
 0x5db   : > { %7518 = vmatpush2.bf16.msra.mxu0 %v9917_v13  ;;  %7476 = vmatprep.subr.bf16.mxu1 %v9922_v22  ;;  %v10003_v13 = vld [vmem:[%s13603_s5 + $0x9ec] ss:$16 sps:$4 sm:$0xff]   ;;  %v9998_v22 = vld [vmem:[%s13603_s5 + $0x7e8] ss:$16 sps:$4 sm:$0xff]  }
 0x5dc   : > { %7519 = vmatprep.subr.bf16.mxu0 %v9925_v23  ;;  %v10001_v23 = vld [vmem:[%s13603_s5 + $0x9e8] ss:$16 sps:$4 sm:$0xff]  }
 0x5de   : > { %7477 = vmatpush2.bf16.msra.mxu1 %v9920_v60  ;;  %v10006_v60 = vld [vmem:[%s13603_s5 + $0x7cc] ss:$16 sps:$4 sm:$0xff]  }
 0x5df   : > { %7520 = vmatpush2.bf16.msra.mxu0 %v9923_v11  ;;  %7478 = vmatprep.subr.bf16.mxu1 %v9928_v17  ;;  %v10009_v11 = vld [vmem:[%s13603_s5 + $0x9cc] ss:$16 sps:$4 sm:$0xff]   ;;  %v10004_v17 = vld [vmem:[%s13603_s5 + $0x7c8] ss:$16 sps:$4 sm:$0xff]  }
 0x5e0   : > { %7521 = vmatprep.subr.bf16.mxu0 %v9931_v59  ;;  %v10007_v59 = vld [vmem:[%s13603_s5 + $0x9c8] ss:$16 sps:$4 sm:$0xff]  }
 0x5e2   : > { %7479 = vmatpush2.bf16.msra.mxu1 %v9926_v4  ;;  %v10012_v4 = vld [vmem:[%s13603_s5 + $0x7ac] ss:$16 sps:$4 sm:$0xff]  }
 0x5e3   : > { %7522 = vmatpush2.bf16.msra.mxu0 %v9929_v27  ;;  %7480 = vmatprep.subr.bf16.mxu1 %v9934_v51  ;;  %v10015_v27 = vld [vmem:[%s13603_s5 + $0x9ac] ss:$16 sps:$4 sm:$0xff]   ;;  %v10010_v51 = vld [vmem:[%s13603_s5 + $0x7a8] ss:$16 sps:$4 sm:$0xff]  }
 0x5e4   : > { %7523 = vmatprep.subr.bf16.mxu0 %v9937_v30  ;;  %v10013_v30 = vld [vmem:[%s13603_s5 + $0x9a8] ss:$16 sps:$4 sm:$0xff]  }
 0x5e6   : > { %7481 = vmatpush2.bf16.msra.mxu1 %v9932_v20  ;;  %v10018_v20 = vld [vmem:[%s13603_s5 + $0x78c] ss:$16 sps:$4 sm:$0xff]  }
 0x5e7   : > { %7524 = vmatpush2.bf16.msra.mxu0 %v9935_v3  ;;  %7482 = vmatprep.subr.bf16.mxu1 %v9940_v7  ;;  %v10021_v3 = vld [vmem:[%s13603_s5 + $0x98c] ss:$16 sps:$4 sm:$0xff]   ;;  %v10016_v7 = vld [vmem:[%s13603_s5 + $0x788] ss:$16 sps:$4 sm:$0xff]  }
 0x5e8   : > { %7525 = vmatprep.subr.bf16.mxu0 %v9943_v40  ;;  %v10019_v40 = vld [vmem:[%s13603_s5 + $0x988] ss:$16 sps:$4 sm:$0xff]  }
 0x5ea   : > { %7483 = vmatpush2.bf16.msra.mxu1 %v9938_v61  ;;  %v10024_v61 = vld [vmem:[%s13603_s5 + $0x76c] ss:$16 sps:$4 sm:$0xff]  }
 0x5eb   : > { %7526 = vmatpush2.bf16.msra.mxu0 %v9941_v28  ;;  %7484 = vmatprep.subr.bf16.mxu1 %v9946_v31  ;;  %v10027_v28 = vld [vmem:[%s13603_s5 + $0x96c] ss:$16 sps:$4 sm:$0xff]   ;;  %v10022_v31 = vld [vmem:[%s13603_s5 + $0x768] ss:$16 sps:$4 sm:$0xff]  }
 0x5ec   : > { %7527 = vmatprep.subr.bf16.mxu0 %v9949_v9  ;;  %v10025_v9 = vld [vmem:[%s13603_s5 + $0x968] ss:$16 sps:$4 sm:$0xff]  }
 0x5ee   : > { %7485 = vmatpush2.bf16.msra.mxu1 %v9944_v48  ;;  %v10030_v48 = vld [vmem:[%s13603_s5 + $0x74c] ss:$16 sps:$4 sm:$0xff]  }
 0x5ef   : > { %7528 = vmatpush2.bf16.msra.mxu0 %v9947_v42  ;;  %7540 = vmatprep.subr.bf16.mxu1 %v9952_v8  ;;  %v10033_v42 = vld [vmem:[%s13603_s5 + $0x94c] ss:$16 sps:$4 sm:$0xff]   ;;  %v10028_v8 = vld [vmem:[%s13603_s5 + $0x748] ss:$16 sps:$4 sm:$0xff]  }
 0x5f0   : > { %7583 = vmatprep.subr.bf16.mxu0 %v9955_v32  ;;  %v10031_v32 = vld [vmem:[%s13603_s5 + $0x948] ss:$16 sps:$4 sm:$0xff]  }
 0x5f1   : > { %7487 = vmatmul.mubr.bf16.vlgmr.msra.gmra.mxu1 %v11867_v39  ;;  %v9964_v39 = vld [vmem:[%s13603_s5 + $0x6ac] ss:$16 sps:$4 sm:$0xff]  }
 0x5f2   : > { %7530 = vmatmul.mubr.bf16.vlgmr.msra.gmra.mxu0 %v12105_v2  ;;  %7541 = vmatpush1.bf16.msra.mxu1 %v9950_v21  ;;  %v9967_v2 = vld [vmem:[%s13603_s5 + $0x8ac] ss:$16 sps:$4 sm:$0xff]  }
 0x5f3   : > { %7572 = vmatprep.mubr.bf16.mxu1 %v11931_v52  ;;  %7584 = vmatpush1.bf16.msra.mxu0 %v9953_v14  ;;  %v9962_v52 = vld [vmem:[%s13603_s5 + $0x6a8] ss:$16 sps:$4 sm:$0xff]   ;;  %v10036_v21 = vld [vmem:[%s13603_s5 + $0x72c] ss:$16 sps:$4 sm:$0xff]  }
 0x5f4   : > { %7615 = vmatprep.mubr.bf16.mxu0 %v12119_v46  ;;  %7542 = vmatprep.subr.bf16.mxu1 %v9958_v25  ;;  %v9970_v46 = vld [vmem:[%s13603_s5 + $0x68c] ss:$16 sps:$4 sm:$0xff]   ;;  %v10034_v25 = vld [vmem:[%s13603_s5 + $0x728] ss:$16 sps:$4 sm:$0xff]  }
 0x5f5   : > { %7585 = vmatprep.subr.bf16.mxu0 %v9961_v54  ;;  %v10039_v14 = vld [vmem:[%s13603_s5 + $0x92c] ss:$16 sps:$4 sm:$0xff]   ;;  %v10037_v54 = vld [vmem:[%s13603_s5 + $0x928] ss:$16 sps:$4 sm:$0xff]  }
 0x5f6   : > { %7543 = vmatpush1.bf16.msra.mxu1 %v9956_v36  ;;  %v10042_v36 = vld [vmem:[%s13603_s5 + $0x70c] ss:$16 sps:$4 sm:$0xff]  }
 0x5f7   : > { %7586 = vmatpush1.bf16.msra.mxu0 %v9959_v62  ;;  %7544 = vmatprep.subr.bf16.mxu1 %v9964_v39  ;;  %v10045_v62 = vld [vmem:[%s13603_s5 + $0x90c] ss:$16 sps:$4 sm:$0xff]   ;;  %v10040_v39 = vld [vmem:[%s13603_s5 + $0x708] ss:$16 sps:$4 sm:$0xff]  }
 0x5f8   : > { %7587 = vmatprep.subr.bf16.mxu0 %v9967_v2  ;;  %v10043_v2 = vld [vmem:[%s13603_s5 + $0x908] ss:$16 sps:$4 sm:$0xff]  }
 0x5fa   : > { %7545 = vmatpush1.bf16.msra.mxu1 %v9962_v52  ;;  %v10048_v52 = vld [vmem:[%s13603_s5 + $0xaec] ss:$16 sps:$4 sm:$0xff]  }
 0x5fb   : > { %7588 = vmatpush1.bf16.msra.mxu0 %v9965_v12  ;;  %7546 = vmatprep.subr.bf16.mxu1 %v9970_v46  ;;  %v10051_v12 = vld [vmem:[%s13603_s5 + $0xcec] ss:$16 sps:$4 sm:$0xff]   ;;  %v10046_v46 = vld [vmem:[%s13603_s5 + $0xae8] ss:$16 sps:$4 sm:$0xff]  }
 0x5fc   : > { %7589 = vmatprep.subr.bf16.mxu0 %v9973_v16  ;;  %v10049_v16 = vld [vmem:[%s13603_s5 + $0xce8] ss:$16 sps:$4 sm:$0xff]  }
 0x5fe   : > { %7547 = vmatpush1.bf16.msra.mxu1 %v9968_v24  ;;  %v10054_v24 = vld [vmem:[%s13603_s5 + $0xacc] ss:$16 sps:$4 sm:$0xff]  }
 0x5ff   : > { %7590 = vmatpush1.bf16.msra.mxu0 %v9971_v10  ;;  %7548 = vmatprep.subr.bf16.mxu1 %v9976_v33  ;;  %v10057_v10 = vld [vmem:[%s13603_s5 + $0xccc] ss:$16 sps:$4 sm:$0xff]   ;;  %v10052_v33 = vld [vmem:[%s13603_s5 + $0xac8] ss:$16 sps:$4 sm:$0xff]  }
 0x600   : > { %7591 = vmatprep.subr.bf16.mxu0 %v9979_v44  ;;  %v10055_v44 = vld [vmem:[%s13603_s5 + $0xcc8] ss:$16 sps:$4 sm:$0xff]  }
 0x602   : > { %7549 = vmatpush1.bf16.msra.mxu1 %v9974_v15  ;;  %v10061_v15 = vld [vmem:[%s13603_s5 + $0xca8] ss:$16 sps:$4 sm:$0xff]  }
 0x603   : > { %7592 = vmatpush1.bf16.msra.mxu0 %v9977_v45  ;;  %7550 = vmatprep.subr.bf16.mxu1 %v9982_v53  ;;  %v10069_v45 = vld [vmem:[%s13603_s5 + $0xc8c] ss:$16 sps:$4 sm:$0xff]   ;;  %v13160_v53 = vpop.f32.mrf.mxu1 }
 0x604   : > { %7593 = vmatprep.subr.bf16.mxu0 %v9985_v19  ;;  %v10064_v19 = vld [vmem:[%s13603_s5 + $0xa88] ss:$16 sps:$4 sm:$0xff]  }
 0x606   : > { %7551 = vmatpush1.bf16.msra.mxu1 %v9980_v57  ;;  %v10067_v57 = vld [vmem:[%s13603_s5 + $0xc88] ss:$16 sps:$4 sm:$0xff]  }
 0x607   : > { %7594 = vmatpush1.bf16.msra.mxu0 %v9983_v29  ;;  %7552 = vmatprep.subr.bf16.mxu1 %v9988_v18  ;;  %v10072_v29 = vld [vmem:[%s13603_s5 + $0xa6c] ss:$16 sps:$4 sm:$0xff]  }
 0x608   : > { %7595 = vmatprep.subr.bf16.mxu0 %v9991_v58  ;;  %v10075_v18 = vld [vmem:[%s13603_s5 + $0xc6c] ss:$16 sps:$4 sm:$0xff]   ;;  %v13174_v58 = vpop.f32.mrf.mxu1 }
 0x60a   : > { %7553 = vmatpush1.bf16.msra.mxu1 %v9986_v35  ;;  %v10070_v35 = vld [vmem:[%s13603_s5 + $0xa68] ss:$16 sps:$4 sm:$0xff]  }
 0x60b   : > { %7596 = vmatpush1.bf16.msra.mxu0 %v9989_v63  ;;  %7554 = vmatprep.subr.bf16.mxu1 %v9994_v37  ;;  %v13179_v63 = vpop.f32.mrf.mxu0  ;;  %v10073_v37 = vld [vmem:[%s13603_s5 + $0xc68] ss:$16 sps:$4 sm:$0xff]  }
 0x60c   : > { %7597 = vmatprep.subr.bf16.mxu0 %v9997_v0  ;;  %v10078_v0 = vld [vmem:[%s13603_s5 + $0xa4c] ss:$16 sps:$4 sm:$0xff]  }
 0x60e   : > { %7555 = vmatpush1.bf16.msra.mxu1 %v9992_v41  ;;  %v10081_v41 = vld [vmem:[%s13603_s5 + $0xc4c] ss:$16 sps:$4 sm:$0xff]  }
 0x60f   : > { %7598 = vmatpush1.bf16.msra.mxu0 %v9995_v5  ;;  %7556 = vmatprep.subr.bf16.mxu1 %v10000_v55  ;;  %v13190_v5 = vpop.f32.mrf.mxu1  ;;  %v10076_v55 = vld [vmem:[%s13603_s5 + $0xa48] ss:$16 sps:$4 sm:$0xff]  }
 0x610   : > { %7599 = vmatprep.subr.bf16.mxu0 %v10003_v13  ;;  %v13195_v13 = vpop.f32.mrf.mxu0 }
 0x612   : > { %7557 = vmatpush2.bf16.msra.mxu1 %v9998_v22  ;;  %v10079_v22 = vld [vmem:[%s13603_s5 + $0xc48] ss:$16 sps:$4 sm:$0xff]  }
 0x613   : > { %7600 = vmatpush2.bf16.msra.mxu0 %v10001_v23  ;;  %7558 = vmatprep.subr.bf16.mxu1 %v10006_v60  ;;  %v10084_v23 = vld [vmem:[%s13603_s5 + $0xa2c] ss:$16 sps:$4 sm:$0xff]  }
 0x614   : > { %7601 = vmatprep.subr.bf16.mxu0 %v10009_v11  ;;  %v10087_v60 = vld [vmem:[%s13603_s5 + $0xc2c] ss:$16 sps:$4 sm:$0xff]   ;;  %v13206_v11 = vpop.f32.mrf.mxu1 }
 0x616   : > { %7559 = vmatpush2.bf16.msra.mxu1 %v10004_v17  ;;  %v10082_v17 = vld [vmem:[%s13603_s5 + $0xa28] ss:$16 sps:$4 sm:$0xff]  }
 0x617   : > { %7602 = vmatpush2.bf16.msra.mxu0 %v10007_v59  ;;  %7560 = vmatprep.subr.bf16.mxu1 %v10012_v4  ;;  %v13211_v59 = vpop.f32.mrf.mxu0  ;;  %v13213_v4 = vpop.f32.mrf.mxu1 }
 0x618   : > { %7603 = vmatprep.subr.bf16.mxu0 %v10015_v27  ;;  %v10085_v27 = vld [vmem:[%s13603_s5 + $0xc28] ss:$16 sps:$4 sm:$0xff]  }
 0x61a   : > { %7561 = vmatpush2.bf16.msra.mxu1 %v10010_v51  ;;  %v10090_v51 = vld [vmem:[%s13603_s5 + $0xa0c] ss:$16 sps:$4 sm:$0xff]  }
 0x61b   : > { %7604 = vmatpush2.bf16.msra.mxu0 %v10013_v30  ;;  %7562 = vmatprep.subr.bf16.mxu1 %v10018_v20  ;;  %v10093_v30 = vld [vmem:[%s13603_s5 + $0xc0c] ss:$16 sps:$4 sm:$0xff]   ;;  %v10088_v20 = vld [vmem:[%s13603_s5 + $0xa08] ss:$16 sps:$4 sm:$0xff]  }
 0x61c   : > { %7605 = vmatprep.subr.bf16.mxu0 %v10021_v3  ;;  %v13227_v3 = vpop.f32.mrf.mxu0 }
 0x61e   : > { %7563 = vmatpush2.bf16.msra.mxu1 %v10016_v7  ;;  %v13229_v7 = vpop.f32.mrf.mxu1 }
 0x61f   : > { %7606 = vmatpush2.bf16.msra.mxu0 %v10019_v40  ;;  %7564 = vmatprep.subr.bf16.mxu1 %v10024_v61  ;;  %v10091_v40 = vld [vmem:[%s13603_s5 + $0xc08] ss:$16 sps:$4 sm:$0xff]   ;;  %v10096_v61 = vld [vmem:[%s13603_s5 + $0xbec] ss:$16 sps:$4 sm:$0xff]  }
 0x620   : > { %7607 = vmatprep.subr.bf16.mxu0 %v10027_v28  ;;  %v10099_v28 = vld [vmem:[%s13603_s5 + $0xdec] ss:$16 sps:$4 sm:$0xff]  }
 0x622   : > { %7565 = vmatpush2.bf16.msra.mxu1 %v10022_v31  ;;  %v13240_v31 = vpop.f32.mrf.mxu0 }
 0x623   : > { %7608 = vmatpush2.bf16.msra.mxu0 %v10025_v9  ;;  %7566 = vmatprep.subr.bf16.mxu1 %v10030_v48  ;;  %v10094_v9 = vld [vmem:[%s13603_s5 + $0xbe8] ss:$16 sps:$4 sm:$0xff]   ;;  %v13245_v48 = vpop.f32.mrf.mxu1 }
 0x624   : > { %7609 = vmatprep.subr.bf16.mxu0 %v10033_v42  ;;  %v10097_v42 = vld [vmem:[%s13603_s5 + $0xde8] ss:$16 sps:$4 sm:$0xff]  }
 0x626   : > { %7567 = vmatpush2.bf16.msra.mxu1 %v10028_v8  ;;  %v10102_v8 = vld [vmem:[%s13603_s5 + $0xbcc] ss:$16 sps:$4 sm:$0xff]  }
 0x627   : > { %7610 = vmatpush2.bf16.msra.mxu0 %v10031_v32  ;;  %7568 = vmatprep.subr.bf16.mxu1 %v10036_v21  ;;  %v10105_v32 = vld [vmem:[%s13603_s5 + $0xdcc] ss:$16 sps:$4 sm:$0xff]   ;;  %v7189_v21 = vpop.f32.mrf.mxu0 }
 0x628   : > { %7611 = vmatprep.subr.bf16.mxu0 %v10039_v14  ;;  %v10100_v14 = vld [vmem:[%s13603_s5 + $0xbc8] ss:$16 sps:$4 sm:$0xff]  }
 0x62a   : > { %7569 = vmatpush2.bf16.msra.mxu1 %v10034_v25  ;;  %v7150_v25 = vpop.f32.mrf.mxu1 }
 0x62b   : > { %7612 = vmatpush2.bf16.msra.mxu0 %v10037_v54  ;;  %7570 = vmatprep.subr.bf16.mxu1 %v10042_v36  ;;  %v10103_v54 = vld [vmem:[%s13603_s5 + $0xdc8] ss:$16 sps:$4 sm:$0xff]   ;;  %v10108_v36 = vld [vmem:[%s13603_s5 + $0xbac] ss:$16 sps:$4 sm:$0xff]  }
 0x62c   : > { %7613 = vmatprep.subr.bf16.mxu0 %v10045_v62  ;;  %v10111_v62 = vld [vmem:[%s13603_s5 + $0xdac] ss:$16 sps:$4 sm:$0xff]  }
 0x62e   : > { %7571 = vmatpush2.bf16.msra.mxu1 %v10040_v39  ;;  %v7191_v39 = vpop.f32.mrf.mxu0 }
 0x62f   : > { %7614 = vmatpush2.bf16.msra.mxu0 %v10043_v2  ;;  %7626 = vmatprep.subr.bf16.mxu1 %v10048_v52  ;;  %v7230_v2 = vpop.f32.mrf.mxu1  ;;  %v10106_v52 = vld [vmem:[%s13603_s5 + $0xba8] ss:$16 sps:$4 sm:$0xff]  }
 0x630   : > { %7669 = vmatprep.subr.bf16.mxu0 %v10051_v12  ;;  %v10109_v12 = vld [vmem:[%s13603_s5 + $0xda8] ss:$16 sps:$4 sm:$0xff]  }
 0x631   : > { %7573 = vmatmul.mubr.bf16.vlgmr.msra.gmra.mxu1 %v12109_v38  ;;  %v10060_v38 = vld [vmem:[%s13603_s5 + $0xaac] ss:$16 sps:$4 sm:$0xff]  }
 0x632   : > { %7616 = vmatmul.mubr.bf16.vlgmr.msra.gmra.mxu0 %v12319_v47  ;;  %7627 = vmatpush1.bf16.msra.mxu1 %v10046_v46  ;;  %v10063_v47 = vld [vmem:[%s13603_s5 + $0xcac] ss:$16 sps:$4 sm:$0xff]  }
 0x633   : > { %7658 = vmatprep.mubr.bf16.mxu1 %v12121_v49  ;;  %7670 = vmatpush1.bf16.msra.mxu0 %v10049_v16  ;;  %v10058_v49 = vld [vmem:[%s13603_s5 + $0xaa8] ss:$16 sps:$4 sm:$0xff]   ;;  %v10114_v46 = vld [vmem:[%s13603_s5 + $0xb8c] ss:$16 sps:$4 sm:$0xff]  }
 0x634   : > { %7701 = vmatprep.mubr.bf16.mxu0 %v12337_v26  ;;  %7628 = vmatprep.subr.bf16.mxu1 %v10054_v24  ;;  %v10066_v26 = vld [vmem:[%s13603_s5 + $0xa8c] ss:$16 sps:$4 sm:$0xff]   ;;  %v7193_v24 = vpop.f32.mrf.mxu0 }
 0x635   : > { %7671 = vmatprep.subr.bf16.mxu0 %v10057_v10  ;;  %v10117_v16 = vld [vmem:[%s13603_s5 + $0xd8c] ss:$16 sps:$4 sm:$0xff]   ;;  %v7232_v10 = vpop.f32.mrf.mxu1 }
 0x636   : > { %7629 = vmatpush1.bf16.msra.mxu1 %v10052_v33  ;;  %v10112_v33 = vld [vmem:[%s13603_s5 + $0xb88] ss:$16 sps:$4 sm:$0xff]  }
 0x637   : > { %7672 = vmatpush1.bf16.msra.mxu0 %v10055_v44  ;;  %7630 = vmatprep.subr.bf16.mxu1 %v10060_v38  ;;  %v7273_v44 = vpop.f32.mrf.mxu0  ;;  %v10115_v38 = vld [vmem:[%s13603_s5 + $0xd88] ss:$16 sps:$4 sm:$0xff]  }
 0x638   : > { %7673 = vmatprep.subr.bf16.mxu0 %v10063_v47  ;;  %v10120_v47 = vld [vmem:[%s13603_s5 + $0xb6c] ss:$16 sps:$4 sm:$0xff]  }
 0x63a   : > { %7631 = vmatpush1.bf16.msra.mxu1 %v10058_v49  ;;  %v10123_v49 = vld [vmem:[%s13603_s5 + $0xd6c] ss:$16 sps:$4 sm:$0xff]  }
 0x63b   : > { %7674 = vmatpush1.bf16.msra.mxu0 %v10061_v15  ;;  %7632 = vmatprep.subr.bf16.mxu1 %v10066_v26  ;;  %v7234_v15 = vpop.f32.mrf.mxu1  ;;  %v7102_v26 = vadd.f32 %v13179_v63, %v13160_v53 }
 0x63c   : > { %7675 = vmatprep.subr.bf16.mxu0 %v10069_v45  ;;  %v10118_v45 = vld [vmem:[%s13603_s5 + $0xb68] ss:$16 sps:$4 sm:$0xff]  }
 0x63d   : > { %v7145_v53 = vadd.f32 %v13213_v4, %v7102_v26  ;;  %v7236_v63 = vpop.f32.mrf.mxu1 }
 0x63e   : > { %7633 = vmatpush1.bf16.msra.mxu1 %v10064_v19  ;;  %v7275_v19 = vpop.f32.mrf.mxu0 }
 0x63f   : > { %7676 = vmatpush1.bf16.msra.mxu0 %v10067_v57  ;;  %7634 = vmatprep.subr.bf16.mxu1 %v10072_v29  ;;  %v10121_v57 = vld [vmem:[%s13603_s5 + $0xd68] ss:$16 sps:$4 sm:$0xff]   ;;  %v10126_v29 = vld [vmem:[%s13603_s5 + $0xb4c] ss:$16 sps:$4 sm:$0xff]  }
 0x640   : > { %7677 = vmatprep.subr.bf16.mxu0 %v10075_v18  ;;  %v7104_v18 = vadd.f32 %v13195_v13, %v13174_v58  ;;  %v7316_v58 = vpop.f32.mrf.mxu1  ;;  %v10127_v13 = vld [vmem:[%s13603_s5 + $0xd48] ss:$16 sps:$4 sm:$0xff]  }
 0x642   : > { %7635 = vmatpush1.bf16.msra.mxu1 %v10070_v35  ;;  %v10129_v35 = vld [vmem:[%s13603_s5 + $0xd4c] ss:$16 sps:$4 sm:$0xff]  }
 0x643   : > { %7678 = vmatpush1.bf16.msra.mxu0 %v10073_v37  ;;  %7636 = vmatprep.subr.bf16.mxu1 %v10078_v0  ;;  %v7106_v37 = vadd.f32 %v13211_v59, %v13190_v5  ;;  %v7147_v0 = vadd.f32 %v13229_v7, %v7104_v18  ;;  %v7108_v5 = vadd.f32 %v13227_v3, %v13206_v11  ;;  %v10133_v11 = vld [vmem:[%s13603_s5 + $0xd28] ss:$16 sps:$4 sm:$0xff]   ;;  %v10138_v3 = vld [vmem:[%s13603_s5 + $0xb0c] ss:$16 sps:$4 sm:$0xff]  }
 0x644   : > { %7679 = vmatprep.subr.bf16.mxu0 %v10081_v41  ;;  %v10124_v41 = vld [vmem:[%s13603_s5 + $0xb48] ss:$16 sps:$4 sm:$0xff]  }
 0x645   : > { %v7190_v59 = vadd.f32 %v7189_v21, %v7147_v0  ;;  %v7151_v4 = vadd.f32 %v7150_v25, %v7108_v5  ;;  %v10144_v21 = vld [vmem:[%s13603_s5 + $0xeec] ss:$16 sps:$4 sm:$0xff]  }
 0x646   : > { %7637 = vmatpush1.bf16.msra.mxu1 %v10076_v55  ;;  %v7277_v55 = vpop.f32.mrf.mxu0 }
 0x647   : > { %7680 = vmatpush1.bf16.msra.mxu0 %v10079_v22  ;;  %7638 = vmatprep.subr.bf16.mxu1 %v10084_v23  ;;  %v10132_v22 = vld [vmem:[%s13603_s5 + $0xb2c] ss:$16 sps:$4 sm:$0xff]   ;;  %v7188_v23 = vadd.f32 %v13240_v31, %v7145_v53  ;;  %v7194_v31 = vadd.f32 %v7193_v24, %v7151_v4 }
 0x648   : > { %7681 = vmatprep.subr.bf16.mxu0 %v10087_v60  ;;  %v7149_v60 = vadd.f32 %v13245_v48, %v7106_v37 }
 0x649   : > { %v7237_v25 = vadd.f32 %v7236_v63, %v7194_v31 }
 0x64a   : > { %7639 = vmatpush1.bf16.msra.mxu1 %v10082_v17  ;;  %v10135_v17 = vld [vmem:[%s13603_s5 + $0xd2c] ss:$16 sps:$4 sm:$0xff]   ;;  %v7192_v7 = vadd.f32 %v7191_v39, %v7149_v60 }
 0x64b   : > { %7682 = vmatpush1.bf16.msra.mxu0 %v10085_v27  ;;  %7640 = vmatprep.subr.bf16.mxu1 %v10090_v51  ;;  %v7231_v27 = vadd.f32 %v7230_v2, %v7188_v23  ;;  %v10130_v51 = vld [vmem:[%s13603_s5 + $0xb28] ss:$16 sps:$4 sm:$0xff]   ;;  %v7826_v23 = vld [vmem:[%s13604_s6 + $0x20] sm:$0xff] }
 0x64c   : > { %7683 = vmatprep.subr.bf16.mxu0 %v10093_v30  ;;  %v7279_v30 = vpop.f32.mrf.mxu0  ;;  %v7235_v48 = vadd.f32 %v7234_v15, %v7192_v7  ;;  %v10163_v7 = vld [vmem:[%s13603_s5 + $0x1088] ss:$16 sps:$4 sm:$0xff]  }
 0x64e   : > { %7641 = vmatpush1.bf16.msra.mxu1 %v10088_v20  ;;  %v7318_v20 = vpop.f32.mrf.mxu1  ;;  %v7278_v39 = vadd.f32 %v7277_v55, %v7235_v48 }
 0x64f   : > { %7684 = vmatpush1.bf16.msra.mxu0 %v10091_v40  ;;  %7642 = vmatprep.subr.bf16.mxu1 %v10096_v61  ;;  %v7233_v40 = vadd.f32 %v7232_v10, %v7190_v59  ;;  %v10141_v61 = vld [vmem:[%s13603_s5 + $0xd0c] ss:$16 sps:$4 sm:$0xff]  }
 0x650   : > { %7685 = vmatprep.subr.bf16.mxu0 %v10099_v28  ;;  %v7359_v28 = vpop.f32.mrf.mxu0  ;;  %v7823_v59 = vld [vmem:[%s13604_s6 + $0x8] sm:$0xff] }
 0x652   : > { %7643 = vmatpush2.bf16.msra.mxu1 %v10094_v9  ;;  %v7274_v9 = vadd.f32 %v7273_v44, %v7231_v27 }
 0x653   : > { %7686 = vmatpush2.bf16.msra.mxu0 %v10097_v42  ;;  %7644 = vmatprep.subr.bf16.mxu1 %v10102_v8  ;;  %v10136_v42 = vld [vmem:[%s13603_s5 + $0xb08] ss:$16 sps:$4 sm:$0xff]   ;;  %v7320_v8 = vpop.f32.mrf.mxu1 }
 0x654   : > { %7687 = vmatprep.subr.bf16.mxu0 %v10105_v32  ;;  %v10139_v32 = vld [vmem:[%s13603_s5 + $0xd08] ss:$16 sps:$4 sm:$0xff]   ;;  %v7321_v10 = vadd.f32 %v7320_v8, %v7278_v39 }
 0x655   : > { %v10175_v39 = vld [vmem:[%s13603_s5 + $0x1048] ss:$16 sps:$4 sm:$0xff]  }
 0x656   : > { %7645 = vmatpush2.bf16.msra.mxu1 %v10100_v14  ;;  %v7276_v14 = vadd.f32 %v7275_v19, %v7233_v40  ;;  %v10168_v40 = vld [vmem:[%s13603_s5 + $0xe6c] ss:$16 sps:$4 sm:$0xff]  }
 0x657   : > { %7688 = vmatpush2.bf16.msra.mxu0 %v10103_v54  ;;  %7646 = vmatprep.subr.bf16.mxu1 %v10108_v36  ;;  %v7317_v54 = vadd.f32 %v7316_v58, %v7274_v9  ;;  %v10147_v36 = vld [vmem:[%s13603_s5 + $0x10ec] ss:$16 sps:$4 sm:$0xff]   ;;  %v10157_v58 = vld [vmem:[%s13603_s5 + $0x10a8] ss:$16 sps:$4 sm:$0xff]  }
 0x658   : > { %7689 = vmatprep.subr.bf16.mxu0 %v10111_v62  ;;  %v7361_v62 = vpop.f32.mrf.mxu0  ;;  %v7319_v2 = vadd.f32 %v7318_v20, %v7276_v14  ;;  %v10160_v20 = vld [vmem:[%s13603_s5 + $0xe88] ss:$16 sps:$4 sm:$0xff]  }
 0x659   : > { %v7360_v24 = vadd.f32 %v7359_v28, %v7317_v54  ;;  %v10171_v28 = vld [vmem:[%s13603_s5 + $0x106c] ss:$16 sps:$4 sm:$0xff]  }
 0x65a   : > { %7647 = vmatpush2.bf16.msra.mxu1 %v10106_v52  ;;  %v10142_v52 = vld [vmem:[%s13603_s5 + $0xee8] ss:$16 sps:$4 sm:$0xff]   ;;  %v7363_v44 = vpop.f32.mrf.mxu0 }
 0x65b   : > { %7690 = vmatpush2.bf16.msra.mxu0 %v10109_v12  ;;  %7648 = vmatprep.subr.bf16.mxu1 %v10114_v46  ;;  %v7322_v12 = vpop.f32.mrf.mxu1  ;;  %v10145_v46 = vld [vmem:[%s13603_s5 + $0x10e8] ss:$16 sps:$4 sm:$0xff]  }
 0x65c   : > { %7691 = vmatprep.subr.bf16.mxu0 %v10117_v16  ;;  %v7280_v16 = vadd.f32 %v7279_v30, %v7237_v25  ;;  %v7365_v53 = vpop.f32.mrf.mxu0  ;;  %v7827_v30 = vld [vmem:[%s13604_s6 + $0x28] sm:$0xff] }
 0x65d   : > { %v10177_v25 = vld [vmem:[%s13603_s5 + $0x104c] ss:$16 sps:$4 sm:$0xff]  }
 0x65e   : > { %7649 = vmatpush2.bf16.msra.mxu1 %v10112_v33  ;;  %v10150_v33 = vld [vmem:[%s13603_s5 + $0xecc] ss:$16 sps:$4 sm:$0xff]   ;;  %v7323_v15 = vadd.f32 %v7322_v12, %v7280_v16 }
 0x65f   : > { %7692 = vmatpush2.bf16.msra.mxu0 %v10115_v38  ;;  %7650 = vmatprep.subr.bf16.mxu1 %v10120_v47  ;;  %v10153_v47 = vld [vmem:[%s13603_s5 + $0x10cc] ss:$16 sps:$4 sm:$0xff]  }
 0x660   : > { %7693 = vmatprep.subr.bf16.mxu0 %v10123_v49  ;;  %v7362_v49 = vadd.f32 %v7361_v62, %v7319_v2  ;;  %v7366_v63 = vadd.f32 %v7365_v53, %v7323_v15  ;;  %v10172_v62 = vld [vmem:[%s13603_s5 + $0xe48] ss:$16 sps:$4 sm:$0xff]   ;;  %v10180_v2 = vld [vmem:[%s13603_s5 + $0xe2c] ss:$16 sps:$4 sm:$0xff]  }
 0x661   : > { %v10201_v53 = vld [vmem:[%s13603_s5 + $0x11cc] ss:$16 sps:$4 sm:$0xff]  }
 0x662   : > { %7651 = vmatpush2.bf16.msra.mxu1 %v10118_v45  ;;  %v10148_v45 = vld [vmem:[%s13603_s5 + $0xec8] ss:$16 sps:$4 sm:$0xff]  }
 0x663   : > { %7694 = vmatpush2.bf16.msra.mxu0 %v10121_v57  ;;  %7652 = vmatprep.subr.bf16.mxu1 %v10126_v29  ;;  %v10156_v57 = vld [vmem:[%s13603_s5 + $0xeac] ss:$16 sps:$4 sm:$0xff]   ;;  %v7364_v29 = vadd.f32 %v7363_v44, %v7321_v10  ;;  %v10178_v10 = vld [vmem:[%s13603_s5 + $0xe28] ss:$16 sps:$4 sm:$0xff]  }
 0x664   : > { %7695 = vmatprep.subr.bf16.mxu0 %v10129_v35 }
 0x666   : > { %7653 = vmatpush2.bf16.msra.mxu1 %v10124_v41  ;;  %v10154_v41 = vld [vmem:[%s13603_s5 + $0xea8] ss:$16 sps:$4 sm:$0xff]  }
 0x667   : > { %7696 = vmatpush2.bf16.msra.mxu0 %v10127_v13  ;;  %7654 = vmatprep.subr.bf16.mxu1 %v10132_v22  ;;  %v10162_v13 = vld [vmem:[%s13603_s5 + $0xe8c] ss:$16 sps:$4 sm:$0xff]  }
 0x668   : > { %7697 = vmatprep.subr.bf16.mxu0 %v10135_v17  ;;  %v10165_v17 = vld [vmem:[%s13603_s5 + $0x108c] ss:$16 sps:$4 sm:$0xff]  }
 0x66a   : > { %7655 = vmatpush2.bf16.msra.mxu1 %v10130_v51 }
 0x66b   : > { %7698 = vmatpush2.bf16.msra.mxu0 %v10133_v11  ;;  %7656 = vmatprep.subr.bf16.mxu1 %v10138_v3 }
 0x66c   : > { %7699 = vmatprep.subr.bf16.mxu0 %v10141_v61 }
 0x66e   : > { %7657 = vmatpush2.bf16.msra.mxu1 %v10136_v42  ;;  %v10166_v42 = vld [vmem:[%s13603_s5 + $0xe68] ss:$16 sps:$4 sm:$0xff]  }
 0x66f   : > { %7700 = vmatpush2.bf16.msra.mxu0 %v10139_v32  ;;  %7712 = vmatprep.subr.bf16.mxu1 %v10144_v21  ;;  %v10169_v32 = vld [vmem:[%s13603_s5 + $0x1068] ss:$16 sps:$4 sm:$0xff]   ;;  %v10174_v21 = vld [vmem:[%s13603_s5 + $0xe4c] ss:$16 sps:$4 sm:$0xff]  }
 0x670   : > { %7755 = vmatprep.subr.bf16.mxu0 %v10147_v36 }
 0x671   : > { %v7402_v38 = vpop.f32.mrf.mxu1  ;;  %7659 = vmatmul.mubr.bf16.vlgmr.msra.gmra.mxu1 %v12323_v56  ;;  %v10151_v56 = vld [vmem:[%s13603_s5 + $0x10c8] ss:$16 sps:$4 sm:$0xff]  }
 0x672   : > { %v7403_v26 = vadd.f32 %v7402_v38, %v7360_v24  ;;  %7702 = vmatmul.mubr.bf16.vlgmr.msra.gmra.mxu0 %v12526_v43  ;;  %7713 = vmatpush1.bf16.msra.mxu1 %v10142_v52 }
 0x673   : > { %7744 = vmatprep.mubr.bf16.mxu1 %v12331_v50  ;;  %7756 = vmatpush1.bf16.msra.mxu0 %v10145_v46  ;;  %v7404_v19 = vpop.f32.mrf.mxu1  ;;  %v10159_v50 = vld [vmem:[%s13603_s5 + $0x10ac] ss:$16 sps:$4 sm:$0xff]  }
 0x674   : > { %v7806_v18 = vmul.f32 0.01, %v7403_v26  ;;  %7787 = vmatprep.mubr.bf16.mxu0 %v12536_v6  ;;  %v7405_v43 = vadd.f32 %v7404_v19, %v7362_v49  ;;  %7714 = vmatprep.subr.bf16.mxu1 %v10150_v33  ;;  %vm7798_vm0 = vcmp.gt.f32.partialorder %v7403_v26, 0.0  ;;  %v7822_v6 = vld [vmem:[%s13604_s6] sm:$0xff]  ;;  %v10183_v46 = vld [vmem:[%s13603_s5 + $0x102c] ss:$16 sps:$4 sm:$0xff]  }
 0x675   : > { %v7406_v35 = vpop.f32.mrf.mxu1  ;;  %7757 = vmatprep.subr.bf16.mxu0 %v10153_v47  ;;  %v10181_v33 = vld [vmem:[%s13603_s5 + $0x1028] ss:$16 sps:$4 sm:$0xff]   ;;  %v10186_v47 = vld [vmem:[%s13603_s5 + $0xe0c] ss:$16 sps:$4 sm:$0xff]  }
 0x676   : > { %v7807_v37 = vmul.f32 0.01, %v7405_v43  ;;  %v7407_v0 = vadd.f32 %v7406_v35, %v7364_v29  ;;  %7715 = vmatpush1.bf16.msra.mxu1 %v10148_v45  ;;  %vm7799_vm3 = vcmp.gt.f32.partialorder %v7405_v43, 0.0  ;;  %v7814_v22 = vsel %vm7798_vm0, %v7403_v26, %v7806_v18  ;;  %v10189_v49 = vld [vmem:[%s13603_s5 + $0x100c] ss:$16 sps:$4 sm:$0xff]  }
 0x677   : > { %7758 = vmatpush1.bf16.msra.mxu0 %v10151_v56  ;;  %v7408_v55 = vpop.f32.mrf.mxu1  ;;  %7716 = vmatprep.subr.bf16.mxu1 %v10156_v57  ;;  %v7830_v11 = vmul.f32 %v7822_v6, %v7814_v22  ;;  %v10184_v45 = vld [vmem:[%s13603_s5 + $0xe08] ss:$16 sps:$4 sm:$0xff]   ;;  %v10192_v56 = vld [vmem:[%s13603_s5 + $0xfec] ss:$16 sps:$4 sm:$0xff]   ;;  %vm7924_vm0 = vcmask 57344  }
 0x678   : > { %vm7802_vm1 = vcmp.gt.f32.partialorder %v7407_v0, 0.0  ;;  %v7810_v5 = vmul.f32 0.01, %v7407_v0  ;;  %v7409_v60 = vadd.f32 %v7408_v55, %v7366_v63  ;;  %7759 = vmatprep.subr.bf16.mxu0 %v10159_v50  ;;  %v7815_v4 = vsel %vm7799_vm3, %v7405_v43, %v7807_v37  ;;  %v10187_v19 = vld [vmem:[%s13603_s5 + $0x1008] ss:$16 sps:$4 sm:$0xff]  }
 0x679   : > { %v7831_v31 = vmul.f32 %v7823_v59, %v7815_v4  ;;  %v10195_v57 = vld [vmem:[%s13603_s5 + $0x11ec] ss:$16 sps:$4 sm:$0xff]   ;;  %v10190_v18 = vld [vmem:[%s13603_s5 + $0xfe8] ss:$16 sps:$4 sm:$0xff]  }
 0x67a   : > { %v7818_v27 = vsel %vm7802_vm1, %v7407_v0, %v7810_v5  ;;  %vm7803_vm2 = vcmp.gt.f32.partialorder %v7409_v60, 0.0  ;;  %v7811_v51 = vmul.f32 0.01, %v7409_v60  ;;  %7717 = vmatpush1.bf16.msra.mxu1 %v10154_v41  ;;  %v10193_v43 = vld [vmem:[%s13603_s5 + $0x11e8] ss:$16 sps:$4 sm:$0xff]  }
 0x67b   : > { %v7834_v3 = vmul.f32 %v7826_v23, %v7818_v27  ;;  %7760 = vmatpush1.bf16.msra.mxu0 %v10157_v58  ;;  %7718 = vmatprep.subr.bf16.mxu1 %v10162_v13  ;;  %v10198_v50 = vld [vmem:[%s13603_s5 + $0xfcc] ss:$16 sps:$4 sm:$0xff]   ;;  %v10196_v35 = vld [vmem:[%s13603_s5 + $0xfc8] ss:$16 sps:$4 sm:$0xff]  }
 0x67c   : > { %v7819_v61 = vsel %vm7803_vm2, %v7409_v60, %v7811_v51  ;;  %7761 = vmatprep.subr.bf16.mxu0 %v10165_v17  ;;  %v10199_v63 = vld [vmem:[%s13603_s5 + $0x11c8] ss:$16 sps:$4 sm:$0xff]   ;;  %v10204_v37 = vld [vmem:[%s13603_s5 + $0xfac] ss:$16 sps:$4 sm:$0xff]  }
 0x67d   : > { %v7835_v9 = vmul.f32 %v7827_v30, %v7819_v61  ;;  %v7838_v48 = vadd.f32 %v7834_v3, %v7830_v11  ;;  %v10207_v0 = vld [vmem:[%s13603_s5 + $0x11ac] ss:$16 sps:$4 sm:$0xff]   ;;  %v10202_v41 = vld [vmem:[%s13603_s5 + $0xfa8] ss:$16 sps:$4 sm:$0xff]  }
 0x67e   : > { %7719 = vmatpush1.bf16.msra.mxu1 %v10160_v20  ;;  %v10205_v6 = vld [vmem:[%s13603_s5 + $0x11a8] ss:$16 sps:$4 sm:$0xff]   ;;  %v10210_v55 = vld [vmem:[%s13603_s5 + $0xf8c] ss:$16 sps:$4 sm:$0xff]  }
 0x67f   : > { %v7845_v8 = vadd.f32 %v7835_v9, %v7831_v31  ;;  %7762 = vmatpush1.bf16.msra.mxu0 %v10163_v7  ;;  %7720 = vmatprep.subr.bf16.mxu1 %v10168_v40  ;;  %v7839_v14 = vrot.slane %v7838_v48, 4  ;;  %v10213_v58 = vld [vmem:[%s13603_s5 + $0x118c] ss:$16 sps:$4 sm:$0xff]   ;;  %v10208_v13 = vld [vmem:[%s13603_s5 + $0xf88] ss:$16 sps:$4 sm:$0xff]  }
 0x680   : > { %7763 = vmatprep.subr.bf16.mxu0 %v10171_v28  ;;  %v10211_v22 = vld [vmem:[%s13603_s5 + $0x1188] ss:$16 sps:$4 sm:$0xff]   ;;  %v10216_v5 = vld [vmem:[%s13603_s5 + $0xf6c] ss:$16 sps:$4 sm:$0xff]  }
 0x681   : > { %v7840_v54 = vadd.f32 %v7839_v14, %v7838_v48  ;;  %v7846_v36 = vrot.slane %v7845_v8, 4  ;;  %v10219_v23 = vld [vmem:[%s13603_s5 + $0x116c] ss:$16 sps:$4 sm:$0xff]   ;;  %v10214_v60 = vld [vmem:[%s13603_s5 + $0xf68] ss:$16 sps:$4 sm:$0xff]  }
 0x682   : > { %7721 = vmatpush1.bf16.msra.mxu1 %v10166_v42  ;;  %v10217_v17 = vld [vmem:[%s13603_s5 + $0x1168] ss:$16 sps:$4 sm:$0xff]   ;;  %v10222_v59 = vld [vmem:[%s13603_s5 + $0xf4c] ss:$16 sps:$4 sm:$0xff]  }
 0x683   : > { %7764 = vmatpush1.bf16.msra.mxu0 %v10169_v32  ;;  %7722 = vmatprep.subr.bf16.mxu1 %v10174_v21  ;;  %v7841_v52 = vrot.slane %v7840_v54, 2  ;;  %v7847_v12 = vadd.f32 %v7846_v36, %v7845_v8  ;;  %v10225_v4 = vld [vmem:[%s13603_s5 + $0x114c] ss:$16 sps:$4 sm:$0xff]   ;;  %v10220_v27 = vld [vmem:[%s13603_s5 + $0xf48] ss:$16 sps:$4 sm:$0xff]   ;;  %v7445_v32 = vpop.f32.mrf.mxu0 }
 0x684   : > { %7765 = vmatprep.subr.bf16.mxu0 %v10177_v25  ;;  %v10223_v51 = vld [vmem:[%s13603_s5 + $0x1148] ss:$16 sps:$4 sm:$0xff]   ;;  %v10228_v30 = vld [vmem:[%s13603_s5 + $0xf2c] ss:$16 sps:$4 sm:$0xff]  }
 0x685   : > { %v7842_v16 = vadd.f32 %v7841_v52, %v7840_v54  ;;  %v7848_v24 = vrot.slane %v7847_v12, 2  ;;  %v10231_v20 = vld [vmem:[%s13603_s5 + $0x112c] ss:$16 sps:$4 sm:$0xff]   ;;  %v10226_v11 = vld [vmem:[%s13603_s5 + $0xf28] ss:$16 sps:$4 sm:$0xff]   ;;  %v7447_v21 = vpop.f32.mrf.mxu0 }
 0x686   : > { %7723 = vmatpush1.bf16.msra.mxu1 %v10172_v62  ;;  %v10229_v3 = vld [vmem:[%s13603_s5 + $0x1128] ss:$16 sps:$4 sm:$0xff]   ;;  %v10234_v7 = vld [vmem:[%s13603_s5 + $0xf0c] ss:$16 sps:$4 sm:$0xff]  }
 0x687   : > { %7766 = vmatpush1.bf16.msra.mxu0 %v10175_v39  ;;  %7724 = vmatprep.subr.bf16.mxu1 %v10180_v2  ;;  %v7843_v44 = vrot.slane %v7842_v16, 1  ;;  %v7849_v38 = vadd.f32 %v7848_v24, %v7847_v12  ;;  %v10237_v40 = vld [vmem:[%s13603_s5 + $0x110c] ss:$16 sps:$4 sm:$0xff]   ;;  %v10232_v61 = vld [vmem:[%s13603_s5 + $0xf08] ss:$16 sps:$4 sm:$0xff]   ;;  %v7449_v14 = vpop.f32.mrf.mxu0 }
 0x688   : > { %7767 = vmatprep.subr.bf16.mxu0 %v10183_v46  ;;  %v10235_v28 = vld [vmem:[%s13603_s5 + $0x1108] ss:$16 sps:$4 sm:$0xff]  }
 0x689   : > { %v13452_v15 = vadd.f32 %v7843_v44, %v7842_v16  ;;  %v7850_v26 = vrot.slane %v7849_v38, 1  ;;  %v7451_v25 = vpop.f32.mrf.mxu0 }
 0x68a   : > { %7725 = vmatpush1.bf16.msra.mxu1 %v10178_v10 }
 0x68b   : > { %7768 = vmatpush1.bf16.msra.mxu0 %v10181_v33  ;;  %7871 = vrot.lane.b32.xlu0 %v13452_v15, %s10249_s15  ;;  %v13468_v29 = vadd.f32 %v7850_v26, %v7849_v38  ;;  %v7867_v31 = vsel %vm7866_vm4, %v13452_v15, 0.0 }
 0x68c   : > { %7726 = vmatprep.subr.bf16.mxu1 %v10186_v47  ;;  %7769 = vmatprep.subr.bf16.mxu0 %v10189_v49 }
 0x68d   : > { %v7877_v9 = vsel %vm7866_vm4, %v13468_v29, 0.0 }
 0x68e   : > { %7727 = vmatpush1.bf16.msra.mxu1 %v10184_v45 }
 0x68f   : > { %7770 = vmatpush1.bf16.msra.mxu0 %v10187_v19  ;;  %7881 = vrot.lane.b32.xlu0 %v13468_v29, %s10249_s15 }
 0x690   : > { %7728 = vmatprep.subr.bf16.mxu1 %v10192_v56  ;;  %7771 = vmatprep.subr.bf16.mxu0 %v10195_v57 }
 0x692   : > { %7729 = vmatpush2.bf16.msra.mxu1 %v10190_v18 }
 0x693   : > { %7772 = vmatpush2.bf16.msra.mxu0 %v10193_v43  ;;  %7730 = vmatprep.subr.bf16.mxu1 %v10198_v50 }
 0x694   : > { %7773 = vmatprep.subr.bf16.mxu0 %v10201_v53 }
 0x696   : > { %7731 = vmatpush2.bf16.msra.mxu1 %v10196_v35 }
 0x697   : > { %7774 = vmatpush2.bf16.msra.mxu0 %v10199_v63  ;;  %7732 = vmatprep.subr.bf16.mxu1 %v10204_v37 }
 0x698   : > { %7775 = vmatprep.subr.bf16.mxu0 %v10207_v0 }
 0x69a   : > { %7733 = vmatpush2.bf16.msra.mxu1 %v10202_v41 }
 0x69b   : > { %7776 = vmatpush2.bf16.msra.mxu0 %v10205_v6  ;;  %7734 = vmatprep.subr.bf16.mxu1 %v10210_v55 }
 0x69c   : > { %7777 = vmatprep.subr.bf16.mxu0 %v10213_v58 }
 0x69e   : > { %7735 = vmatpush2.bf16.msra.mxu1 %v10208_v13 }
 0x69f   : > { %7778 = vmatpush2.bf16.msra.mxu0 %v10211_v22  ;;  %7736 = vmatprep.subr.bf16.mxu1 %v10216_v5 }
 0x6a0   : > { %7779 = vmatprep.subr.bf16.mxu0 %v10219_v23 }
 0x6a2   : > { %7737 = vmatpush2.bf16.msra.mxu1 %v10214_v60 }
 0x6a3   : > { %7780 = vmatpush2.bf16.msra.mxu0 %v10217_v17  ;;  %7738 = vmatprep.subr.bf16.mxu1 %v10222_v59 }
 0x6a4   : > { %7781 = vmatprep.subr.bf16.mxu0 %v10225_v4 }
 0x6a6   : > { %7739 = vmatpush2.bf16.msra.mxu1 %v10220_v27 }
 0x6a7   : > { %7782 = vmatpush2.bf16.msra.mxu0 %v10223_v51  ;;  %7740 = vmatprep.subr.bf16.mxu1 %v10228_v30 }
 0x6a8   : > { %7783 = vmatprep.subr.bf16.mxu0 %v10231_v20 }
 0x6aa   : > { %7741 = vmatpush2.bf16.msra.mxu1 %v10226_v11 }
 0x6ab   : > { %7784 = vmatpush2.bf16.msra.mxu0 %v10229_v3  ;;  %7742 = vmatprep.subr.bf16.mxu1 %v10234_v7 }
 0x6ac   : > { %7785 = vmatprep.subr.bf16.mxu0 %v10237_v40 }
 0x6ae   : > { %7743 = vmatpush2.bf16.msra.mxu1 %v10232_v61  ;;  %7868 = vadd.xlane.f32.xlu0 %v7867_v31 }
 0x6af   : > { %7786 = vmatpush2.bf16.msra.mxu0 %v10235_v28 }
 0x6b1   : > { %7745 = vmatmul.mubr.bf16.vlgmr.msra.gmra.mxu1 %v12530_v1  ;;  %v7488_v54 = vpop.f32.mrf.mxu1 }
 0x6b2   : > { %7788 = vmatmul.mubr.bf16.vlgmr.msra.gmra.mxu0 %v12095_v34  ;;  %7878 = vadd.xlane.f32.xlu0 %v7877_v9  ;;  %v7531_v36 = vpop.f32.mrf.mxu0  ;;  %v7489_v44 = vadd.f32 %v7488_v54, %v7445_v32  ;;  %v7824_v54 = vld [vmem:[%s13604_s6 + $0x10] sm:$0xff] }
 0x6b3   : > { %v7490_v62 = vpop.f32.mrf.mxu1 }
 0x6b4   : > { %v7533_v1 = vpop.f32.mrf.mxu0  ;;  %v7491_v47 = vadd.f32 %v7490_v62, %v7447_v21  ;;  %v7532_v26 = vadd.f32 %v7531_v36, %v7489_v44 }
 0x6b5   : > { %v7492_v39 = vpop.f32.mrf.mxu1 }
 0x6b6   : > { %v7535_v2 = vpop.f32.mrf.mxu0  ;;  %v7493_v45 = vadd.f32 %v7492_v39, %v7449_v14  ;;  %v7534_v56 = vadd.f32 %v7533_v1, %v7491_v47  ;;  %v7828_v39 = vld [vmem:[%s13604_s6 + $0x30] sm:$0xff] }
 0x6b7   : > { %v7494_v52 = vpop.f32.mrf.mxu1 }
 0x6b8   : > { %v7537_v12 = vpop.f32.mrf.mxu0  ;;  %v7495_v29 = vadd.f32 %v7494_v52, %v7451_v25  ;;  %v7536_v43 = vadd.f32 %v7535_v2, %v7493_v45 }
 0x6ba   : > { %v7538_v37 = vadd.f32 %v7537_v12, %v7495_v29 }
 0x6f1   : > { %v7574_v34 = vpop.f32.mrf.mxu1 }
 0x6f2   : > { %v7617_v46 = vpop.f32.mrf.mxu0  ;;  %v7575_v57 = vadd.f32 %v7574_v34, %v7532_v26 }
 0x6f3   : > { %v7576_v16 = vpop.f32.mrf.mxu1 }
 0x6f4   : > { %v7619_v24 = vpop.f32.mrf.mxu0  ;;  %v7577_v50 = vadd.f32 %v7576_v16, %v7534_v56  ;;  %v7618_v35 = vadd.f32 %v7617_v46, %v7575_v57  ;;  %v7825_v16 = vld [vmem:[%s13604_s6 + $0x18] sm:$0xff] }
 0x6f5   : > { %v7578_v10 = vpop.f32.mrf.mxu1 }
 0x6f6   : > { %v7621_v33 = vpop.f32.mrf.mxu0  ;;  %v7579_v63 = vadd.f32 %v7578_v10, %v7536_v43  ;;  %v7620_v41 = vadd.f32 %v7619_v24, %v7577_v50 }
 0x6f7   : > { %v7580_v38 = vpop.f32.mrf.mxu1 }
 0x6f8   : > { %v7623_v49 = vpop.f32.mrf.mxu0  ;;  %v7581_v58 = vadd.f32 %v7580_v38, %v7538_v37  ;;  %v7622_v13 = vadd.f32 %v7621_v33, %v7579_v63  ;;  %v7829_v33 = vld [vmem:[%s13604_s6 + $0x38] sm:$0xff] }
 0x6fa   : > { %v7624_v59 = vadd.f32 %v7623_v49, %v7581_v58 }
 0x6fd   : > { %v13568_v48 = vpop.permute.xlu0 %7871 }
 0x6fe   : > { %v7874_v37 = vsel %vm7866_vm4, %v13568_v48, 0.0 }
 0x701   : > { %v7882_v42 = vpop.permute.xlu0 %7881 }
 0x702   : > { %v7884_v8 = vsel %vm7866_vm4, %v7882_v42, 0.0 }
 0x703   : > { %7885 = vadd.xlane.f32.xlu0 %v7884_v8 }
 0x731   : > { %v7660_v15 = vpop.f32.mrf.mxu1 }
 0x732   : > { %v7703_v19 = vpop.f32.mrf.mxu0  ;;  %v7661_v6 = vadd.f32 %v7660_v15, %v7618_v35 }
 0x733   : > { %v7662_v18 = vpop.f32.mrf.mxu1 }
 0x734   : > { %v7705_v53 = vpop.f32.mrf.mxu0  ;;  %v7663_v22 = vadd.f32 %v7662_v18, %v7620_v41  ;;  %v7704_v23 = vadd.f32 %v7703_v19, %v7661_v6 }
 0x735   : > { %v7664_v0 = vpop.f32.mrf.mxu1 }
 0x736   : > { %v7707_v55 = vpop.f32.mrf.mxu0  ;;  %v7665_v60 = vadd.f32 %v7664_v0, %v7622_v13  ;;  %v7706_v27 = vadd.f32 %v7705_v53, %v7663_v22 }
 0x737   : > { %v7666_v5 = vpop.f32.mrf.mxu1  ;;  %v7869_v22 = vpop.xlane.xlu0 %7868 }
 0x738   : > { %v7709_v17 = vpop.f32.mrf.mxu0  ;;  %v7667_v20 = vadd.f32 %v7666_v5, %v7624_v59  ;;  %v7708_v3 = vadd.f32 %v7707_v55, %v7665_v60 }
 0x73a   : > { %v7710_v32 = vadd.f32 %v7709_v17, %v7667_v20 }
 0x771   : > { %v7746_v4 = vpop.f32.mrf.mxu1 }
 0x772   : > { %v7747_v51 = vadd.f32 %v7746_v4, %v7704_v23  ;;  %v7789_v30 = vpop.f32.mrf.mxu0  ;;  %v7879_v23 = vpop.xlane.xlu0 %7878 }
 0x773   : > { %v7748_v11 = vpop.f32.mrf.mxu1 }
 0x774   : > { %v7790_v7 = vadd.f32 %v7789_v30, %v7747_v51  ;;  %v7749_v40 = vadd.f32 %v7748_v11, %v7706_v27  ;;  %v7791_v61 = vpop.f32.mrf.mxu0 }
 0x775   : > { %v7750_v28 = vpop.f32.mrf.mxu1 }
 0x776   : > { %vm7800_vm5 = vcmp.gt.f32.partialorder %v7790_v7, 0.0  ;;  %v7808_v31 = vmul.f32 0.01, %v7790_v7  ;;  %v7792_v9 = vadd.f32 %v7791_v61, %v7749_v40  ;;  %v7751_v42 = vadd.f32 %v7750_v28, %v7708_v3  ;;  %v7793_v8 = vpop.f32.mrf.mxu0 }
 0x777   : > { %v7752_v21 = vpop.f32.mrf.mxu1 }
 0x778   : > { %v7794_v14 = vadd.f32 %v7793_v8, %v7751_v42  ;;  %v7816_v25 = vsel %vm7800_vm5, %v7790_v7, %v7808_v31  ;;  %v7809_v36 = vmul.f32 0.01, %v7792_v9  ;;  %v7753_v62 = vadd.f32 %v7752_v21, %v7710_v32  ;;  %v7795_v2 = vpop.f32.mrf.mxu0 }
 0x779   : > { %vm7801_vm6 = vcmp.gt.f32.partialorder %v7792_v9, 0.0  ;;  %v7832_v12 = vmul.f32 %v7824_v54, %v7816_v25 }
 0x77a   : > { %vm7804_vm7 = vcmp.gt.f32.partialorder %v7794_v14, 0.0  ;;  %v7812_v1 = vmul.f32 0.01, %v7794_v14  ;;  %v7796_v52 = vadd.f32 %v7795_v2, %v7753_v62  ;;  %v7817_v46 = vsel %vm7801_vm6, %v7792_v9, %v7809_v36 }
 0x77b   : > { %v7833_v47 = vmul.f32 %v7825_v16, %v7817_v46 }
 0x77c   : > { %v7820_v34 = vsel %vm7804_vm7, %v7794_v14, %v7812_v1  ;;  %vm7805_vm8 = vcmp.gt.f32.partialorder %v7796_v52, 0.0  ;;  %v7813_v10 = vmul.f32 0.01, %v7796_v52 }
 0x77d   : > { %v7836_v24 = vmul.f32 %v7828_v39, %v7820_v34 }
 0x77e   : > { %v7821_v44 = vsel %vm7805_vm8, %v7796_v52, %v7813_v10 }
 0x77f   : > { %v7852_v38 = vadd.f32 %v7836_v24, %v7832_v12  ;;  %v7837_v49 = vmul.f32 %v7829_v33, %v7821_v44 }
 0x781   : > { %v7853_v15 = vrot.slane %v7852_v38, 4  ;;  %v7859_v26 = vadd.f32 %v7837_v49, %v7833_v47 }
 0x783   : > { %v7854_v45 = vadd.f32 %v7853_v15, %v7852_v38  ;;  %v7860_v19 = vrot.slane %v7859_v26, 4 }
 0x785   : > { %v7855_v56 = vrot.slane %v7854_v45, 2  ;;  %v7861_v57 = vadd.f32 %v7860_v19, %v7859_v26 }
 0x787   : > { %v7856_v29 = vadd.f32 %v7855_v56, %v7854_v45  ;;  %v7862_v18 = vrot.slane %v7861_v57, 2 }
 0x789   : > { %v7857_v43 = vrot.slane %v7856_v29, 1  ;;  %v7863_v50 = vadd.f32 %v7862_v18, %v7861_v57 }
 0x78b   : > { %v7858_v53 = vadd.f32 %v7857_v43, %v7856_v29  ;;  %v7864_v35 = vrot.slane %v7863_v50, 1 }
 0x78c   : > { %v7886_v17 = vpop.xlane.xlu0 %7885 }
 0x78d   : > { %7891 = vrot.lane.b32.xlu1 %v7858_v53, %s10249_s15  ;;  %v7865_v63 = vadd.f32 %v7864_v35, %v7863_v50  ;;  %v7887_v0 = vsel %vm7866_vm4, %v7858_v53, 0.0 }
 0x78f   : > { %v7897_v41 = vsel %vm7866_vm4, %v7865_v63, 0.0 }
 0x791   : > { %7901 = vrot.lane.b32.xlu1 %v7865_v63, %s10249_s15  ;;  %s7921_s15 = sld [smem:[#allocation2]] }
 0x797   : > { %v7922_v11 = vstv %s7921_s15 }
 0x7b5   : > { %7875 = vadd.xlane.f32.xlu1 %v7874_v37 }
 0x7b9   : > { %7888 = vadd.xlane.f32.xlu1 %v7887_v0 }
 0x7bd   : > { %7898 = vadd.xlane.f32.xlu1 %v7897_v41 }
 0x7ff   : > { %v7892_v6 = vpop.permute.xlu1 %7891 }
 0x800   : > { %v7894_v55 = vsel %vm7866_vm4, %v7892_v6, 0.0 }
 0x801   : > { %7895 = vadd.xlane.f32.xlu0 %v7894_v55 }
 0x803   : > { %v7902_v58 = vpop.permute.xlu1 %7901 }
 0x804   : > { %v7904_v13 = vsel %vm7866_vm4, %v7902_v58, 0.0 }
 0x805   : > { %7905 = vadd.xlane.f32.xlu0 %v7904_v13 }
 0x83e   : > { %v7876_v5 = vpop.xlane.xlu1 %7875 }
 0x83f   : > { %v7908_v48 = vsel %vm7907_vm9, %v7869_v22, %v7876_v5 }
 0x840   : > { %v7910_v60 = vsel %vm7909_vm10, %v7908_v48, %v7879_v23 }
 0x841   : > { %v7912_v4 = vsel %vm7911_vm11, %v7910_v60, %v7886_v17 }
 0x842   : > { %v7889_v59 = vpop.xlane.xlu1 %7888 }
 0x843   : > { %v7914_v27 = vsel %vm7913_vm12, %v7912_v4, %v7889_v59 }
 0x846   : > { %v7899_v20 = vpop.xlane.xlu1 %7898 }
 0x88a   : > { %v7896_v51 = vpop.xlane.xlu0 %7895 }
 0x88b   : > { %v7916_v30 = vsel %vm7915_vm13, %v7914_v27, %v7896_v51 }
 0x88c   : > { %v7918_v3 = vsel %vm7917_vm14, %v7916_v30, %v7899_v20 }
 0x88e   : > { %v7906_v7 = vpop.xlane.xlu0 %7905 }
 0x88f   : > { %v7920_v40 = vsel %vm7919_vm15, %v7918_v3, %v7906_v7 }
 0x890   : > { %v7923_v61 = vadd.f32 %v7922_v11, %v7920_v40 }
 0x892   : > { %7925 = vst.msk [vmem:[%s302_s11] sm:$0x1] %vm7924_vm0, %v7923_v61 }
 0x893 PF: > { %s19_s29 = sadd.s32 1, %s10244_s29  }
 0x894   : > { %p16_p4 = scmp.ge.s32.totalorder %s19_s29, 4  }
 0x896   :  { %18 = sbr.rel (!%p16_p4) target bundleno = 2 (0x2), region = 98 }

</bundles_post_ra>
